<compile_context>
chip_gen: v7x
topology: tpu7x:2x2x1
jax: 0.10.0
libtpu: 0.0.40
codegen_flags: <defaults>
</compile_context>

<pallas_src>
import functools

import jax
import jax.numpy as jnp
import numpy as np
from jax.experimental import pallas as pl
from jax.experimental.pallas import tpu as pltpu

KS = 5      # conv kernel size
PAD = 2     # 'same' padding for k=5

# small compatibility shim (older jax spells this TPUCompilerParams)
_CompilerParams = getattr(pltpu, "CompilerParams", None) or getattr(
    pltpu, "TPUCompilerParams")


# ---------------------------------------------------------------------------
# Kernel: one output depth-plane of the conv for one sample.
# ---------------------------------------------------------------------------
def _conv3d_kernel(x_ref, w_ref, m_ref, b_ref, o_ref, *, Cout, H, W, G):
    """5x5x5 'same' conv, one (n, d) output plane per grid step.

    x_ref: (D+4, C, PG)   zero D-padded input; (H,W) flattened onto the lane
                          axis with a G-wide zero guard on each side.
    w_ref: (125, Cout, C) weights, tap index = (kd*5 + kh)*5 + kw.
    m_ref: (25, H*W)      validity masks for the 25 in-plane (kh,kw) shifts
                          (zero where the shifted read would wrap across an
                          H/W border instead of hitting conv zero-padding).
    b_ref: (Cout, 1)      bias.
    o_ref: (Cout, H*W)    output plane (lane axis = flattened spatial plane).
    """
    HW = H * W
    d = pl.program_id(1)

    # The 5 depth planes feeding output plane d (depth halo comes from the
    # zero D-padding done in the wrapper). Loaded once, sliced 25x each.
    xrows = [x_ref[d + kd] for kd in range(KS)]            # each (C, PG)

    acc = jnp.zeros((Cout, HW), jnp.float32)
    for kh in range(KS):
        for kw in range(KS):
            base = G + (kh - PAD) * W + (kw - PAD)          # static, >= 0
            idx = kh * KS + kw
            mask = m_ref[idx:idx + 1, :]                    # (1, HW)
            psum = jnp.zeros((Cout, HW), jnp.float32)
            for kd in range(KS):
                xs = xrows[kd][:, base:base + HW]           # (C, HW), static slice
                tap = (kd * KS + kh) * KS + kw
                psum = psum + jnp.dot(
                    w_ref[tap], xs, preferred_element_type=jnp.float32)
            acc = acc + mask * psum
    o_ref[...] = acc + b_ref[...]


# ---------------------------------------------------------------------------
# Wrapper: layout plumbing only (pad / transpose / reshape), no im2col.
# ---------------------------------------------------------------------------
def conv3d_same5(x, weight, bias):
    """x: (N, C, D, H, W) f32; weight: (Cout, C, 5, 5, 5); bias: (Cout,)."""
    N, C, D, H, W = x.shape
    Cout = weight.shape[0]
    HW = H * W
    G = 2 * W + 2                 # lane guard so every shifted read is in-bounds
    PG = HW + 2 * G
    Dp = D + 2 * PAD

    # (N,C,D,H,W) -> zero-pad D -> (N, D+4, C, H*W) -> zero guard on plane axis.
    xp = jnp.pad(x, ((0, 0), (0, 0), (PAD, PAD), (0, 0), (0, 0)))
    xp = jnp.transpose(xp, (0, 2, 1, 3, 4)).reshape(N, Dp, C, HW)
    xp = jnp.pad(xp, ((0, 0), (0, 0), (0, 0), (G, G)))       # (N, Dp, C, PG)

    # Weights (Cout, C, kd, kh, kw) -> (125, Cout, C); tap = (kd*5+kh)*5+kw.
    wt = jnp.transpose(weight, (2, 3, 4, 0, 1)).reshape(KS ** 3, Cout, C)
    wt = wt.astype(jnp.float32)
    b2 = bias.reshape(Cout, 1).astype(jnp.float32)

    # In-plane validity masks (built once on host with numpy).
    hh = np.arange(HW) // W
    ww = np.arange(HW) % W
    masks = np.zeros((KS * KS, HW), np.float32)
    for kh in range(KS):
        for kw in range(KS):
            ok = ((hh + kh - PAD >= 0) & (hh + kh - PAD < H)
                  & (ww + kw - PAD >= 0) & (ww + kw - PAD < W))
            masks[kh * KS + kw] = ok.astype(np.float32)
    masks = jnp.asarray(masks)

    kernel = functools.partial(_conv3d_kernel, Cout=Cout, H=H, W=W, G=G)

    out = pl.pallas_call(
        kernel,
        out_shape=jax.ShapeDtypeStruct((N, D, Cout, HW), jnp.float32),
        grid=(N, D),
        in_specs=[
            # Full padded activation for sample n; constant along the d axis,
            # so it is DMA'd once per sample and stays VMEM-resident.
            pl.BlockSpec((None, Dp, C, PG), lambda n, d: (n, 0, 0, 0)),
            pl.BlockSpec((KS ** 3, Cout, C), lambda n, d: (0, 0, 0)),
            pl.BlockSpec((KS * KS, HW), lambda n, d: (0, 0)),
            pl.BlockSpec((Cout, 1), lambda n, d: (0, 0)),
        ],
        # Lane-dense output tile: (Cout, H*W) per (n, d).
        out_specs=pl.BlockSpec((None, None, Cout, HW), lambda n, d: (n, d, 0, 0)),
        compiler_params=_CompilerParams(
            dimension_semantics=("parallel", "parallel"),
            vmem_limit_bytes=32 * 1024 * 1024,
        ),
    )(xp, wt, masks, b2)

    # (N, D, Cout, HW) -> (N, Cout, D, H, W)
    return jnp.transpose(out, (0, 2, 1, 3)).reshape(N, Cout, D, H, W)


# ---------------------------------------------------------------------------
# Parameter init mimicking PyTorch Conv3d defaults (kaiming_uniform(a=sqrt(5))
# reduces to U(-1/sqrt(fan_in), 1/sqrt(fan_in)) for both weight and bias).
# ---------------------------------------------------------------------------
def init_params(key, in_ch, out_ch):
    kw_, kb = jax.random.split(key)
    fan_in = in_ch * KS ** 3
    bound = 1.0 / float(np.sqrt(fan_in))
    weight = jax.random.uniform(kw_, (out_ch, in_ch, KS, KS, KS),
                                jnp.float32, -bound, bound)
    bias = jax.random.uniform(kb, (out_ch,), jnp.float32, -bound, bound)
    return weight, bias


# ---------------------------------------------------------------------------
if __name__ == "__main__":
    key = jax.random.PRNGKey(0)
    kx, kp = jax.random.split(key)

    N, Cin, Cout, D, H, W = 2, 4, 8, 16, 16, 16
    x = jax.random.normal(kx, (N, Cin, D, H, W), dtype=jnp.float32)
    weight, bias = init_params(kp, Cin, Cout)

    fwd = jax.jit(conv3d_same5)
    out = jax.block_until_ready(fwd(x, weight, bias))

    assert out.shape == (N, Cout, D, H, W)
    assert out.dtype == jnp.float32
    assert bool(jnp.all(jnp.isfinite(out)))

    # Cross-check against XLA's conv (cross-correlation, same as PyTorch).
    ref = jax.lax.conv_general_dilated(
        x, weight, window_strides=(1, 1, 1),
        padding=((PAD, PAD),) * 3,
        dimension_numbers=("NCDHW", "OIDHW", "NCDHW"),
        precision=jax.lax.Precision.HIGHEST,
    ) + bias.reshape(1, Cout, 1, 1, 1)
    max_err = float(jnp.max(jnp.abs(out - ref)))
    assert bool(jnp.allclose(out, ref, atol=3e-2, rtol=3e-2)), max_err

    print("KERNEL_OK")
</pallas_src>

<mosaic_0001>
module attributes {stable_mosaic.version = 11 : i64} {
  func.func @_conv3d_kernel(%arg0: i32, %arg1: i32, %arg2: memref<1x20x4x324xf32, #tpu.memory_space<vmem>>, %arg3: memref<125x8x4xf32, #tpu.memory_space<vmem>>, %arg4: memref<25x256xf32, #tpu.memory_space<vmem>>, %arg5: memref<8x1xf32, #tpu.memory_space<vmem>>, %arg6: memref<1x1x8x256xf32, #tpu.memory_space<vmem>>) attributes {dimension_semantics = [#tpu.dimension_semantics<parallel>, #tpu.dimension_semantics<parallel>], iteration_bounds = array<i64: 2, 16>, scalar_prefetch = 0 : i64, scratch_operands = 0 : i64, tpu.core_type = #tpu.core_type<tc>, window_params = [{transform_indices = @transform_0, window_bounds = array<i64: 1, 20, 4, 324>}, {pipeline_mode = #tpu.pipeline_mode<synchronous>, transform_indices = @transform_1, window_bounds = array<i64: 125, 8, 4>}, {pipeline_mode = #tpu.pipeline_mode<synchronous>, transform_indices = @transform_2, window_bounds = array<i64: 25, 256>}, {pipeline_mode = #tpu.pipeline_mode<synchronous>, transform_indices = @transform_3, window_bounds = array<i64: 8, 1>}, {transform_indices = @transform_4, window_bounds = array<i64: 1, 1, 8, 256>}]} {
    %c0_i32 = arith.constant 0 : i32
    %0 = arith.addi %arg1, %c0_i32 : i32
    %c0 = arith.constant 0 : index
    %1 = arith.index_cast %0 : i32 to index
    %c0_0 = arith.constant 0 : index
    %c0_1 = arith.constant 0 : index
    %2 = vector.load %arg2[%c0, %1, %c0_0, %c0_1] : memref<1x20x4x324xf32, #tpu.memory_space<vmem>>, vector<1x1x4x324xf32>
    %3 = vector.shape_cast %2 : vector<1x1x4x324xf32> to vector<4x324xf32>
    %c1_i32 = arith.constant 1 : i32
    %4 = arith.addi %arg1, %c1_i32 : i32
    %c0_2 = arith.constant 0 : index
    %5 = arith.index_cast %4 : i32 to index
    %c0_3 = arith.constant 0 : index
    %c0_4 = arith.constant 0 : index
    %6 = vector.load %arg2[%c0_2, %5, %c0_3, %c0_4] : memref<1x20x4x324xf32, #tpu.memory_space<vmem>>, vector<1x1x4x324xf32>
    %7 = vector.shape_cast %6 : vector<1x1x4x324xf32> to vector<4x324xf32>
    %c2_i32 = arith.constant 2 : i32
    %8 = arith.addi %arg1, %c2_i32 : i32
    %c0_5 = arith.constant 0 : index
    %9 = arith.index_cast %8 : i32 to index
    %c0_6 = arith.constant 0 : index
    %c0_7 = arith.constant 0 : index
    %10 = vector.load %arg2[%c0_5, %9, %c0_6, %c0_7] : memref<1x20x4x324xf32, #tpu.memory_space<vmem>>, vector<1x1x4x324xf32>
    %11 = vector.shape_cast %10 : vector<1x1x4x324xf32> to vector<4x324xf32>
    %c3_i32 = arith.constant 3 : i32
    %12 = arith.addi %arg1, %c3_i32 : i32
    %c0_8 = arith.constant 0 : index
    %13 = arith.index_cast %12 : i32 to index
    %c0_9 = arith.constant 0 : index
    %c0_10 = arith.constant 0 : index
    %14 = vector.load %arg2[%c0_8, %13, %c0_9, %c0_10] : memref<1x20x4x324xf32, #tpu.memory_space<vmem>>, vector<1x1x4x324xf32>
    %15 = vector.shape_cast %14 : vector<1x1x4x324xf32> to vector<4x324xf32>
    %c4_i32 = arith.constant 4 : i32
    %16 = arith.addi %arg1, %c4_i32 : i32
    %c0_11 = arith.constant 0 : index
    %17 = arith.index_cast %16 : i32 to index
    %c0_12 = arith.constant 0 : index
    %c0_13 = arith.constant 0 : index
    %18 = vector.load %arg2[%c0_11, %17, %c0_12, %c0_13] : memref<1x20x4x324xf32, #tpu.memory_space<vmem>>, vector<1x1x4x324xf32>
    %19 = vector.shape_cast %18 : vector<1x1x4x324xf32> to vector<4x324xf32>
    %cst = arith.constant 0.000000e+00 : f32
    %20 = vector.broadcast %cst : f32 to vector<8x256xf32>
    %c0_14 = arith.constant 0 : index
    %c0_15 = arith.constant 0 : index
    %21 = vector.load %arg4[%c0_14, %c0_15] : memref<25x256xf32, #tpu.memory_space<vmem>>, vector<1x256xf32>
    %cst_16 = arith.constant 0.000000e+00 : f32
    %22 = vector.broadcast %cst_16 : f32 to vector<8x256xf32>
    %23 = vector.extract_strided_slice %3 {offsets = [0, 0], sizes = [4, 256], strides = [1, 1]} : vector<4x324xf32> to vector<4x256xf32>
    %c0_17 = arith.constant 0 : index
    %c0_18 = arith.constant 0 : index
    %c0_19 = arith.constant 0 : index
    %24 = vector.load %arg3[%c0_17, %c0_18, %c0_19] : memref<125x8x4xf32, #tpu.memory_space<vmem>>, vector<1x8x4xf32>
    %25 = vector.shape_cast %24 : vector<1x8x4xf32> to vector<8x4xf32>
    %cst_20 = arith.constant dense<0.000000e+00> : vector<8x256xf32>
    %26 = tpu.matmul %25, %23, %cst_20 {dimension_numbers = #tpu.dot_dimension_numbers<[1], [0], [0], [1], [0, 0, 1, 1], [], []>} : vector<8x4xf32>, vector<4x256xf32>, vector<8x256xf32> -> vector<8x256xf32>
    %27 = arith.addf %22, %26 : vector<8x256xf32>
    %28 = vector.extract_strided_slice %7 {offsets = [0, 0], sizes = [4, 256], strides = [1, 1]} : vector<4x324xf32> to vector<4x256xf32>
    %c25 = arith.constant 25 : index
    %c0_21 = arith.constant 0 : index
    %c0_22 = arith.constant 0 : index
    %29 = vector.load %arg3[%c25, %c0_21, %c0_22] : memref<125x8x4xf32, #tpu.memory_space<vmem>>, vector<1x8x4xf32>
    %30 = vector.shape_cast %29 : vector<1x8x4xf32> to vector<8x4xf32>
    %cst_23 = arith.constant dense<0.000000e+00> : vector<8x256xf32>
    %31 = tpu.matmul %30, %28, %cst_23 {dimension_numbers = #tpu.dot_dimension_numbers<[1], [0], [0], [1], [0, 0, 1, 1], [], []>} : vector<8x4xf32>, vector<4x256xf32>, vector<8x256xf32> -> vector<8x256xf32>
    %32 = arith.addf %27, %31 : vector<8x256xf32>
    %33 = vector.extract_strided_slice %11 {offsets = [0, 0], sizes = [4, 256], strides = [1, 1]} : vector<4x324xf32> to vector<4x256xf32>
    %c50 = arith.constant 50 : index
    %c0_24 = arith.constant 0 : index
    %c0_25 = arith.constant 0 : index
    %34 = vector.load %arg3[%c50, %c0_24, %c0_25] : memref<125x8x4xf32, #tpu.memory_space<vmem>>, vector<1x8x4xf32>
    %35 = vector.shape_cast %34 : vector<1x8x4xf32> to vector<8x4xf32>
    %cst_26 = arith.constant dense<0.000000e+00> : vector<8x256xf32>
    %36 = tpu.matmul %35, %33, %cst_26 {dimension_numbers = #tpu.dot_dimension_numbers<[1], [0], [0], [1], [0, 0, 1, 1], [], []>} : vector<8x4xf32>, vector<4x256xf32>, vector<8x256xf32> -> vector<8x256xf32>
    %37 = arith.addf %32, %36 : vector<8x256xf32>
    %38 = vector.extract_strided_slice %15 {offsets = [0, 0], sizes = [4, 256], strides = [1, 1]} : vector<4x324xf32> to vector<4x256xf32>
    %c75 = arith.constant 75 : index
    %c0_27 = arith.constant 0 : index
    %c0_28 = arith.constant 0 : index
    %39 = vector.load %arg3[%c75, %c0_27, %c0_28] : memref<125x8x4xf32, #tpu.memory_space<vmem>>, vector<1x8x4xf32>
    %40 = vector.shape_cast %39 : vector<1x8x4xf32> to vector<8x4xf32>
    %cst_29 = arith.constant dense<0.000000e+00> : vector<8x256xf32>
    %41 = tpu.matmul %40, %38, %cst_29 {dimension_numbers = #tpu.dot_dimension_numbers<[1], [0], [0], [1], [0, 0, 1, 1], [], []>} : vector<8x4xf32>, vector<4x256xf32>, vector<8x256xf32> -> vector<8x256xf32>
    %42 = arith.addf %37, %41 : vector<8x256xf32>
    %43 = vector.extract_strided_slice %19 {offsets = [0, 0], sizes = [4, 256], strides = [1, 1]} : vector<4x324xf32> to vector<4x256xf32>
    %c100 = arith.constant 100 : index
    %c0_30 = arith.constant 0 : index
    %c0_31 = arith.constant 0 : index
    %44 = vector.load %arg3[%c100, %c0_30, %c0_31] : memref<125x8x4xf32, #tpu.memory_space<vmem>>, vector<1x8x4xf32>
    %45 = vector.shape_cast %44 : vector<1x8x4xf32> to vector<8x4xf32>
    %cst_32 = arith.constant dense<0.000000e+00> : vector<8x256xf32>
    %46 = tpu.matmul %45, %43, %cst_32 {dimension_numbers = #tpu.dot_dimension_numbers<[1], [0], [0], [1], [0, 0, 1, 1], [], []>} : vector<8x4xf32>, vector<4x256xf32>, vector<8x256xf32> -> vector<8x256xf32>
    %47 = arith.addf %42, %46 : vector<8x256xf32>
    %48 = vector.broadcast %21 : vector<1x256xf32> to vector<8x256xf32>
    %49 = arith.mulf %48, %47 : vector<8x256xf32>
    %50 = arith.addf %20, %49 : vector<8x256xf32>
    %c1 = arith.constant 1 : index
    %c0_33 = arith.constant 0 : index
    %51 = vector.load %arg4[%c1, %c0_33] : memref<25x256xf32, #tpu.memory_space<vmem>>, vector<1x256xf32>
    %cst_34 = arith.constant 0.000000e+00 : f32
    %52 = vector.broadcast %cst_34 : f32 to vector<8x256xf32>
    %53 = vector.extract_strided_slice %3 {offsets = [0, 1], sizes = [4, 256], strides = [1, 1]} : vector<4x324xf32> to vector<4x256xf32>
    %c1_35 = arith.constant 1 : index
    %c0_36 = arith.constant 0 : index
    %c0_37 = arith.constant 0 : index
    %54 = vector.load %arg3[%c1_35, %c0_36, %c0_37] : memref<125x8x4xf32, #tpu.memory_space<vmem>>, vector<1x8x4xf32>
    %55 = vector.shape_cast %54 : vector<1x8x4xf32> to vector<8x4xf32>
    %cst_38 = arith.constant dense<0.000000e+00> : vector<8x256xf32>
    %56 = tpu.matmul %55, %53, %cst_38 {dimension_numbers = #tpu.dot_dimension_numbers<[1], [0], [0], [1], [0, 0, 1, 1], [], []>} : vector<8x4xf32>, vector<4x256xf32>, vector<8x256xf32> -> vector<8x256xf32>
    %57 = arith.addf %52, %56 : vector<8x256xf32>
    %58 = vector.extract_strided_slice %7 {offsets = [0, 1], sizes = [4, 256], strides = [1, 1]} : vector<4x324xf32> to vector<4x256xf32>
    %c26 = arith.constant 26 : index
    %c0_39 = arith.constant 0 : index
    %c0_40 = arith.constant 0 : index
    %59 = vector.load %arg3[%c26, %c0_39, %c0_40] : memref<125x8x4xf32, #tpu.memory_space<vmem>>, vector<1x8x4xf32>
    %60 = vector.shape_cast %59 : vector<1x8x4xf32> to vector<8x4xf32>
    %cst_41 = arith.constant dense<0.000000e+00> : vector<8x256xf32>
    %61 = tpu.matmul %60, %58, %cst_41 {dimension_numbers = #tpu.dot_dimension_numbers<[1], [0], [0], [1], [0, 0, 1, 1], [], []>} : vector<8x4xf32>, vector<4x256xf32>, vector<8x256xf32> -> vector<8x256xf32>
    %62 = arith.addf %57, %61 : vector<8x256xf32>
    %63 = vector.extract_strided_slice %11 {offsets = [0, 1], sizes = [4, 256], strides = [1, 1]} : vector<4x324xf32> to vector<4x256xf32>
    %c51 = arith.constant 51 : index
    %c0_42 = arith.constant 0 : index
    %c0_43 = arith.constant 0 : index
    %64 = vector.load %arg3[%c51, %c0_42, %c0_43] : memref<125x8x4xf32, #tpu.memory_space<vmem>>, vector<1x8x4xf32>
    %65 = vector.shape_cast %64 : vector<1x8x4xf32> to vector<8x4xf32>
    %cst_44 = arith.constant dense<0.000000e+00> : vector<8x256xf32>
    %66 = tpu.matmul %65, %63, %cst_44 {dimension_numbers = #tpu.dot_dimension_numbers<[1], [0], [0], [1], [0, 0, 1, 1], [], []>} : vector<8x4xf32>, vector<4x256xf32>, vector<8x256xf32> -> vector<8x256xf32>
    %67 = arith.addf %62, %66 : vector<8x256xf32>
    %68 = vector.extract_strided_slice %15 {offsets = [0, 1], sizes = [4, 256], strides = [1, 1]} : vector<4x324xf32> to vector<4x256xf32>
    %c76 = arith.constant 76 : index
    %c0_45 = arith.constant 0 : index
    %c0_46 = arith.constant 0 : index
    %69 = vector.load %arg3[%c76, %c0_45, %c0_46] : memref<125x8x4xf32, #tpu.memory_space<vmem>>, vector<1x8x4xf32>
    %70 = vector.shape_cast %69 : vector<1x8x4xf32> to vector<8x4xf32>
    %cst_47 = arith.constant dense<0.000000e+00> : vector<8x256xf32>
    %71 = tpu.matmul %70, %68, %cst_47 {dimension_numbers = #tpu.dot_dimension_numbers<[1], [0], [0], [1], [0, 0, 1, 1], [], []>} : vector<8x4xf32>, vector<4x256xf32>, vector<8x256xf32> -> vector<8x256xf32>
    %72 = arith.addf %67, %71 : vector<8x256xf32>
    %73 = vector.extract_strided_slice %19 {offsets = [0, 1], sizes = [4, 256], strides = [1, 1]} : vector<4x324xf32> to vector<4x256xf32>
    %c101 = arith.constant 101 : index
    %c0_48 = arith.constant 0 : index
    %c0_49 = arith.constant 0 : index
    %74 = vector.load %arg3[%c101, %c0_48, %c0_49] : memref<125x8x4xf32, #tpu.memory_space<vmem>>, vector<1x8x4xf32>
    %75 = vector.shape_cast %74 : vector<1x8x4xf32> to vector<8x4xf32>
    %cst_50 = arith.constant dense<0.000000e+00> : vector<8x256xf32>
    %76 = tpu.matmul %75, %73, %cst_50 {dimension_numbers = #tpu.dot_dimension_numbers<[1], [0], [0], [1], [0, 0, 1, 1], [], []>} : vector<8x4xf32>, vector<4x256xf32>, vector<8x256xf32> -> vector<8x256xf32>
    %77 = arith.addf %72, %76 : vector<8x256xf32>
    %78 = vector.broadcast %51 : vector<1x256xf32> to vector<8x256xf32>
    %79 = arith.mulf %78, %77 : vector<8x256xf32>
    %80 = arith.addf %50, %79 : vector<8x256xf32>
    %c2 = arith.constant 2 : index
    %c0_51 = arith.constant 0 : index
    %81 = vector.load %arg4[%c2, %c0_51] : memref<25x256xf32, #tpu.memory_space<vmem>>, vector<1x256xf32>
    %cst_52 = arith.constant 0.000000e+00 : f32
    %82 = vector.broadcast %cst_52 : f32 to vector<8x256xf32>
    %83 = vector.extract_strided_slice %3 {offsets = [0, 2], sizes = [4, 256], strides = [1, 1]} : vector<4x324xf32> to vector<4x256xf32>
    %c2_53 = arith.constant 2 : index
    %c0_54 = arith.constant 0 : index
    %c0_55 = arith.constant 0 : index
    %84 = vector.load %arg3[%c2_53, %c0_54, %c0_55] : memref<125x8x4xf32, #tpu.memory_space<vmem>>, vector<1x8x4xf32>
    %85 = vector.shape_cast %84 : vector<1x8x4xf32> to vector<8x4xf32>
    %cst_56 = arith.constant dense<0.000000e+00> : vector<8x256xf32>
    %86 = tpu.matmul %85, %83, %cst_56 {dimension_numbers = #tpu.dot_dimension_numbers<[1], [0], [0], [1], [0, 0, 1, 1], [], []>} : vector<8x4xf32>, vector<4x256xf32>, vector<8x256xf32> -> vector<8x256xf32>
    %87 = arith.addf %82, %86 : vector<8x256xf32>
    %88 = vector.extract_strided_slice %7 {offsets = [0, 2], sizes = [4, 256], strides = [1, 1]} : vector<4x324xf32> to vector<4x256xf32>
    %c27 = arith.constant 27 : index
    %c0_57 = arith.constant 0 : index
    %c0_58 = arith.constant 0 : index
    %89 = vector.load %arg3[%c27, %c0_57, %c0_58] : memref<125x8x4xf32, #tpu.memory_space<vmem>>, vector<1x8x4xf32>
    %90 = vector.shape_cast %89 : vector<1x8x4xf32> to vector<8x4xf32>
    %cst_59 = arith.constant dense<0.000000e+00> : vector<8x256xf32>
    %91 = tpu.matmul %90, %88, %cst_59 {dimension_numbers = #tpu.dot_dimension_numbers<[1], [0], [0], [1], [0, 0, 1, 1], [], []>} : vector<8x4xf32>, vector<4x256xf32>, vector<8x256xf32> -> vector<8x256xf32>
    %92 = arith.addf %87, %91 : vector<8x256xf32>
    %93 = vector.extract_strided_slice %11 {offsets = [0, 2], sizes = [4, 256], strides = [1, 1]} : vector<4x324xf32> to vector<4x256xf32>
    %c52 = arith.constant 52 : index
    %c0_60 = arith.constant 0 : index
    %c0_61 = arith.constant 0 : index
    %94 = vector.load %arg3[%c52, %c0_60, %c0_61] : memref<125x8x4xf32, #tpu.memory_space<vmem>>, vector<1x8x4xf32>
    %95 = vector.shape_cast %94 : vector<1x8x4xf32> to vector<8x4xf32>
    %cst_62 = arith.constant dense<0.000000e+00> : vector<8x256xf32>
    %96 = tpu.matmul %95, %93, %cst_62 {dimension_numbers = #tpu.dot_dimension_numbers<[1], [0], [0], [1], [0, 0, 1, 1], [], []>} : vector<8x4xf32>, vector<4x256xf32>, vector<8x256xf32> -> vector<8x256xf32>
    %97 = arith.addf %92, %96 : vector<8x256xf32>
    %98 = vector.extract_strided_slice %15 {offsets = [0, 2], sizes = [4, 256], strides = [1, 1]} : vector<4x324xf32> to vector<4x256xf32>
    %c77 = arith.constant 77 : index
    %c0_63 = arith.constant 0 : index
    %c0_64 = arith.constant 0 : index
    %99 = vector.load %arg3[%c77, %c0_63, %c0_64] : memref<125x8x4xf32, #tpu.memory_space<vmem>>, vector<1x8x4xf32>
    %100 = vector.shape_cast %99 : vector<1x8x4xf32> to vector<8x4xf32>
    %cst_65 = arith.constant dense<0.000000e+00> : vector<8x256xf32>
    %101 = tpu.matmul %100, %98, %cst_65 {dimension_numbers = #tpu.dot_dimension_numbers<[1], [0], [0], [1], [0, 0, 1, 1], [], []>} : vector<8x4xf32>, vector<4x256xf32>, vector<8x256xf32> -> vector<8x256xf32>
    %102 = arith.addf %97, %101 : vector<8x256xf32>
    %103 = vector.extract_strided_slice %19 {offsets = [0, 2], sizes = [4, 256], strides = [1, 1]} : vector<4x324xf32> to vector<4x256xf32>
    %c102 = arith.constant 102 : index
    %c0_66 = arith.constant 0 : index
    %c0_67 = arith.constant 0 : index
    %104 = vector.load %arg3[%c102, %c0_66, %c0_67] : memref<125x8x4xf32, #tpu.memory_space<vmem>>, vector<1x8x4xf32>
    %105 = vector.shape_cast %104 : vector<1x8x4xf32> to vector<8x4xf32>
    %cst_68 = arith.constant dense<0.000000e+00> : vector<8x256xf32>
    %106 = tpu.matmul %105, %103, %cst_68 {dimension_numbers = #tpu.dot_dimension_numbers<[1], [0], [0], [1], [0, 0, 1, 1], [], []>} : vector<8x4xf32>, vector<4x256xf32>, vector<8x256xf32> -> vector<8x256xf32>
    %107 = arith.addf %102, %106 : vector<8x256xf32>
    %108 = vector.broadcast %81 : vector<1x256xf32> to vector<8x256xf32>
    %109 = arith.mulf %108, %107 : vector<8x256xf32>
    %110 = arith.addf %80, %109 : vector<8x256xf32>
    %c3 = arith.constant 3 : index
    %c0_69 = arith.constant 0 : index
    %111 = vector.load %arg4[%c3, %c0_69] : memref<25x256xf32, #tpu.memory_space<vmem>>, vector<1x256xf32>
    %cst_70 = arith.constant 0.000000e+00 : f32
    %112 = vector.broadcast %cst_70 : f32 to vector<8x256xf32>
    %113 = vector.extract_strided_slice %3 {offsets = [0, 3], sizes = [4, 256], strides = [1, 1]} : vector<4x324xf32> to vector<4x256xf32>
    %c3_71 = arith.constant 3 : index
    %c0_72 = arith.constant 0 : index
    %c0_73 = arith.constant 0 : index
    %114 = vector.load %arg3[%c3_71, %c0_72, %c0_73] : memref<125x8x4xf32, #tpu.memory_space<vmem>>, vector<1x8x4xf32>
    %115 = vector.shape_cast %114 : vector<1x8x4xf32> to vector<8x4xf32>
    %cst_74 = arith.constant dense<0.000000e+00> : vector<8x256xf32>
    %116 = tpu.matmul %115, %113, %cst_74 {dimension_numbers = #tpu.dot_dimension_numbers<[1], [0], [0], [1], [0, 0, 1, 1], [], []>} : vector<8x4xf32>, vector<4x256xf32>, vector<8x256xf32> -> vector<8x256xf32>
    %117 = arith.addf %112, %116 : vector<8x256xf32>
    %118 = vector.extract_strided_slice %7 {offsets = [0, 3], sizes = [4, 256], strides = [1, 1]} : vector<4x324xf32> to vector<4x256xf32>
    %c28 = arith.constant 28 : index
    %c0_75 = arith.constant 0 : index
    %c0_76 = arith.constant 0 : index
    %119 = vector.load %arg3[%c28, %c0_75, %c0_76] : memref<125x8x4xf32, #tpu.memory_space<vmem>>, vector<1x8x4xf32>
    %120 = vector.shape_cast %119 : vector<1x8x4xf32> to vector<8x4xf32>
    %cst_77 = arith.constant dense<0.000000e+00> : vector<8x256xf32>
    %121 = tpu.matmul %120, %118, %cst_77 {dimension_numbers = #tpu.dot_dimension_numbers<[1], [0], [0], [1], [0, 0, 1, 1], [], []>} : vector<8x4xf32>, vector<4x256xf32>, vector<8x256xf32> -> vector<8x256xf32>
    %122 = arith.addf %117, %121 : vector<8x256xf32>
    %123 = vector.extract_strided_slice %11 {offsets = [0, 3], sizes = [4, 256], strides = [1, 1]} : vector<4x324xf32> to vector<4x256xf32>
    %c53 = arith.constant 53 : index
    %c0_78 = arith.constant 0 : index
    %c0_79 = arith.constant 0 : index
    %124 = vector.load %arg3[%c53, %c0_78, %c0_79] : memref<125x8x4xf32, #tpu.memory_space<vmem>>, vector<1x8x4xf32>
    %125 = vector.shape_cast %124 : vector<1x8x4xf32> to vector<8x4xf32>
    %cst_80 = arith.constant dense<0.000000e+00> : vector<8x256xf32>
    %126 = tpu.matmul %125, %123, %cst_80 {dimension_numbers = #tpu.dot_dimension_numbers<[1], [0], [0], [1], [0, 0, 1, 1], [], []>} : vector<8x4xf32>, vector<4x256xf32>, vector<8x256xf32> -> vector<8x256xf32>
    %127 = arith.addf %122, %126 : vector<8x256xf32>
    %128 = vector.extract_strided_slice %15 {offsets = [0, 3], sizes = [4, 256], strides = [1, 1]} : vector<4x324xf32> to vector<4x256xf32>
    %c78 = arith.constant 78 : index
    %c0_81 = arith.constant 0 : index
    %c0_82 = arith.constant 0 : index
    %129 = vector.load %arg3[%c78, %c0_81, %c0_82] : memref<125x8x4xf32, #tpu.memory_space<vmem>>, vector<1x8x4xf32>
    %130 = vector.shape_cast %129 : vector<1x8x4xf32> to vector<8x4xf32>
    %cst_83 = arith.constant dense<0.000000e+00> : vector<8x256xf32>
    %131 = tpu.matmul %130, %128, %cst_83 {dimension_numbers = #tpu.dot_dimension_numbers<[1], [0], [0], [1], [0, 0, 1, 1], [], []>} : vector<8x4xf32>, vector<4x256xf32>, vector<8x256xf32> -> vector<8x256xf32>
    %132 = arith.addf %127, %131 : vector<8x256xf32>
    %133 = vector.extract_strided_slice %19 {offsets = [0, 3], sizes = [4, 256], strides = [1, 1]} : vector<4x324xf32> to vector<4x256xf32>
    %c103 = arith.constant 103 : index
    %c0_84 = arith.constant 0 : index
    %c0_85 = arith.constant 0 : index
    %134 = vector.load %arg3[%c103, %c0_84, %c0_85] : memref<125x8x4xf32, #tpu.memory_space<vmem>>, vector<1x8x4xf32>
    %135 = vector.shape_cast %134 : vector<1x8x4xf32> to vector<8x4xf32>
    %cst_86 = arith.constant dense<0.000000e+00> : vector<8x256xf32>
    %136 = tpu.matmul %135, %133, %cst_86 {dimension_numbers = #tpu.dot_dimension_numbers<[1], [0], [0], [1], [0, 0, 1, 1], [], []>} : vector<8x4xf32>, vector<4x256xf32>, vector<8x256xf32> -> vector<8x256xf32>
    %137 = arith.addf %132, %136 : vector<8x256xf32>
    %138 = vector.broadcast %111 : vector<1x256xf32> to vector<8x256xf32>
    %139 = arith.mulf %138, %137 : vector<8x256xf32>
    %140 = arith.addf %110, %139 : vector<8x256xf32>
    %c4 = arith.constant 4 : index
    %c0_87 = arith.constant 0 : index
    %141 = vector.load %arg4[%c4, %c0_87] : memref<25x256xf32, #tpu.memory_space<vmem>>, vector<1x256xf32>
    %cst_88 = arith.constant 0.000000e+00 : f32
    %142 = vector.broadcast %cst_88 : f32 to vector<8x256xf32>
    %143 = vector.extract_strided_slice %3 {offsets = [0, 4], sizes = [4, 256], strides = [1, 1]} : vector<4x324xf32> to vector<4x256xf32>
    %c4_89 = arith.constant 4 : index
    %c0_90 = arith.constant 0 : index
    %c0_91 = arith.constant 0 : index
    %144 = vector.load %arg3[%c4_89, %c0_90, %c0_91] : memref<125x8x4xf32, #tpu.memory_space<vmem>>, vector<1x8x4xf32>
    %145 = vector.shape_cast %144 : vector<1x8x4xf32> to vector<8x4xf32>
    %cst_92 = arith.constant dense<0.000000e+00> : vector<8x256xf32>
    %146 = tpu.matmul %145, %143, %cst_92 {dimension_numbers = #tpu.dot_dimension_numbers<[1], [0], [0], [1], [0, 0, 1, 1], [], []>} : vector<8x4xf32>, vector<4x256xf32>, vector<8x256xf32> -> vector<8x256xf32>
    %147 = arith.addf %142, %146 : vector<8x256xf32>
    %148 = vector.extract_strided_slice %7 {offsets = [0, 4], sizes = [4, 256], strides = [1, 1]} : vector<4x324xf32> to vector<4x256xf32>
    %c29 = arith.constant 29 : index
    %c0_93 = arith.constant 0 : index
    %c0_94 = arith.constant 0 : index
    %149 = vector.load %arg3[%c29, %c0_93, %c0_94] : memref<125x8x4xf32, #tpu.memory_space<vmem>>, vector<1x8x4xf32>
    %150 = vector.shape_cast %149 : vector<1x8x4xf32> to vector<8x4xf32>
    %cst_95 = arith.constant dense<0.000000e+00> : vector<8x256xf32>
    %151 = tpu.matmul %150, %148, %cst_95 {dimension_numbers = #tpu.dot_dimension_numbers<[1], [0], [0], [1], [0, 0, 1, 1], [], []>} : vector<8x4xf32>, vector<4x256xf32>, vector<8x256xf32> -> vector<8x256xf32>
    %152 = arith.addf %147, %151 : vector<8x256xf32>
    %153 = vector.extract_strided_slice %11 {offsets = [0, 4], sizes = [4, 256], strides = [1, 1]} : vector<4x324xf32> to vector<4x256xf32>
    %c54 = arith.constant 54 : index
    %c0_96 = arith.constant 0 : index
    %c0_97 = arith.constant 0 : index
    %154 = vector.load %arg3[%c54, %c0_96, %c0_97] : memref<125x8x4xf32, #tpu.memory_space<vmem>>, vector<1x8x4xf32>
    %155 = vector.shape_cast %154 : vector<1x8x4xf32> to vector<8x4xf32>
    %cst_98 = arith.constant dense<0.000000e+00> : vector<8x256xf32>
    %156 = tpu.matmul %155, %153, %cst_98 {dimension_numbers = #tpu.dot_dimension_numbers<[1], [0], [0], [1], [0, 0, 1, 1], [], []>} : vector<8x4xf32>, vector<4x256xf32>, vector<8x256xf32> -> vector<8x256xf32>
    %157 = arith.addf %152, %156 : vector<8x256xf32>
    %158 = vector.extract_strided_slice %15 {offsets = [0, 4], sizes = [4, 256], strides = [1, 1]} : vector<4x324xf32> to vector<4x256xf32>
    %c79 = arith.constant 79 : index
    %c0_99 = arith.constant 0 : index
    %c0_100 = arith.constant 0 : index
    %159 = vector.load %arg3[%c79, %c0_99, %c0_100] : memref<125x8x4xf32, #tpu.memory_space<vmem>>, vector<1x8x4xf32>
    %160 = vector.shape_cast %159 : vector<1x8x4xf32> to vector<8x4xf32>
    %cst_101 = arith.constant dense<0.000000e+00> : vector<8x256xf32>
    %161 = tpu.matmul %160, %158, %cst_101 {dimension_numbers = #tpu.dot_dimension_numbers<[1], [0], [0], [1], [0, 0, 1, 1], [], []>} : vector<8x4xf32>, vector<4x256xf32>, vector<8x256xf32> -> vector<8x256xf32>
    %162 = arith.addf %157, %161 : vector<8x256xf32>
    %163 = vector.extract_strided_slice %19 {offsets = [0, 4], sizes = [4, 256], strides = [1, 1]} : vector<4x324xf32> to vector<4x256xf32>
    %c104 = arith.constant 104 : index
    %c0_102 = arith.constant 0 : index
    %c0_103 = arith.constant 0 : index
    %164 = vector.load %arg3[%c104, %c0_102, %c0_103] : memref<125x8x4xf32, #tpu.memory_space<vmem>>, vector<1x8x4xf32>
    %165 = vector.shape_cast %164 : vector<1x8x4xf32> to vector<8x4xf32>
    %cst_104 = arith.constant dense<0.000000e+00> : vector<8x256xf32>
    %166 = tpu.matmul %165, %163, %cst_104 {dimension_numbers = #tpu.dot_dimension_numbers<[1], [0], [0], [1], [0, 0, 1, 1], [], []>} : vector<8x4xf32>, vector<4x256xf32>, vector<8x256xf32> -> vector<8x256xf32>
    %167 = arith.addf %162, %166 : vector<8x256xf32>
    %168 = vector.broadcast %141 : vector<1x256xf32> to vector<8x256xf32>
    %169 = arith.mulf %168, %167 : vector<8x256xf32>
    %170 = arith.addf %140, %169 : vector<8x256xf32>
    %c5 = arith.constant 5 : index
    %c0_105 = arith.constant 0 : index
    %171 = vector.load %arg4[%c5, %c0_105] : memref<25x256xf32, #tpu.memory_space<vmem>>, vector<1x256xf32>
    %cst_106 = arith.constant 0.000000e+00 : f32
    %172 = vector.broadcast %cst_106 : f32 to vector<8x256xf32>
    %173 = vector.extract_strided_slice %3 {offsets = [0, 16], sizes = [4, 256], strides = [1, 1]} : vector<4x324xf32> to vector<4x256xf32>
    %c5_107 = arith.constant 5 : index
    %c0_108 = arith.constant 0 : index
    %c0_109 = arith.constant 0 : index
    %174 = vector.load %arg3[%c5_107, %c0_108, %c0_109] : memref<125x8x4xf32, #tpu.memory_space<vmem>>, vector<1x8x4xf32>
    %175 = vector.shape_cast %174 : vector<1x8x4xf32> to vector<8x4xf32>
    %cst_110 = arith.constant dense<0.000000e+00> : vector<8x256xf32>
    %176 = tpu.matmul %175, %173, %cst_110 {dimension_numbers = #tpu.dot_dimension_numbers<[1], [0], [0], [1], [0, 0, 1, 1], [], []>} : vector<8x4xf32>, vector<4x256xf32>, vector<8x256xf32> -> vector<8x256xf32>
    %177 = arith.addf %172, %176 : vector<8x256xf32>
    %178 = vector.extract_strided_slice %7 {offsets = [0, 16], sizes = [4, 256], strides = [1, 1]} : vector<4x324xf32> to vector<4x256xf32>
    %c30 = arith.constant 30 : index
    %c0_111 = arith.constant 0 : index
    %c0_112 = arith.constant 0 : index
    %179 = vector.load %arg3[%c30, %c0_111, %c0_112] : memref<125x8x4xf32, #tpu.memory_space<vmem>>, vector<1x8x4xf32>
    %180 = vector.shape_cast %179 : vector<1x8x4xf32> to vector<8x4xf32>
    %cst_113 = arith.constant dense<0.000000e+00> : vector<8x256xf32>
    %181 = tpu.matmul %180, %178, %cst_113 {dimension_numbers = #tpu.dot_dimension_numbers<[1], [0], [0], [1], [0, 0, 1, 1], [], []>} : vector<8x4xf32>, vector<4x256xf32>, vector<8x256xf32> -> vector<8x256xf32>
    %182 = arith.addf %177, %181 : vector<8x256xf32>
    %183 = vector.extract_strided_slice %11 {offsets = [0, 16], sizes = [4, 256], strides = [1, 1]} : vector<4x324xf32> to vector<4x256xf32>
    %c55 = arith.constant 55 : index
    %c0_114 = arith.constant 0 : index
    %c0_115 = arith.constant 0 : index
    %184 = vector.load %arg3[%c55, %c0_114, %c0_115] : memref<125x8x4xf32, #tpu.memory_space<vmem>>, vector<1x8x4xf32>
    %185 = vector.shape_cast %184 : vector<1x8x4xf32> to vector<8x4xf32>
    %cst_116 = arith.constant dense<0.000000e+00> : vector<8x256xf32>
    %186 = tpu.matmul %185, %183, %cst_116 {dimension_numbers = #tpu.dot_dimension_numbers<[1], [0], [0], [1], [0, 0, 1, 1], [], []>} : vector<8x4xf32>, vector<4x256xf32>, vector<8x256xf32> -> vector<8x256xf32>
    %187 = arith.addf %182, %186 : vector<8x256xf32>
    %188 = vector.extract_strided_slice %15 {offsets = [0, 16], sizes = [4, 256], strides = [1, 1]} : vector<4x324xf32> to vector<4x256xf32>
    %c80 = arith.constant 80 : index
    %c0_117 = arith.constant 0 : index
    %c0_118 = arith.constant 0 : index
    %189 = vector.load %arg3[%c80, %c0_117, %c0_118] : memref<125x8x4xf32, #tpu.memory_space<vmem>>, vector<1x8x4xf32>
    %190 = vector.shape_cast %189 : vector<1x8x4xf32> to vector<8x4xf32>
    %cst_119 = arith.constant dense<0.000000e+00> : vector<8x256xf32>
    %191 = tpu.matmul %190, %188, %cst_119 {dimension_numbers = #tpu.dot_dimension_numbers<[1], [0], [0], [1], [0, 0, 1, 1], [], []>} : vector<8x4xf32>, vector<4x256xf32>, vector<8x256xf32> -> vector<8x256xf32>
    %192 = arith.addf %187, %191 : vector<8x256xf32>
    %193 = vector.extract_strided_slice %19 {offsets = [0, 16], sizes = [4, 256], strides = [1, 1]} : vector<4x324xf32> to vector<4x256xf32>
    %c105 = arith.constant 105 : index
    %c0_120 = arith.constant 0 : index
    %c0_121 = arith.constant 0 : index
    %194 = vector.load %arg3[%c105, %c0_120, %c0_121] : memref<125x8x4xf32, #tpu.memory_space<vmem>>, vector<1x8x4xf32>
    %195 = vector.shape_cast %194 : vector<1x8x4xf32> to vector<8x4xf32>
    %cst_122 = arith.constant dense<0.000000e+00> : vector<8x256xf32>
    %196 = tpu.matmul %195, %193, %cst_122 {dimension_numbers = #tpu.dot_dimension_numbers<[1], [0], [0], [1], [0, 0, 1, 1], [], []>} : vector<8x4xf32>, vector<4x256xf32>, vector<8x256xf32> -> vector<8x256xf32>
    %197 = arith.addf %192, %196 : vector<8x256xf32>
    %198 = vector.broadcast %171 : vector<1x256xf32> to vector<8x256xf32>
    %199 = arith.mulf %198, %197 : vector<8x256xf32>
    %200 = arith.addf %170, %199 : vector<8x256xf32>
    %c6 = arith.constant 6 : index
    %c0_123 = arith.constant 0 : index
    %201 = vector.load %arg4[%c6, %c0_123] : memref<25x256xf32, #tpu.memory_space<vmem>>, vector<1x256xf32>
    %cst_124 = arith.constant 0.000000e+00 : f32
    %202 = vector.broadcast %cst_124 : f32 to vector<8x256xf32>
    %203 = vector.extract_strided_slice %3 {offsets = [0, 17], sizes = [4, 256], strides = [1, 1]} : vector<4x324xf32> to vector<4x256xf32>
    %c6_125 = arith.constant 6 : index
    %c0_126 = arith.constant 0 : index
    %c0_127 = arith.constant 0 : index
    %204 = vector.load %arg3[%c6_125, %c0_126, %c0_127] : memref<125x8x4xf32, #tpu.memory_space<vmem>>, vector<1x8x4xf32>
    %205 = vector.shape_cast %204 : vector<1x8x4xf32> to vector<8x4xf32>
    %cst_128 = arith.constant dense<0.000000e+00> : vector<8x256xf32>
    %206 = tpu.matmul %205, %203, %cst_128 {dimension_numbers = #tpu.dot_dimension_numbers<[1], [0], [0], [1], [0, 0, 1, 1], [], []>} : vector<8x4xf32>, vector<4x256xf32>, vector<8x256xf32> -> vector<8x256xf32>
    %207 = arith.addf %202, %206 : vector<8x256xf32>
    %208 = vector.extract_strided_slice %7 {offsets = [0, 17], sizes = [4, 256], strides = [1, 1]} : vector<4x324xf32> to vector<4x256xf32>
    %c31 = arith.constant 31 : index
    %c0_129 = arith.constant 0 : index
    %c0_130 = arith.constant 0 : index
    %209 = vector.load %arg3[%c31, %c0_129, %c0_130] : memref<125x8x4xf32, #tpu.memory_space<vmem>>, vector<1x8x4xf32>
    %210 = vector.shape_cast %209 : vector<1x8x4xf32> to vector<8x4xf32>
    %cst_131 = arith.constant dense<0.000000e+00> : vector<8x256xf32>
    %211 = tpu.matmul %210, %208, %cst_131 {dimension_numbers = #tpu.dot_dimension_numbers<[1], [0], [0], [1], [0, 0, 1, 1], [], []>} : vector<8x4xf32>, vector<4x256xf32>, vector<8x256xf32> -> vector<8x256xf32>
    %212 = arith.addf %207, %211 : vector<8x256xf32>
    %213 = vector.extract_strided_slice %11 {offsets = [0, 17], sizes = [4, 256], strides = [1, 1]} : vector<4x324xf32> to vector<4x256xf32>
    %c56 = arith.constant 56 : index
    %c0_132 = arith.constant 0 : index
    %c0_133 = arith.constant 0 : index
    %214 = vector.load %arg3[%c56, %c0_132, %c0_133] : memref<125x8x4xf32, #tpu.memory_space<vmem>>, vector<1x8x4xf32>
    %215 = vector.shape_cast %214 : vector<1x8x4xf32> to vector<8x4xf32>
    %cst_134 = arith.constant dense<0.000000e+00> : vector<8x256xf32>
    %216 = tpu.matmul %215, %213, %cst_134 {dimension_numbers = #tpu.dot_dimension_numbers<[1], [0], [0], [1], [0, 0, 1, 1], [], []>} : vector<8x4xf32>, vector<4x256xf32>, vector<8x256xf32> -> vector<8x256xf32>
    %217 = arith.addf %212, %216 : vector<8x256xf32>
    %218 = vector.extract_strided_slice %15 {offsets = [0, 17], sizes = [4, 256], strides = [1, 1]} : vector<4x324xf32> to vector<4x256xf32>
    %c81 = arith.constant 81 : index
    %c0_135 = arith.constant 0 : index
    %c0_136 = arith.constant 0 : index
    %219 = vector.load %arg3[%c81, %c0_135, %c0_136] : memref<125x8x4xf32, #tpu.memory_space<vmem>>, vector<1x8x4xf32>
    %220 = vector.shape_cast %219 : vector<1x8x4xf32> to vector<8x4xf32>
    %cst_137 = arith.constant dense<0.000000e+00> : vector<8x256xf32>
    %221 = tpu.matmul %220, %218, %cst_137 {dimension_numbers = #tpu.dot_dimension_numbers<[1], [0], [0], [1], [0, 0, 1, 1], [], []>} : vector<8x4xf32>, vector<4x256xf32>, vector<8x256xf32> -> vector<8x256xf32>
    %222 = arith.addf %217, %221 : vector<8x256xf32>
    %223 = vector.extract_strided_slice %19 {offsets = [0, 17], sizes = [4, 256], strides = [1, 1]} : vector<4x324xf32> to vector<4x256xf32>
    %c106 = arith.constant 106 : index
    %c0_138 = arith.constant 0 : index
    %c0_139 = arith.constant 0 : index
    %224 = vector.load %arg3[%c106, %c0_138, %c0_139] : memref<125x8x4xf32, #tpu.memory_space<vmem>>, vector<1x8x4xf32>
    %225 = vector.shape_cast %224 : vector<1x8x4xf32> to vector<8x4xf32>
    %cst_140 = arith.constant dense<0.000000e+00> : vector<8x256xf32>
    %226 = tpu.matmul %225, %223, %cst_140 {dimension_numbers = #tpu.dot_dimension_numbers<[1], [0], [0], [1], [0, 0, 1, 1], [], []>} : vector<8x4xf32>, vector<4x256xf32>, vector<8x256xf32> -> vector<8x256xf32>
    %227 = arith.addf %222, %226 : vector<8x256xf32>
    %228 = vector.broadcast %201 : vector<1x256xf32> to vector<8x256xf32>
    %229 = arith.mulf %228, %227 : vector<8x256xf32>
    %230 = arith.addf %200, %229 : vector<8x256xf32>
    %c7 = arith.constant 7 : index
    %c0_141 = arith.constant 0 : index
    %231 = vector.load %arg4[%c7, %c0_141] : memref<25x256xf32, #tpu.memory_space<vmem>>, vector<1x256xf32>
    %cst_142 = arith.constant 0.000000e+00 : f32
    %232 = vector.broadcast %cst_142 : f32 to vector<8x256xf32>
    %233 = vector.extract_strided_slice %3 {offsets = [0, 18], sizes = [4, 256], strides = [1, 1]} : vector<4x324xf32> to vector<4x256xf32>
    %c7_143 = arith.constant 7 : index
    %c0_144 = arith.constant 0 : index
    %c0_145 = arith.constant 0 : index
    %234 = vector.load %arg3[%c7_143, %c0_144, %c0_145] : memref<125x8x4xf32, #tpu.memory_space<vmem>>, vector<1x8x4xf32>
    %235 = vector.shape_cast %234 : vector<1x8x4xf32> to vector<8x4xf32>
    %cst_146 = arith.constant dense<0.000000e+00> : vector<8x256xf32>
    %236 = tpu.matmul %235, %233, %cst_146 {dimension_numbers = #tpu.dot_dimension_numbers<[1], [0], [0], [1], [0, 0, 1, 1], [], []>} : vector<8x4xf32>, vector<4x256xf32>, vector<8x256xf32> -> vector<8x256xf32>
    %237 = arith.addf %232, %236 : vector<8x256xf32>
    %238 = vector.extract_strided_slice %7 {offsets = [0, 18], sizes = [4, 256], strides = [1, 1]} : vector<4x324xf32> to vector<4x256xf32>
    %c32 = arith.constant 32 : index
    %c0_147 = arith.constant 0 : index
    %c0_148 = arith.constant 0 : index
    %239 = vector.load %arg3[%c32, %c0_147, %c0_148] : memref<125x8x4xf32, #tpu.memory_space<vmem>>, vector<1x8x4xf32>
    %240 = vector.shape_cast %239 : vector<1x8x4xf32> to vector<8x4xf32>
    %cst_149 = arith.constant dense<0.000000e+00> : vector<8x256xf32>
    %241 = tpu.matmul %240, %238, %cst_149 {dimension_numbers = #tpu.dot_dimension_numbers<[1], [0], [0], [1], [0, 0, 1, 1], [], []>} : vector<8x4xf32>, vector<4x256xf32>, vector<8x256xf32> -> vector<8x256xf32>
    %242 = arith.addf %237, %241 : vector<8x256xf32>
    %243 = vector.extract_strided_slice %11 {offsets = [0, 18], sizes = [4, 256], strides = [1, 1]} : vector<4x324xf32> to vector<4x256xf32>
    %c57 = arith.constant 57 : index
    %c0_150 = arith.constant 0 : index
    %c0_151 = arith.constant 0 : index
    %244 = vector.load %arg3[%c57, %c0_150, %c0_151] : memref<125x8x4xf32, #tpu.memory_space<vmem>>, vector<1x8x4xf32>
    %245 = vector.shape_cast %244 : vector<1x8x4xf32> to vector<8x4xf32>
    %cst_152 = arith.constant dense<0.000000e+00> : vector<8x256xf32>
    %246 = tpu.matmul %245, %243, %cst_152 {dimension_numbers = #tpu.dot_dimension_numbers<[1], [0], [0], [1], [0, 0, 1, 1], [], []>} : vector<8x4xf32>, vector<4x256xf32>, vector<8x256xf32> -> vector<8x256xf32>
    %247 = arith.addf %242, %246 : vector<8x256xf32>
    %248 = vector.extract_strided_slice %15 {offsets = [0, 18], sizes = [4, 256], strides = [1, 1]} : vector<4x324xf32> to vector<4x256xf32>
    %c82 = arith.constant 82 : index
    %c0_153 = arith.constant 0 : index
    %c0_154 = arith.constant 0 : index
    %249 = vector.load %arg3[%c82, %c0_153, %c0_154] : memref<125x8x4xf32, #tpu.memory_space<vmem>>, vector<1x8x4xf32>
    %250 = vector.shape_cast %249 : vector<1x8x4xf32> to vector<8x4xf32>
    %cst_155 = arith.constant dense<0.000000e+00> : vector<8x256xf32>
    %251 = tpu.matmul %250, %248, %cst_155 {dimension_numbers = #tpu.dot_dimension_numbers<[1], [0], [0], [1], [0, 0, 1, 1], [], []>} : vector<8x4xf32>, vector<4x256xf32>, vector<8x256xf32> -> vector<8x256xf32>
    %252 = arith.addf %247, %251 : vector<8x256xf32>
    %253 = vector.extract_strided_slice %19 {offsets = [0, 18], sizes = [4, 256], strides = [1, 1]} : vector<4x324xf32> to vector<4x256xf32>
    %c107 = arith.constant 107 : index
    %c0_156 = arith.constant 0 : index
    %c0_157 = arith.constant 0 : index
    %254 = vector.load %arg3[%c107, %c0_156, %c0_157] : memref<125x8x4xf32, #tpu.memory_space<vmem>>, vector<1x8x4xf32>
    %255 = vector.shape_cast %254 : vector<1x8x4xf32> to vector<8x4xf32>
    %cst_158 = arith.constant dense<0.000000e+00> : vector<8x256xf32>
    %256 = tpu.matmul %255, %253, %cst_158 {dimension_numbers = #tpu.dot_dimension_numbers<[1], [0], [0], [1], [0, 0, 1, 1], [], []>} : vector<8x4xf32>, vector<4x256xf32>, vector<8x256xf32> -> vector<8x256xf32>
    %257 = arith.addf %252, %256 : vector<8x256xf32>
    %258 = vector.broadcast %231 : vector<1x256xf32> to vector<8x256xf32>
    %259 = arith.mulf %258, %257 : vector<8x256xf32>
    %260 = arith.addf %230, %259 : vector<8x256xf32>
    %c8 = arith.constant 8 : index
    %c0_159 = arith.constant 0 : index
    %261 = vector.load %arg4[%c8, %c0_159] : memref<25x256xf32, #tpu.memory_space<vmem>>, vector<1x256xf32>
    %cst_160 = arith.constant 0.000000e+00 : f32
    %262 = vector.broadcast %cst_160 : f32 to vector<8x256xf32>
    %263 = vector.extract_strided_slice %3 {offsets = [0, 19], sizes = [4, 256], strides = [1, 1]} : vector<4x324xf32> to vector<4x256xf32>
    %c8_161 = arith.constant 8 : index
    %c0_162 = arith.constant 0 : index
    %c0_163 = arith.constant 0 : index
    %264 = vector.load %arg3[%c8_161, %c0_162, %c0_163] : memref<125x8x4xf32, #tpu.memory_space<vmem>>, vector<1x8x4xf32>
    %265 = vector.shape_cast %264 : vector<1x8x4xf32> to vector<8x4xf32>
    %cst_164 = arith.constant dense<0.000000e+00> : vector<8x256xf32>
    %266 = tpu.matmul %265, %263, %cst_164 {dimension_numbers = #tpu.dot_dimension_numbers<[1], [0], [0], [1], [0, 0, 1, 1], [], []>} : vector<8x4xf32>, vector<4x256xf32>, vector<8x256xf32> -> vector<8x256xf32>
    %267 = arith.addf %262, %266 : vector<8x256xf32>
    %268 = vector.extract_strided_slice %7 {offsets = [0, 19], sizes = [4, 256], strides = [1, 1]} : vector<4x324xf32> to vector<4x256xf32>
    %c33 = arith.constant 33 : index
    %c0_165 = arith.constant 0 : index
    %c0_166 = arith.constant 0 : index
    %269 = vector.load %arg3[%c33, %c0_165, %c0_166] : memref<125x8x4xf32, #tpu.memory_space<vmem>>, vector<1x8x4xf32>
    %270 = vector.shape_cast %269 : vector<1x8x4xf32> to vector<8x4xf32>
    %cst_167 = arith.constant dense<0.000000e+00> : vector<8x256xf32>
    %271 = tpu.matmul %270, %268, %cst_167 {dimension_numbers = #tpu.dot_dimension_numbers<[1], [0], [0], [1], [0, 0, 1, 1], [], []>} : vector<8x4xf32>, vector<4x256xf32>, vector<8x256xf32> -> vector<8x256xf32>
    %272 = arith.addf %267, %271 : vector<8x256xf32>
    %273 = vector.extract_strided_slice %11 {offsets = [0, 19], sizes = [4, 256], strides = [1, 1]} : vector<4x324xf32> to vector<4x256xf32>
    %c58 = arith.constant 58 : index
    %c0_168 = arith.constant 0 : index
    %c0_169 = arith.constant 0 : index
    %274 = vector.load %arg3[%c58, %c0_168, %c0_169] : memref<125x8x4xf32, #tpu.memory_space<vmem>>, vector<1x8x4xf32>
    %275 = vector.shape_cast %274 : vector<1x8x4xf32> to vector<8x4xf32>
    %cst_170 = arith.constant dense<0.000000e+00> : vector<8x256xf32>
    %276 = tpu.matmul %275, %273, %cst_170 {dimension_numbers = #tpu.dot_dimension_numbers<[1], [0], [0], [1], [0, 0, 1, 1], [], []>} : vector<8x4xf32>, vector<4x256xf32>, vector<8x256xf32> -> vector<8x256xf32>
    %277 = arith.addf %272, %276 : vector<8x256xf32>
    %278 = vector.extract_strided_slice %15 {offsets = [0, 19], sizes = [4, 256], strides = [1, 1]} : vector<4x324xf32> to vector<4x256xf32>
    %c83 = arith.constant 83 : index
    %c0_171 = arith.constant 0 : index
    %c0_172 = arith.constant 0 : index
    %279 = vector.load %arg3[%c83, %c0_171, %c0_172] : memref<125x8x4xf32, #tpu.memory_space<vmem>>, vector<1x8x4xf32>
    %280 = vector.shape_cast %279 : vector<1x8x4xf32> to vector<8x4xf32>
    %cst_173 = arith.constant dense<0.000000e+00> : vector<8x256xf32>
    %281 = tpu.matmul %280, %278, %cst_173 {dimension_numbers = #tpu.dot_dimension_numbers<[1], [0], [0], [1], [0, 0, 1, 1], [], []>} : vector<8x4xf32>, vector<4x256xf32>, vector<8x256xf32> -> vector<8x256xf32>
    %282 = arith.addf %277, %281 : vector<8x256xf32>
    %283 = vector.extract_strided_slice %19 {offsets = [0, 19], sizes = [4, 256], strides = [1, 1]} : vector<4x324xf32> to vector<4x256xf32>
    %c108 = arith.constant 108 : index
    %c0_174 = arith.constant 0 : index
    %c0_175 = arith.constant 0 : index
    %284 = vector.load %arg3[%c108, %c0_174, %c0_175] : memref<125x8x4xf32, #tpu.memory_space<vmem>>, vector<1x8x4xf32>
    %285 = vector.shape_cast %284 : vector<1x8x4xf32> to vector<8x4xf32>
    %cst_176 = arith.constant dense<0.000000e+00> : vector<8x256xf32>
    %286 = tpu.matmul %285, %283, %cst_176 {dimension_numbers = #tpu.dot_dimension_numbers<[1], [0], [0], [1], [0, 0, 1, 1], [], []>} : vector<8x4xf32>, vector<4x256xf32>, vector<8x256xf32> -> vector<8x256xf32>
    %287 = arith.addf %282, %286 : vector<8x256xf32>
    %288 = vector.broadcast %261 : vector<1x256xf32> to vector<8x256xf32>
    %289 = arith.mulf %288, %287 : vector<8x256xf32>
    %290 = arith.addf %260, %289 : vector<8x256xf32>
    %c9 = arith.constant 9 : index
    %c0_177 = arith.constant 0 : index
    %291 = vector.load %arg4[%c9, %c0_177] : memref<25x256xf32, #tpu.memory_space<vmem>>, vector<1x256xf32>
    %cst_178 = arith.constant 0.000000e+00 : f32
    %292 = vector.broadcast %cst_178 : f32 to vector<8x256xf32>
    %293 = vector.extract_strided_slice %3 {offsets = [0, 20], sizes = [4, 256], strides = [1, 1]} : vector<4x324xf32> to vector<4x256xf32>
    %c9_179 = arith.constant 9 : index
    %c0_180 = arith.constant 0 : index
    %c0_181 = arith.constant 0 : index
    %294 = vector.load %arg3[%c9_179, %c0_180, %c0_181] : memref<125x8x4xf32, #tpu.memory_space<vmem>>, vector<1x8x4xf32>
    %295 = vector.shape_cast %294 : vector<1x8x4xf32> to vector<8x4xf32>
    %cst_182 = arith.constant dense<0.000000e+00> : vector<8x256xf32>
    %296 = tpu.matmul %295, %293, %cst_182 {dimension_numbers = #tpu.dot_dimension_numbers<[1], [0], [0], [1], [0, 0, 1, 1], [], []>} : vector<8x4xf32>, vector<4x256xf32>, vector<8x256xf32> -> vector<8x256xf32>
    %297 = arith.addf %292, %296 : vector<8x256xf32>
    %298 = vector.extract_strided_slice %7 {offsets = [0, 20], sizes = [4, 256], strides = [1, 1]} : vector<4x324xf32> to vector<4x256xf32>
    %c34 = arith.constant 34 : index
    %c0_183 = arith.constant 0 : index
    %c0_184 = arith.constant 0 : index
    %299 = vector.load %arg3[%c34, %c0_183, %c0_184] : memref<125x8x4xf32, #tpu.memory_space<vmem>>, vector<1x8x4xf32>
    %300 = vector.shape_cast %299 : vector<1x8x4xf32> to vector<8x4xf32>
    %cst_185 = arith.constant dense<0.000000e+00> : vector<8x256xf32>
    %301 = tpu.matmul %300, %298, %cst_185 {dimension_numbers = #tpu.dot_dimension_numbers<[1], [0], [0], [1], [0, 0, 1, 1], [], []>} : vector<8x4xf32>, vector<4x256xf32>, vector<8x256xf32> -> vector<8x256xf32>
    %302 = arith.addf %297, %301 : vector<8x256xf32>
    %303 = vector.extract_strided_slice %11 {offsets = [0, 20], sizes = [4, 256], strides = [1, 1]} : vector<4x324xf32> to vector<4x256xf32>
    %c59 = arith.constant 59 : index
    %c0_186 = arith.constant 0 : index
    %c0_187 = arith.constant 0 : index
    %304 = vector.load %arg3[%c59, %c0_186, %c0_187] : memref<125x8x4xf32, #tpu.memory_space<vmem>>, vector<1x8x4xf32>
    %305 = vector.shape_cast %304 : vector<1x8x4xf32> to vector<8x4xf32>
    %cst_188 = arith.constant dense<0.000000e+00> : vector<8x256xf32>
    %306 = tpu.matmul %305, %303, %cst_188 {dimension_numbers = #tpu.dot_dimension_numbers<[1], [0], [0], [1], [0, 0, 1, 1], [], []>} : vector<8x4xf32>, vector<4x256xf32>, vector<8x256xf32> -> vector<8x256xf32>
    %307 = arith.addf %302, %306 : vector<8x256xf32>
    %308 = vector.extract_strided_slice %15 {offsets = [0, 20], sizes = [4, 256], strides = [1, 1]} : vector<4x324xf32> to vector<4x256xf32>
    %c84 = arith.constant 84 : index
    %c0_189 = arith.constant 0 : index
    %c0_190 = arith.constant 0 : index
    %309 = vector.load %arg3[%c84, %c0_189, %c0_190] : memref<125x8x4xf32, #tpu.memory_space<vmem>>, vector<1x8x4xf32>
    %310 = vector.shape_cast %309 : vector<1x8x4xf32> to vector<8x4xf32>
    %cst_191 = arith.constant dense<0.000000e+00> : vector<8x256xf32>
    %311 = tpu.matmul %310, %308, %cst_191 {dimension_numbers = #tpu.dot_dimension_numbers<[1], [0], [0], [1], [0, 0, 1, 1], [], []>} : vector<8x4xf32>, vector<4x256xf32>, vector<8x256xf32> -> vector<8x256xf32>
    %312 = arith.addf %307, %311 : vector<8x256xf32>
    %313 = vector.extract_strided_slice %19 {offsets = [0, 20], sizes = [4, 256], strides = [1, 1]} : vector<4x324xf32> to vector<4x256xf32>
    %c109 = arith.constant 109 : index
    %c0_192 = arith.constant 0 : index
    %c0_193 = arith.constant 0 : index
    %314 = vector.load %arg3[%c109, %c0_192, %c0_193] : memref<125x8x4xf32, #tpu.memory_space<vmem>>, vector<1x8x4xf32>
    %315 = vector.shape_cast %314 : vector<1x8x4xf32> to vector<8x4xf32>
    %cst_194 = arith.constant dense<0.000000e+00> : vector<8x256xf32>
    %316 = tpu.matmul %315, %313, %cst_194 {dimension_numbers = #tpu.dot_dimension_numbers<[1], [0], [0], [1], [0, 0, 1, 1], [], []>} : vector<8x4xf32>, vector<4x256xf32>, vector<8x256xf32> -> vector<8x256xf32>
    %317 = arith.addf %312, %316 : vector<8x256xf32>
    %318 = vector.broadcast %291 : vector<1x256xf32> to vector<8x256xf32>
    %319 = arith.mulf %318, %317 : vector<8x256xf32>
    %320 = arith.addf %290, %319 : vector<8x256xf32>
    %c10 = arith.constant 10 : index
    %c0_195 = arith.constant 0 : index
    %321 = vector.load %arg4[%c10, %c0_195] : memref<25x256xf32, #tpu.memory_space<vmem>>, vector<1x256xf32>
    %cst_196 = arith.constant 0.000000e+00 : f32
    %322 = vector.broadcast %cst_196 : f32 to vector<8x256xf32>
    %323 = vector.extract_strided_slice %3 {offsets = [0, 32], sizes = [4, 256], strides = [1, 1]} : vector<4x324xf32> to vector<4x256xf32>
    %c10_197 = arith.constant 10 : index
    %c0_198 = arith.constant 0 : index
    %c0_199 = arith.constant 0 : index
    %324 = vector.load %arg3[%c10_197, %c0_198, %c0_199] : memref<125x8x4xf32, #tpu.memory_space<vmem>>, vector<1x8x4xf32>
    %325 = vector.shape_cast %324 : vector<1x8x4xf32> to vector<8x4xf32>
    %cst_200 = arith.constant dense<0.000000e+00> : vector<8x256xf32>
    %326 = tpu.matmul %325, %323, %cst_200 {dimension_numbers = #tpu.dot_dimension_numbers<[1], [0], [0], [1], [0, 0, 1, 1], [], []>} : vector<8x4xf32>, vector<4x256xf32>, vector<8x256xf32> -> vector<8x256xf32>
    %327 = arith.addf %322, %326 : vector<8x256xf32>
    %328 = vector.extract_strided_slice %7 {offsets = [0, 32], sizes = [4, 256], strides = [1, 1]} : vector<4x324xf32> to vector<4x256xf32>
    %c35 = arith.constant 35 : index
    %c0_201 = arith.constant 0 : index
    %c0_202 = arith.constant 0 : index
    %329 = vector.load %arg3[%c35, %c0_201, %c0_202] : memref<125x8x4xf32, #tpu.memory_space<vmem>>, vector<1x8x4xf32>
    %330 = vector.shape_cast %329 : vector<1x8x4xf32> to vector<8x4xf32>
    %cst_203 = arith.constant dense<0.000000e+00> : vector<8x256xf32>
    %331 = tpu.matmul %330, %328, %cst_203 {dimension_numbers = #tpu.dot_dimension_numbers<[1], [0], [0], [1], [0, 0, 1, 1], [], []>} : vector<8x4xf32>, vector<4x256xf32>, vector<8x256xf32> -> vector<8x256xf32>
    %332 = arith.addf %327, %331 : vector<8x256xf32>
    %333 = vector.extract_strided_slice %11 {offsets = [0, 32], sizes = [4, 256], strides = [1, 1]} : vector<4x324xf32> to vector<4x256xf32>
    %c60 = arith.constant 60 : index
    %c0_204 = arith.constant 0 : index
    %c0_205 = arith.constant 0 : index
    %334 = vector.load %arg3[%c60, %c0_204, %c0_205] : memref<125x8x4xf32, #tpu.memory_space<vmem>>, vector<1x8x4xf32>
    %335 = vector.shape_cast %334 : vector<1x8x4xf32> to vector<8x4xf32>
    %cst_206 = arith.constant dense<0.000000e+00> : vector<8x256xf32>
    %336 = tpu.matmul %335, %333, %cst_206 {dimension_numbers = #tpu.dot_dimension_numbers<[1], [0], [0], [1], [0, 0, 1, 1], [], []>} : vector<8x4xf32>, vector<4x256xf32>, vector<8x256xf32> -> vector<8x256xf32>
    %337 = arith.addf %332, %336 : vector<8x256xf32>
    %338 = vector.extract_strided_slice %15 {offsets = [0, 32], sizes = [4, 256], strides = [1, 1]} : vector<4x324xf32> to vector<4x256xf32>
    %c85 = arith.constant 85 : index
    %c0_207 = arith.constant 0 : index
    %c0_208 = arith.constant 0 : index
    %339 = vector.load %arg3[%c85, %c0_207, %c0_208] : memref<125x8x4xf32, #tpu.memory_space<vmem>>, vector<1x8x4xf32>
    %340 = vector.shape_cast %339 : vector<1x8x4xf32> to vector<8x4xf32>
    %cst_209 = arith.constant dense<0.000000e+00> : vector<8x256xf32>
    %341 = tpu.matmul %340, %338, %cst_209 {dimension_numbers = #tpu.dot_dimension_numbers<[1], [0], [0], [1], [0, 0, 1, 1], [], []>} : vector<8x4xf32>, vector<4x256xf32>, vector<8x256xf32> -> vector<8x256xf32>
    %342 = arith.addf %337, %341 : vector<8x256xf32>
    %343 = vector.extract_strided_slice %19 {offsets = [0, 32], sizes = [4, 256], strides = [1, 1]} : vector<4x324xf32> to vector<4x256xf32>
    %c110 = arith.constant 110 : index
    %c0_210 = arith.constant 0 : index
    %c0_211 = arith.constant 0 : index
    %344 = vector.load %arg3[%c110, %c0_210, %c0_211] : memref<125x8x4xf32, #tpu.memory_space<vmem>>, vector<1x8x4xf32>
    %345 = vector.shape_cast %344 : vector<1x8x4xf32> to vector<8x4xf32>
    %cst_212 = arith.constant dense<0.000000e+00> : vector<8x256xf32>
    %346 = tpu.matmul %345, %343, %cst_212 {dimension_numbers = #tpu.dot_dimension_numbers<[1], [0], [0], [1], [0, 0, 1, 1], [], []>} : vector<8x4xf32>, vector<4x256xf32>, vector<8x256xf32> -> vector<8x256xf32>
    %347 = arith.addf %342, %346 : vector<8x256xf32>
    %348 = vector.broadcast %321 : vector<1x256xf32> to vector<8x256xf32>
    %349 = arith.mulf %348, %347 : vector<8x256xf32>
    %350 = arith.addf %320, %349 : vector<8x256xf32>
    %c11 = arith.constant 11 : index
    %c0_213 = arith.constant 0 : index
    %351 = vector.load %arg4[%c11, %c0_213] : memref<25x256xf32, #tpu.memory_space<vmem>>, vector<1x256xf32>
    %cst_214 = arith.constant 0.000000e+00 : f32
    %352 = vector.broadcast %cst_214 : f32 to vector<8x256xf32>
    %353 = vector.extract_strided_slice %3 {offsets = [0, 33], sizes = [4, 256], strides = [1, 1]} : vector<4x324xf32> to vector<4x256xf32>
    %c11_215 = arith.constant 11 : index
    %c0_216 = arith.constant 0 : index
    %c0_217 = arith.constant 0 : index
    %354 = vector.load %arg3[%c11_215, %c0_216, %c0_217] : memref<125x8x4xf32, #tpu.memory_space<vmem>>, vector<1x8x4xf32>
    %355 = vector.shape_cast %354 : vector<1x8x4xf32> to vector<8x4xf32>
    %cst_218 = arith.constant dense<0.000000e+00> : vector<8x256xf32>
    %356 = tpu.matmul %355, %353, %cst_218 {dimension_numbers = #tpu.dot_dimension_numbers<[1], [0], [0], [1], [0, 0, 1, 1], [], []>} : vector<8x4xf32>, vector<4x256xf32>, vector<8x256xf32> -> vector<8x256xf32>
    %357 = arith.addf %352, %356 : vector<8x256xf32>
    %358 = vector.extract_strided_slice %7 {offsets = [0, 33], sizes = [4, 256], strides = [1, 1]} : vector<4x324xf32> to vector<4x256xf32>
    %c36 = arith.constant 36 : index
    %c0_219 = arith.constant 0 : index
    %c0_220 = arith.constant 0 : index
    %359 = vector.load %arg3[%c36, %c0_219, %c0_220] : memref<125x8x4xf32, #tpu.memory_space<vmem>>, vector<1x8x4xf32>
    %360 = vector.shape_cast %359 : vector<1x8x4xf32> to vector<8x4xf32>
    %cst_221 = arith.constant dense<0.000000e+00> : vector<8x256xf32>
    %361 = tpu.matmul %360, %358, %cst_221 {dimension_numbers = #tpu.dot_dimension_numbers<[1], [0], [0], [1], [0, 0, 1, 1], [], []>} : vector<8x4xf32>, vector<4x256xf32>, vector<8x256xf32> -> vector<8x256xf32>
    %362 = arith.addf %357, %361 : vector<8x256xf32>
    %363 = vector.extract_strided_slice %11 {offsets = [0, 33], sizes = [4, 256], strides = [1, 1]} : vector<4x324xf32> to vector<4x256xf32>
    %c61 = arith.constant 61 : index
    %c0_222 = arith.constant 0 : index
    %c0_223 = arith.constant 0 : index
    %364 = vector.load %arg3[%c61, %c0_222, %c0_223] : memref<125x8x4xf32, #tpu.memory_space<vmem>>, vector<1x8x4xf32>
    %365 = vector.shape_cast %364 : vector<1x8x4xf32> to vector<8x4xf32>
    %cst_224 = arith.constant dense<0.000000e+00> : vector<8x256xf32>
    %366 = tpu.matmul %365, %363, %cst_224 {dimension_numbers = #tpu.dot_dimension_numbers<[1], [0], [0], [1], [0, 0, 1, 1], [], []>} : vector<8x4xf32>, vector<4x256xf32>, vector<8x256xf32> -> vector<8x256xf32>
    %367 = arith.addf %362, %366 : vector<8x256xf32>
    %368 = vector.extract_strided_slice %15 {offsets = [0, 33], sizes = [4, 256], strides = [1, 1]} : vector<4x324xf32> to vector<4x256xf32>
    %c86 = arith.constant 86 : index
    %c0_225 = arith.constant 0 : index
    %c0_226 = arith.constant 0 : index
    %369 = vector.load %arg3[%c86, %c0_225, %c0_226] : memref<125x8x4xf32, #tpu.memory_space<vmem>>, vector<1x8x4xf32>
    %370 = vector.shape_cast %369 : vector<1x8x4xf32> to vector<8x4xf32>
    %cst_227 = arith.constant dense<0.000000e+00> : vector<8x256xf32>
    %371 = tpu.matmul %370, %368, %cst_227 {dimension_numbers = #tpu.dot_dimension_numbers<[1], [0], [0], [1], [0, 0, 1, 1], [], []>} : vector<8x4xf32>, vector<4x256xf32>, vector<8x256xf32> -> vector<8x256xf32>
    %372 = arith.addf %367, %371 : vector<8x256xf32>
    %373 = vector.extract_strided_slice %19 {offsets = [0, 33], sizes = [4, 256], strides = [1, 1]} : vector<4x324xf32> to vector<4x256xf32>
    %c111 = arith.constant 111 : index
    %c0_228 = arith.constant 0 : index
    %c0_229 = arith.constant 0 : index
    %374 = vector.load %arg3[%c111, %c0_228, %c0_229] : memref<125x8x4xf32, #tpu.memory_space<vmem>>, vector<1x8x4xf32>
    %375 = vector.shape_cast %374 : vector<1x8x4xf32> to vector<8x4xf32>
    %cst_230 = arith.constant dense<0.000000e+00> : vector<8x256xf32>
    %376 = tpu.matmul %375, %373, %cst_230 {dimension_numbers = #tpu.dot_dimension_numbers<[1], [0], [0], [1], [0, 0, 1, 1], [], []>} : vector<8x4xf32>, vector<4x256xf32>, vector<8x256xf32> -> vector<8x256xf32>
    %377 = arith.addf %372, %376 : vector<8x256xf32>
    %378 = vector.broadcast %351 : vector<1x256xf32> to vector<8x256xf32>
    %379 = arith.mulf %378, %377 : vector<8x256xf32>
    %380 = arith.addf %350, %379 : vector<8x256xf32>
    %c12 = arith.constant 12 : index
    %c0_231 = arith.constant 0 : index
    %381 = vector.load %arg4[%c12, %c0_231] : memref<25x256xf32, #tpu.memory_space<vmem>>, vector<1x256xf32>
    %cst_232 = arith.constant 0.000000e+00 : f32
    %382 = vector.broadcast %cst_232 : f32 to vector<8x256xf32>
    %383 = vector.extract_strided_slice %3 {offsets = [0, 34], sizes = [4, 256], strides = [1, 1]} : vector<4x324xf32> to vector<4x256xf32>
    %c12_233 = arith.constant 12 : index
    %c0_234 = arith.constant 0 : index
    %c0_235 = arith.constant 0 : index
    %384 = vector.load %arg3[%c12_233, %c0_234, %c0_235] : memref<125x8x4xf32, #tpu.memory_space<vmem>>, vector<1x8x4xf32>
    %385 = vector.shape_cast %384 : vector<1x8x4xf32> to vector<8x4xf32>
    %cst_236 = arith.constant dense<0.000000e+00> : vector<8x256xf32>
    %386 = tpu.matmul %385, %383, %cst_236 {dimension_numbers = #tpu.dot_dimension_numbers<[1], [0], [0], [1], [0, 0, 1, 1], [], []>} : vector<8x4xf32>, vector<4x256xf32>, vector<8x256xf32> -> vector<8x256xf32>
    %387 = arith.addf %382, %386 : vector<8x256xf32>
    %388 = vector.extract_strided_slice %7 {offsets = [0, 34], sizes = [4, 256], strides = [1, 1]} : vector<4x324xf32> to vector<4x256xf32>
    %c37 = arith.constant 37 : index
    %c0_237 = arith.constant 0 : index
    %c0_238 = arith.constant 0 : index
    %389 = vector.load %arg3[%c37, %c0_237, %c0_238] : memref<125x8x4xf32, #tpu.memory_space<vmem>>, vector<1x8x4xf32>
    %390 = vector.shape_cast %389 : vector<1x8x4xf32> to vector<8x4xf32>
    %cst_239 = arith.constant dense<0.000000e+00> : vector<8x256xf32>
    %391 = tpu.matmul %390, %388, %cst_239 {dimension_numbers = #tpu.dot_dimension_numbers<[1], [0], [0], [1], [0, 0, 1, 1], [], []>} : vector<8x4xf32>, vector<4x256xf32>, vector<8x256xf32> -> vector<8x256xf32>
    %392 = arith.addf %387, %391 : vector<8x256xf32>
    %393 = vector.extract_strided_slice %11 {offsets = [0, 34], sizes = [4, 256], strides = [1, 1]} : vector<4x324xf32> to vector<4x256xf32>
    %c62 = arith.constant 62 : index
    %c0_240 = arith.constant 0 : index
    %c0_241 = arith.constant 0 : index
    %394 = vector.load %arg3[%c62, %c0_240, %c0_241] : memref<125x8x4xf32, #tpu.memory_space<vmem>>, vector<1x8x4xf32>
    %395 = vector.shape_cast %394 : vector<1x8x4xf32> to vector<8x4xf32>
    %cst_242 = arith.constant dense<0.000000e+00> : vector<8x256xf32>
    %396 = tpu.matmul %395, %393, %cst_242 {dimension_numbers = #tpu.dot_dimension_numbers<[1], [0], [0], [1], [0, 0, 1, 1], [], []>} : vector<8x4xf32>, vector<4x256xf32>, vector<8x256xf32> -> vector<8x256xf32>
    %397 = arith.addf %392, %396 : vector<8x256xf32>
    %398 = vector.extract_strided_slice %15 {offsets = [0, 34], sizes = [4, 256], strides = [1, 1]} : vector<4x324xf32> to vector<4x256xf32>
    %c87 = arith.constant 87 : index
    %c0_243 = arith.constant 0 : index
    %c0_244 = arith.constant 0 : index
    %399 = vector.load %arg3[%c87, %c0_243, %c0_244] : memref<125x8x4xf32, #tpu.memory_space<vmem>>, vector<1x8x4xf32>
    %400 = vector.shape_cast %399 : vector<1x8x4xf32> to vector<8x4xf32>
    %cst_245 = arith.constant dense<0.000000e+00> : vector<8x256xf32>
    %401 = tpu.matmul %400, %398, %cst_245 {dimension_numbers = #tpu.dot_dimension_numbers<[1], [0], [0], [1], [0, 0, 1, 1], [], []>} : vector<8x4xf32>, vector<4x256xf32>, vector<8x256xf32> -> vector<8x256xf32>
    %402 = arith.addf %397, %401 : vector<8x256xf32>
    %403 = vector.extract_strided_slice %19 {offsets = [0, 34], sizes = [4, 256], strides = [1, 1]} : vector<4x324xf32> to vector<4x256xf32>
    %c112 = arith.constant 112 : index
    %c0_246 = arith.constant 0 : index
    %c0_247 = arith.constant 0 : index
    %404 = vector.load %arg3[%c112, %c0_246, %c0_247] : memref<125x8x4xf32, #tpu.memory_space<vmem>>, vector<1x8x4xf32>
    %405 = vector.shape_cast %404 : vector<1x8x4xf32> to vector<8x4xf32>
    %cst_248 = arith.constant dense<0.000000e+00> : vector<8x256xf32>
    %406 = tpu.matmul %405, %403, %cst_248 {dimension_numbers = #tpu.dot_dimension_numbers<[1], [0], [0], [1], [0, 0, 1, 1], [], []>} : vector<8x4xf32>, vector<4x256xf32>, vector<8x256xf32> -> vector<8x256xf32>
    %407 = arith.addf %402, %406 : vector<8x256xf32>
    %408 = vector.broadcast %381 : vector<1x256xf32> to vector<8x256xf32>
    %409 = arith.mulf %408, %407 : vector<8x256xf32>
    %410 = arith.addf %380, %409 : vector<8x256xf32>
    %c13 = arith.constant 13 : index
    %c0_249 = arith.constant 0 : index
    %411 = vector.load %arg4[%c13, %c0_249] : memref<25x256xf32, #tpu.memory_space<vmem>>, vector<1x256xf32>
    %cst_250 = arith.constant 0.000000e+00 : f32
    %412 = vector.broadcast %cst_250 : f32 to vector<8x256xf32>
    %413 = vector.extract_strided_slice %3 {offsets = [0, 35], sizes = [4, 256], strides = [1, 1]} : vector<4x324xf32> to vector<4x256xf32>
    %c13_251 = arith.constant 13 : index
    %c0_252 = arith.constant 0 : index
    %c0_253 = arith.constant 0 : index
    %414 = vector.load %arg3[%c13_251, %c0_252, %c0_253] : memref<125x8x4xf32, #tpu.memory_space<vmem>>, vector<1x8x4xf32>
    %415 = vector.shape_cast %414 : vector<1x8x4xf32> to vector<8x4xf32>
    %cst_254 = arith.constant dense<0.000000e+00> : vector<8x256xf32>
    %416 = tpu.matmul %415, %413, %cst_254 {dimension_numbers = #tpu.dot_dimension_numbers<[1], [0], [0], [1], [0, 0, 1, 1], [], []>} : vector<8x4xf32>, vector<4x256xf32>, vector<8x256xf32> -> vector<8x256xf32>
    %417 = arith.addf %412, %416 : vector<8x256xf32>
    %418 = vector.extract_strided_slice %7 {offsets = [0, 35], sizes = [4, 256], strides = [1, 1]} : vector<4x324xf32> to vector<4x256xf32>
    %c38 = arith.constant 38 : index
    %c0_255 = arith.constant 0 : index
    %c0_256 = arith.constant 0 : index
    %419 = vector.load %arg3[%c38, %c0_255, %c0_256] : memref<125x8x4xf32, #tpu.memory_space<vmem>>, vector<1x8x4xf32>
    %420 = vector.shape_cast %419 : vector<1x8x4xf32> to vector<8x4xf32>
    %cst_257 = arith.constant dense<0.000000e+00> : vector<8x256xf32>
    %421 = tpu.matmul %420, %418, %cst_257 {dimension_numbers = #tpu.dot_dimension_numbers<[1], [0], [0], [1], [0, 0, 1, 1], [], []>} : vector<8x4xf32>, vector<4x256xf32>, vector<8x256xf32> -> vector<8x256xf32>
    %422 = arith.addf %417, %421 : vector<8x256xf32>
    %423 = vector.extract_strided_slice %11 {offsets = [0, 35], sizes = [4, 256], strides = [1, 1]} : vector<4x324xf32> to vector<4x256xf32>
    %c63 = arith.constant 63 : index
    %c0_258 = arith.constant 0 : index
    %c0_259 = arith.constant 0 : index
    %424 = vector.load %arg3[%c63, %c0_258, %c0_259] : memref<125x8x4xf32, #tpu.memory_space<vmem>>, vector<1x8x4xf32>
    %425 = vector.shape_cast %424 : vector<1x8x4xf32> to vector<8x4xf32>
    %cst_260 = arith.constant dense<0.000000e+00> : vector<8x256xf32>
    %426 = tpu.matmul %425, %423, %cst_260 {dimension_numbers = #tpu.dot_dimension_numbers<[1], [0], [0], [1], [0, 0, 1, 1], [], []>} : vector<8x4xf32>, vector<4x256xf32>, vector<8x256xf32> -> vector<8x256xf32>
    %427 = arith.addf %422, %426 : vector<8x256xf32>
    %428 = vector.extract_strided_slice %15 {offsets = [0, 35], sizes = [4, 256], strides = [1, 1]} : vector<4x324xf32> to vector<4x256xf32>
    %c88 = arith.constant 88 : index
    %c0_261 = arith.constant 0 : index
    %c0_262 = arith.constant 0 : index
    %429 = vector.load %arg3[%c88, %c0_261, %c0_262] : memref<125x8x4xf32, #tpu.memory_space<vmem>>, vector<1x8x4xf32>
    %430 = vector.shape_cast %429 : vector<1x8x4xf32> to vector<8x4xf32>
    %cst_263 = arith.constant dense<0.000000e+00> : vector<8x256xf32>
    %431 = tpu.matmul %430, %428, %cst_263 {dimension_numbers = #tpu.dot_dimension_numbers<[1], [0], [0], [1], [0, 0, 1, 1], [], []>} : vector<8x4xf32>, vector<4x256xf32>, vector<8x256xf32> -> vector<8x256xf32>
    %432 = arith.addf %427, %431 : vector<8x256xf32>
    %433 = vector.extract_strided_slice %19 {offsets = [0, 35], sizes = [4, 256], strides = [1, 1]} : vector<4x324xf32> to vector<4x256xf32>
    %c113 = arith.constant 113 : index
    %c0_264 = arith.constant 0 : index
    %c0_265 = arith.constant 0 : index
    %434 = vector.load %arg3[%c113, %c0_264, %c0_265] : memref<125x8x4xf32, #tpu.memory_space<vmem>>, vector<1x8x4xf32>
    %435 = vector.shape_cast %434 : vector<1x8x4xf32> to vector<8x4xf32>
    %cst_266 = arith.constant dense<0.000000e+00> : vector<8x256xf32>
    %436 = tpu.matmul %435, %433, %cst_266 {dimension_numbers = #tpu.dot_dimension_numbers<[1], [0], [0], [1], [0, 0, 1, 1], [], []>} : vector<8x4xf32>, vector<4x256xf32>, vector<8x256xf32> -> vector<8x256xf32>
    %437 = arith.addf %432, %436 : vector<8x256xf32>
    %438 = vector.broadcast %411 : vector<1x256xf32> to vector<8x256xf32>
    %439 = arith.mulf %438, %437 : vector<8x256xf32>
    %440 = arith.addf %410, %439 : vector<8x256xf32>
    %c14 = arith.constant 14 : index
    %c0_267 = arith.constant 0 : index
    %441 = vector.load %arg4[%c14, %c0_267] : memref<25x256xf32, #tpu.memory_space<vmem>>, vector<1x256xf32>
    %cst_268 = arith.constant 0.000000e+00 : f32
    %442 = vector.broadcast %cst_268 : f32 to vector<8x256xf32>
    %443 = vector.extract_strided_slice %3 {offsets = [0, 36], sizes = [4, 256], strides = [1, 1]} : vector<4x324xf32> to vector<4x256xf32>
    %c14_269 = arith.constant 14 : index
    %c0_270 = arith.constant 0 : index
    %c0_271 = arith.constant 0 : index
    %444 = vector.load %arg3[%c14_269, %c0_270, %c0_271] : memref<125x8x4xf32, #tpu.memory_space<vmem>>, vector<1x8x4xf32>
    %445 = vector.shape_cast %444 : vector<1x8x4xf32> to vector<8x4xf32>
    %cst_272 = arith.constant dense<0.000000e+00> : vector<8x256xf32>
    %446 = tpu.matmul %445, %443, %cst_272 {dimension_numbers = #tpu.dot_dimension_numbers<[1], [0], [0], [1], [0, 0, 1, 1], [], []>} : vector<8x4xf32>, vector<4x256xf32>, vector<8x256xf32> -> vector<8x256xf32>
    %447 = arith.addf %442, %446 : vector<8x256xf32>
    %448 = vector.extract_strided_slice %7 {offsets = [0, 36], sizes = [4, 256], strides = [1, 1]} : vector<4x324xf32> to vector<4x256xf32>
    %c39 = arith.constant 39 : index
    %c0_273 = arith.constant 0 : index
    %c0_274 = arith.constant 0 : index
    %449 = vector.load %arg3[%c39, %c0_273, %c0_274] : memref<125x8x4xf32, #tpu.memory_space<vmem>>, vector<1x8x4xf32>
    %450 = vector.shape_cast %449 : vector<1x8x4xf32> to vector<8x4xf32>
    %cst_275 = arith.constant dense<0.000000e+00> : vector<8x256xf32>
    %451 = tpu.matmul %450, %448, %cst_275 {dimension_numbers = #tpu.dot_dimension_numbers<[1], [0], [0], [1], [0, 0, 1, 1], [], []>} : vector<8x4xf32>, vector<4x256xf32>, vector<8x256xf32> -> vector<8x256xf32>
    %452 = arith.addf %447, %451 : vector<8x256xf32>
    %453 = vector.extract_strided_slice %11 {offsets = [0, 36], sizes = [4, 256], strides = [1, 1]} : vector<4x324xf32> to vector<4x256xf32>
    %c64 = arith.constant 64 : index
    %c0_276 = arith.constant 0 : index
    %c0_277 = arith.constant 0 : index
    %454 = vector.load %arg3[%c64, %c0_276, %c0_277] : memref<125x8x4xf32, #tpu.memory_space<vmem>>, vector<1x8x4xf32>
    %455 = vector.shape_cast %454 : vector<1x8x4xf32> to vector<8x4xf32>
    %cst_278 = arith.constant dense<0.000000e+00> : vector<8x256xf32>
    %456 = tpu.matmul %455, %453, %cst_278 {dimension_numbers = #tpu.dot_dimension_numbers<[1], [0], [0], [1], [0, 0, 1, 1], [], []>} : vector<8x4xf32>, vector<4x256xf32>, vector<8x256xf32> -> vector<8x256xf32>
    %457 = arith.addf %452, %456 : vector<8x256xf32>
    %458 = vector.extract_strided_slice %15 {offsets = [0, 36], sizes = [4, 256], strides = [1, 1]} : vector<4x324xf32> to vector<4x256xf32>
    %c89 = arith.constant 89 : index
    %c0_279 = arith.constant 0 : index
    %c0_280 = arith.constant 0 : index
    %459 = vector.load %arg3[%c89, %c0_279, %c0_280] : memref<125x8x4xf32, #tpu.memory_space<vmem>>, vector<1x8x4xf32>
    %460 = vector.shape_cast %459 : vector<1x8x4xf32> to vector<8x4xf32>
    %cst_281 = arith.constant dense<0.000000e+00> : vector<8x256xf32>
    %461 = tpu.matmul %460, %458, %cst_281 {dimension_numbers = #tpu.dot_dimension_numbers<[1], [0], [0], [1], [0, 0, 1, 1], [], []>} : vector<8x4xf32>, vector<4x256xf32>, vector<8x256xf32> -> vector<8x256xf32>
    %462 = arith.addf %457, %461 : vector<8x256xf32>
    %463 = vector.extract_strided_slice %19 {offsets = [0, 36], sizes = [4, 256], strides = [1, 1]} : vector<4x324xf32> to vector<4x256xf32>
    %c114 = arith.constant 114 : index
    %c0_282 = arith.constant 0 : index
    %c0_283 = arith.constant 0 : index
    %464 = vector.load %arg3[%c114, %c0_282, %c0_283] : memref<125x8x4xf32, #tpu.memory_space<vmem>>, vector<1x8x4xf32>
    %465 = vector.shape_cast %464 : vector<1x8x4xf32> to vector<8x4xf32>
    %cst_284 = arith.constant dense<0.000000e+00> : vector<8x256xf32>
    %466 = tpu.matmul %465, %463, %cst_284 {dimension_numbers = #tpu.dot_dimension_numbers<[1], [0], [0], [1], [0, 0, 1, 1], [], []>} : vector<8x4xf32>, vector<4x256xf32>, vector<8x256xf32> -> vector<8x256xf32>
    %467 = arith.addf %462, %466 : vector<8x256xf32>
    %468 = vector.broadcast %441 : vector<1x256xf32> to vector<8x256xf32>
    %469 = arith.mulf %468, %467 : vector<8x256xf32>
    %470 = arith.addf %440, %469 : vector<8x256xf32>
    %c15 = arith.constant 15 : index
    %c0_285 = arith.constant 0 : index
    %471 = vector.load %arg4[%c15, %c0_285] : memref<25x256xf32, #tpu.memory_space<vmem>>, vector<1x256xf32>
    %cst_286 = arith.constant 0.000000e+00 : f32
    %472 = vector.broadcast %cst_286 : f32 to vector<8x256xf32>
    %473 = vector.extract_strided_slice %3 {offsets = [0, 48], sizes = [4, 256], strides = [1, 1]} : vector<4x324xf32> to vector<4x256xf32>
    %c15_287 = arith.constant 15 : index
    %c0_288 = arith.constant 0 : index
    %c0_289 = arith.constant 0 : index
    %474 = vector.load %arg3[%c15_287, %c0_288, %c0_289] : memref<125x8x4xf32, #tpu.memory_space<vmem>>, vector<1x8x4xf32>
    %475 = vector.shape_cast %474 : vector<1x8x4xf32> to vector<8x4xf32>
    %cst_290 = arith.constant dense<0.000000e+00> : vector<8x256xf32>
    %476 = tpu.matmul %475, %473, %cst_290 {dimension_numbers = #tpu.dot_dimension_numbers<[1], [0], [0], [1], [0, 0, 1, 1], [], []>} : vector<8x4xf32>, vector<4x256xf32>, vector<8x256xf32> -> vector<8x256xf32>
    %477 = arith.addf %472, %476 : vector<8x256xf32>
    %478 = vector.extract_strided_slice %7 {offsets = [0, 48], sizes = [4, 256], strides = [1, 1]} : vector<4x324xf32> to vector<4x256xf32>
    %c40 = arith.constant 40 : index
    %c0_291 = arith.constant 0 : index
    %c0_292 = arith.constant 0 : index
    %479 = vector.load %arg3[%c40, %c0_291, %c0_292] : memref<125x8x4xf32, #tpu.memory_space<vmem>>, vector<1x8x4xf32>
    %480 = vector.shape_cast %479 : vector<1x8x4xf32> to vector<8x4xf32>
    %cst_293 = arith.constant dense<0.000000e+00> : vector<8x256xf32>
    %481 = tpu.matmul %480, %478, %cst_293 {dimension_numbers = #tpu.dot_dimension_numbers<[1], [0], [0], [1], [0, 0, 1, 1], [], []>} : vector<8x4xf32>, vector<4x256xf32>, vector<8x256xf32> -> vector<8x256xf32>
    %482 = arith.addf %477, %481 : vector<8x256xf32>
    %483 = vector.extract_strided_slice %11 {offsets = [0, 48], sizes = [4, 256], strides = [1, 1]} : vector<4x324xf32> to vector<4x256xf32>
    %c65 = arith.constant 65 : index
    %c0_294 = arith.constant 0 : index
    %c0_295 = arith.constant 0 : index
    %484 = vector.load %arg3[%c65, %c0_294, %c0_295] : memref<125x8x4xf32, #tpu.memory_space<vmem>>, vector<1x8x4xf32>
    %485 = vector.shape_cast %484 : vector<1x8x4xf32> to vector<8x4xf32>
    %cst_296 = arith.constant dense<0.000000e+00> : vector<8x256xf32>
    %486 = tpu.matmul %485, %483, %cst_296 {dimension_numbers = #tpu.dot_dimension_numbers<[1], [0], [0], [1], [0, 0, 1, 1], [], []>} : vector<8x4xf32>, vector<4x256xf32>, vector<8x256xf32> -> vector<8x256xf32>
    %487 = arith.addf %482, %486 : vector<8x256xf32>
    %488 = vector.extract_strided_slice %15 {offsets = [0, 48], sizes = [4, 256], strides = [1, 1]} : vector<4x324xf32> to vector<4x256xf32>
    %c90 = arith.constant 90 : index
    %c0_297 = arith.constant 0 : index
    %c0_298 = arith.constant 0 : index
    %489 = vector.load %arg3[%c90, %c0_297, %c0_298] : memref<125x8x4xf32, #tpu.memory_space<vmem>>, vector<1x8x4xf32>
    %490 = vector.shape_cast %489 : vector<1x8x4xf32> to vector<8x4xf32>
    %cst_299 = arith.constant dense<0.000000e+00> : vector<8x256xf32>
    %491 = tpu.matmul %490, %488, %cst_299 {dimension_numbers = #tpu.dot_dimension_numbers<[1], [0], [0], [1], [0, 0, 1, 1], [], []>} : vector<8x4xf32>, vector<4x256xf32>, vector<8x256xf32> -> vector<8x256xf32>
    %492 = arith.addf %487, %491 : vector<8x256xf32>
    %493 = vector.extract_strided_slice %19 {offsets = [0, 48], sizes = [4, 256], strides = [1, 1]} : vector<4x324xf32> to vector<4x256xf32>
    %c115 = arith.constant 115 : index
    %c0_300 = arith.constant 0 : index
    %c0_301 = arith.constant 0 : index
    %494 = vector.load %arg3[%c115, %c0_300, %c0_301] : memref<125x8x4xf32, #tpu.memory_space<vmem>>, vector<1x8x4xf32>
    %495 = vector.shape_cast %494 : vector<1x8x4xf32> to vector<8x4xf32>
    %cst_302 = arith.constant dense<0.000000e+00> : vector<8x256xf32>
    %496 = tpu.matmul %495, %493, %cst_302 {dimension_numbers = #tpu.dot_dimension_numbers<[1], [0], [0], [1], [0, 0, 1, 1], [], []>} : vector<8x4xf32>, vector<4x256xf32>, vector<8x256xf32> -> vector<8x256xf32>
    %497 = arith.addf %492, %496 : vector<8x256xf32>
    %498 = vector.broadcast %471 : vector<1x256xf32> to vector<8x256xf32>
    %499 = arith.mulf %498, %497 : vector<8x256xf32>
    %500 = arith.addf %470, %499 : vector<8x256xf32>
    %c16 = arith.constant 16 : index
    %c0_303 = arith.constant 0 : index
    %501 = vector.load %arg4[%c16, %c0_303] : memref<25x256xf32, #tpu.memory_space<vmem>>, vector<1x256xf32>
    %cst_304 = arith.constant 0.000000e+00 : f32
    %502 = vector.broadcast %cst_304 : f32 to vector<8x256xf32>
    %503 = vector.extract_strided_slice %3 {offsets = [0, 49], sizes = [4, 256], strides = [1, 1]} : vector<4x324xf32> to vector<4x256xf32>
    %c16_305 = arith.constant 16 : index
    %c0_306 = arith.constant 0 : index
    %c0_307 = arith.constant 0 : index
    %504 = vector.load %arg3[%c16_305, %c0_306, %c0_307] : memref<125x8x4xf32, #tpu.memory_space<vmem>>, vector<1x8x4xf32>
    %505 = vector.shape_cast %504 : vector<1x8x4xf32> to vector<8x4xf32>
    %cst_308 = arith.constant dense<0.000000e+00> : vector<8x256xf32>
    %506 = tpu.matmul %505, %503, %cst_308 {dimension_numbers = #tpu.dot_dimension_numbers<[1], [0], [0], [1], [0, 0, 1, 1], [], []>} : vector<8x4xf32>, vector<4x256xf32>, vector<8x256xf32> -> vector<8x256xf32>
    %507 = arith.addf %502, %506 : vector<8x256xf32>
    %508 = vector.extract_strided_slice %7 {offsets = [0, 49], sizes = [4, 256], strides = [1, 1]} : vector<4x324xf32> to vector<4x256xf32>
    %c41 = arith.constant 41 : index
    %c0_309 = arith.constant 0 : index
    %c0_310 = arith.constant 0 : index
    %509 = vector.load %arg3[%c41, %c0_309, %c0_310] : memref<125x8x4xf32, #tpu.memory_space<vmem>>, vector<1x8x4xf32>
    %510 = vector.shape_cast %509 : vector<1x8x4xf32> to vector<8x4xf32>
    %cst_311 = arith.constant dense<0.000000e+00> : vector<8x256xf32>
    %511 = tpu.matmul %510, %508, %cst_311 {dimension_numbers = #tpu.dot_dimension_numbers<[1], [0], [0], [1], [0, 0, 1, 1], [], []>} : vector<8x4xf32>, vector<4x256xf32>, vector<8x256xf32> -> vector<8x256xf32>
    %512 = arith.addf %507, %511 : vector<8x256xf32>
    %513 = vector.extract_strided_slice %11 {offsets = [0, 49], sizes = [4, 256], strides = [1, 1]} : vector<4x324xf32> to vector<4x256xf32>
    %c66 = arith.constant 66 : index
    %c0_312 = arith.constant 0 : index
    %c0_313 = arith.constant 0 : index
    %514 = vector.load %arg3[%c66, %c0_312, %c0_313] : memref<125x8x4xf32, #tpu.memory_space<vmem>>, vector<1x8x4xf32>
    %515 = vector.shape_cast %514 : vector<1x8x4xf32> to vector<8x4xf32>
    %cst_314 = arith.constant dense<0.000000e+00> : vector<8x256xf32>
    %516 = tpu.matmul %515, %513, %cst_314 {dimension_numbers = #tpu.dot_dimension_numbers<[1], [0], [0], [1], [0, 0, 1, 1], [], []>} : vector<8x4xf32>, vector<4x256xf32>, vector<8x256xf32> -> vector<8x256xf32>
    %517 = arith.addf %512, %516 : vector<8x256xf32>
    %518 = vector.extract_strided_slice %15 {offsets = [0, 49], sizes = [4, 256], strides = [1, 1]} : vector<4x324xf32> to vector<4x256xf32>
    %c91 = arith.constant 91 : index
    %c0_315 = arith.constant 0 : index
    %c0_316 = arith.constant 0 : index
    %519 = vector.load %arg3[%c91, %c0_315, %c0_316] : memref<125x8x4xf32, #tpu.memory_space<vmem>>, vector<1x8x4xf32>
    %520 = vector.shape_cast %519 : vector<1x8x4xf32> to vector<8x4xf32>
    %cst_317 = arith.constant dense<0.000000e+00> : vector<8x256xf32>
    %521 = tpu.matmul %520, %518, %cst_317 {dimension_numbers = #tpu.dot_dimension_numbers<[1], [0], [0], [1], [0, 0, 1, 1], [], []>} : vector<8x4xf32>, vector<4x256xf32>, vector<8x256xf32> -> vector<8x256xf32>
    %522 = arith.addf %517, %521 : vector<8x256xf32>
    %523 = vector.extract_strided_slice %19 {offsets = [0, 49], sizes = [4, 256], strides = [1, 1]} : vector<4x324xf32> to vector<4x256xf32>
    %c116 = arith.constant 116 : index
    %c0_318 = arith.constant 0 : index
    %c0_319 = arith.constant 0 : index
    %524 = vector.load %arg3[%c116, %c0_318, %c0_319] : memref<125x8x4xf32, #tpu.memory_space<vmem>>, vector<1x8x4xf32>
    %525 = vector.shape_cast %524 : vector<1x8x4xf32> to vector<8x4xf32>
    %cst_320 = arith.constant dense<0.000000e+00> : vector<8x256xf32>
    %526 = tpu.matmul %525, %523, %cst_320 {dimension_numbers = #tpu.dot_dimension_numbers<[1], [0], [0], [1], [0, 0, 1, 1], [], []>} : vector<8x4xf32>, vector<4x256xf32>, vector<8x256xf32> -> vector<8x256xf32>
    %527 = arith.addf %522, %526 : vector<8x256xf32>
    %528 = vector.broadcast %501 : vector<1x256xf32> to vector<8x256xf32>
    %529 = arith.mulf %528, %527 : vector<8x256xf32>
    %530 = arith.addf %500, %529 : vector<8x256xf32>
    %c17 = arith.constant 17 : index
    %c0_321 = arith.constant 0 : index
    %531 = vector.load %arg4[%c17, %c0_321] : memref<25x256xf32, #tpu.memory_space<vmem>>, vector<1x256xf32>
    %cst_322 = arith.constant 0.000000e+00 : f32
    %532 = vector.broadcast %cst_322 : f32 to vector<8x256xf32>
    %533 = vector.extract_strided_slice %3 {offsets = [0, 50], sizes = [4, 256], strides = [1, 1]} : vector<4x324xf32> to vector<4x256xf32>
    %c17_323 = arith.constant 17 : index
    %c0_324 = arith.constant 0 : index
    %c0_325 = arith.constant 0 : index
    %534 = vector.load %arg3[%c17_323, %c0_324, %c0_325] : memref<125x8x4xf32, #tpu.memory_space<vmem>>, vector<1x8x4xf32>
    %535 = vector.shape_cast %534 : vector<1x8x4xf32> to vector<8x4xf32>
    %cst_326 = arith.constant dense<0.000000e+00> : vector<8x256xf32>
    %536 = tpu.matmul %535, %533, %cst_326 {dimension_numbers = #tpu.dot_dimension_numbers<[1], [0], [0], [1], [0, 0, 1, 1], [], []>} : vector<8x4xf32>, vector<4x256xf32>, vector<8x256xf32> -> vector<8x256xf32>
    %537 = arith.addf %532, %536 : vector<8x256xf32>
    %538 = vector.extract_strided_slice %7 {offsets = [0, 50], sizes = [4, 256], strides = [1, 1]} : vector<4x324xf32> to vector<4x256xf32>
    %c42 = arith.constant 42 : index
    %c0_327 = arith.constant 0 : index
    %c0_328 = arith.constant 0 : index
    %539 = vector.load %arg3[%c42, %c0_327, %c0_328] : memref<125x8x4xf32, #tpu.memory_space<vmem>>, vector<1x8x4xf32>
    %540 = vector.shape_cast %539 : vector<1x8x4xf32> to vector<8x4xf32>
    %cst_329 = arith.constant dense<0.000000e+00> : vector<8x256xf32>
    %541 = tpu.matmul %540, %538, %cst_329 {dimension_numbers = #tpu.dot_dimension_numbers<[1], [0], [0], [1], [0, 0, 1, 1], [], []>} : vector<8x4xf32>, vector<4x256xf32>, vector<8x256xf32> -> vector<8x256xf32>
    %542 = arith.addf %537, %541 : vector<8x256xf32>
    %543 = vector.extract_strided_slice %11 {offsets = [0, 50], sizes = [4, 256], strides = [1, 1]} : vector<4x324xf32> to vector<4x256xf32>
    %c67 = arith.constant 67 : index
    %c0_330 = arith.constant 0 : index
    %c0_331 = arith.constant 0 : index
    %544 = vector.load %arg3[%c67, %c0_330, %c0_331] : memref<125x8x4xf32, #tpu.memory_space<vmem>>, vector<1x8x4xf32>
    %545 = vector.shape_cast %544 : vector<1x8x4xf32> to vector<8x4xf32>
    %cst_332 = arith.constant dense<0.000000e+00> : vector<8x256xf32>
    %546 = tpu.matmul %545, %543, %cst_332 {dimension_numbers = #tpu.dot_dimension_numbers<[1], [0], [0], [1], [0, 0, 1, 1], [], []>} : vector<8x4xf32>, vector<4x256xf32>, vector<8x256xf32> -> vector<8x256xf32>
    %547 = arith.addf %542, %546 : vector<8x256xf32>
    %548 = vector.extract_strided_slice %15 {offsets = [0, 50], sizes = [4, 256], strides = [1, 1]} : vector<4x324xf32> to vector<4x256xf32>
    %c92 = arith.constant 92 : index
    %c0_333 = arith.constant 0 : index
    %c0_334 = arith.constant 0 : index
    %549 = vector.load %arg3[%c92, %c0_333, %c0_334] : memref<125x8x4xf32, #tpu.memory_space<vmem>>, vector<1x8x4xf32>
    %550 = vector.shape_cast %549 : vector<1x8x4xf32> to vector<8x4xf32>
    %cst_335 = arith.constant dense<0.000000e+00> : vector<8x256xf32>
    %551 = tpu.matmul %550, %548, %cst_335 {dimension_numbers = #tpu.dot_dimension_numbers<[1], [0], [0], [1], [0, 0, 1, 1], [], []>} : vector<8x4xf32>, vector<4x256xf32>, vector<8x256xf32> -> vector<8x256xf32>
    %552 = arith.addf %547, %551 : vector<8x256xf32>
    %553 = vector.extract_strided_slice %19 {offsets = [0, 50], sizes = [4, 256], strides = [1, 1]} : vector<4x324xf32> to vector<4x256xf32>
    %c117 = arith.constant 117 : index
    %c0_336 = arith.constant 0 : index
    %c0_337 = arith.constant 0 : index
    %554 = vector.load %arg3[%c117, %c0_336, %c0_337] : memref<125x8x4xf32, #tpu.memory_space<vmem>>, vector<1x8x4xf32>
    %555 = vector.shape_cast %554 : vector<1x8x4xf32> to vector<8x4xf32>
    %cst_338 = arith.constant dense<0.000000e+00> : vector<8x256xf32>
    %556 = tpu.matmul %555, %553, %cst_338 {dimension_numbers = #tpu.dot_dimension_numbers<[1], [0], [0], [1], [0, 0, 1, 1], [], []>} : vector<8x4xf32>, vector<4x256xf32>, vector<8x256xf32> -> vector<8x256xf32>
    %557 = arith.addf %552, %556 : vector<8x256xf32>
    %558 = vector.broadcast %531 : vector<1x256xf32> to vector<8x256xf32>
    %559 = arith.mulf %558, %557 : vector<8x256xf32>
    %560 = arith.addf %530, %559 : vector<8x256xf32>
    %c18 = arith.constant 18 : index
    %c0_339 = arith.constant 0 : index
    %561 = vector.load %arg4[%c18, %c0_339] : memref<25x256xf32, #tpu.memory_space<vmem>>, vector<1x256xf32>
    %cst_340 = arith.constant 0.000000e+00 : f32
    %562 = vector.broadcast %cst_340 : f32 to vector<8x256xf32>
    %563 = vector.extract_strided_slice %3 {offsets = [0, 51], sizes = [4, 256], strides = [1, 1]} : vector<4x324xf32> to vector<4x256xf32>
    %c18_341 = arith.constant 18 : index
    %c0_342 = arith.constant 0 : index
    %c0_343 = arith.constant 0 : index
    %564 = vector.load %arg3[%c18_341, %c0_342, %c0_343] : memref<125x8x4xf32, #tpu.memory_space<vmem>>, vector<1x8x4xf32>
    %565 = vector.shape_cast %564 : vector<1x8x4xf32> to vector<8x4xf32>
    %cst_344 = arith.constant dense<0.000000e+00> : vector<8x256xf32>
    %566 = tpu.matmul %565, %563, %cst_344 {dimension_numbers = #tpu.dot_dimension_numbers<[1], [0], [0], [1], [0, 0, 1, 1], [], []>} : vector<8x4xf32>, vector<4x256xf32>, vector<8x256xf32> -> vector<8x256xf32>
    %567 = arith.addf %562, %566 : vector<8x256xf32>
    %568 = vector.extract_strided_slice %7 {offsets = [0, 51], sizes = [4, 256], strides = [1, 1]} : vector<4x324xf32> to vector<4x256xf32>
    %c43 = arith.constant 43 : index
    %c0_345 = arith.constant 0 : index
    %c0_346 = arith.constant 0 : index
    %569 = vector.load %arg3[%c43, %c0_345, %c0_346] : memref<125x8x4xf32, #tpu.memory_space<vmem>>, vector<1x8x4xf32>
    %570 = vector.shape_cast %569 : vector<1x8x4xf32> to vector<8x4xf32>
    %cst_347 = arith.constant dense<0.000000e+00> : vector<8x256xf32>
    %571 = tpu.matmul %570, %568, %cst_347 {dimension_numbers = #tpu.dot_dimension_numbers<[1], [0], [0], [1], [0, 0, 1, 1], [], []>} : vector<8x4xf32>, vector<4x256xf32>, vector<8x256xf32> -> vector<8x256xf32>
    %572 = arith.addf %567, %571 : vector<8x256xf32>
    %573 = vector.extract_strided_slice %11 {offsets = [0, 51], sizes = [4, 256], strides = [1, 1]} : vector<4x324xf32> to vector<4x256xf32>
    %c68 = arith.constant 68 : index
    %c0_348 = arith.constant 0 : index
    %c0_349 = arith.constant 0 : index
    %574 = vector.load %arg3[%c68, %c0_348, %c0_349] : memref<125x8x4xf32, #tpu.memory_space<vmem>>, vector<1x8x4xf32>
    %575 = vector.shape_cast %574 : vector<1x8x4xf32> to vector<8x4xf32>
    %cst_350 = arith.constant dense<0.000000e+00> : vector<8x256xf32>
    %576 = tpu.matmul %575, %573, %cst_350 {dimension_numbers = #tpu.dot_dimension_numbers<[1], [0], [0], [1], [0, 0, 1, 1], [], []>} : vector<8x4xf32>, vector<4x256xf32>, vector<8x256xf32> -> vector<8x256xf32>
    %577 = arith.addf %572, %576 : vector<8x256xf32>
    %578 = vector.extract_strided_slice %15 {offsets = [0, 51], sizes = [4, 256], strides = [1, 1]} : vector<4x324xf32> to vector<4x256xf32>
    %c93 = arith.constant 93 : index
    %c0_351 = arith.constant 0 : index
    %c0_352 = arith.constant 0 : index
    %579 = vector.load %arg3[%c93, %c0_351, %c0_352] : memref<125x8x4xf32, #tpu.memory_space<vmem>>, vector<1x8x4xf32>
    %580 = vector.shape_cast %579 : vector<1x8x4xf32> to vector<8x4xf32>
    %cst_353 = arith.constant dense<0.000000e+00> : vector<8x256xf32>
    %581 = tpu.matmul %580, %578, %cst_353 {dimension_numbers = #tpu.dot_dimension_numbers<[1], [0], [0], [1], [0, 0, 1, 1], [], []>} : vector<8x4xf32>, vector<4x256xf32>, vector<8x256xf32> -> vector<8x256xf32>
    %582 = arith.addf %577, %581 : vector<8x256xf32>
    %583 = vector.extract_strided_slice %19 {offsets = [0, 51], sizes = [4, 256], strides = [1, 1]} : vector<4x324xf32> to vector<4x256xf32>
    %c118 = arith.constant 118 : index
    %c0_354 = arith.constant 0 : index
    %c0_355 = arith.constant 0 : index
    %584 = vector.load %arg3[%c118, %c0_354, %c0_355] : memref<125x8x4xf32, #tpu.memory_space<vmem>>, vector<1x8x4xf32>
    %585 = vector.shape_cast %584 : vector<1x8x4xf32> to vector<8x4xf32>
    %cst_356 = arith.constant dense<0.000000e+00> : vector<8x256xf32>
    %586 = tpu.matmul %585, %583, %cst_356 {dimension_numbers = #tpu.dot_dimension_numbers<[1], [0], [0], [1], [0, 0, 1, 1], [], []>} : vector<8x4xf32>, vector<4x256xf32>, vector<8x256xf32> -> vector<8x256xf32>
    %587 = arith.addf %582, %586 : vector<8x256xf32>
    %588 = vector.broadcast %561 : vector<1x256xf32> to vector<8x256xf32>
    %589 = arith.mulf %588, %587 : vector<8x256xf32>
    %590 = arith.addf %560, %589 : vector<8x256xf32>
    %c19 = arith.constant 19 : index
    %c0_357 = arith.constant 0 : index
    %591 = vector.load %arg4[%c19, %c0_357] : memref<25x256xf32, #tpu.memory_space<vmem>>, vector<1x256xf32>
    %cst_358 = arith.constant 0.000000e+00 : f32
    %592 = vector.broadcast %cst_358 : f32 to vector<8x256xf32>
    %593 = vector.extract_strided_slice %3 {offsets = [0, 52], sizes = [4, 256], strides = [1, 1]} : vector<4x324xf32> to vector<4x256xf32>
    %c19_359 = arith.constant 19 : index
    %c0_360 = arith.constant 0 : index
    %c0_361 = arith.constant 0 : index
    %594 = vector.load %arg3[%c19_359, %c0_360, %c0_361] : memref<125x8x4xf32, #tpu.memory_space<vmem>>, vector<1x8x4xf32>
    %595 = vector.shape_cast %594 : vector<1x8x4xf32> to vector<8x4xf32>
    %cst_362 = arith.constant dense<0.000000e+00> : vector<8x256xf32>
    %596 = tpu.matmul %595, %593, %cst_362 {dimension_numbers = #tpu.dot_dimension_numbers<[1], [0], [0], [1], [0, 0, 1, 1], [], []>} : vector<8x4xf32>, vector<4x256xf32>, vector<8x256xf32> -> vector<8x256xf32>
    %597 = arith.addf %592, %596 : vector<8x256xf32>
    %598 = vector.extract_strided_slice %7 {offsets = [0, 52], sizes = [4, 256], strides = [1, 1]} : vector<4x324xf32> to vector<4x256xf32>
    %c44 = arith.constant 44 : index
    %c0_363 = arith.constant 0 : index
    %c0_364 = arith.constant 0 : index
    %599 = vector.load %arg3[%c44, %c0_363, %c0_364] : memref<125x8x4xf32, #tpu.memory_space<vmem>>, vector<1x8x4xf32>
    %600 = vector.shape_cast %599 : vector<1x8x4xf32> to vector<8x4xf32>
    %cst_365 = arith.constant dense<0.000000e+00> : vector<8x256xf32>
    %601 = tpu.matmul %600, %598, %cst_365 {dimension_numbers = #tpu.dot_dimension_numbers<[1], [0], [0], [1], [0, 0, 1, 1], [], []>} : vector<8x4xf32>, vector<4x256xf32>, vector<8x256xf32> -> vector<8x256xf32>
    %602 = arith.addf %597, %601 : vector<8x256xf32>
    %603 = vector.extract_strided_slice %11 {offsets = [0, 52], sizes = [4, 256], strides = [1, 1]} : vector<4x324xf32> to vector<4x256xf32>
    %c69 = arith.constant 69 : index
    %c0_366 = arith.constant 0 : index
    %c0_367 = arith.constant 0 : index
    %604 = vector.load %arg3[%c69, %c0_366, %c0_367] : memref<125x8x4xf32, #tpu.memory_space<vmem>>, vector<1x8x4xf32>
    %605 = vector.shape_cast %604 : vector<1x8x4xf32> to vector<8x4xf32>
    %cst_368 = arith.constant dense<0.000000e+00> : vector<8x256xf32>
    %606 = tpu.matmul %605, %603, %cst_368 {dimension_numbers = #tpu.dot_dimension_numbers<[1], [0], [0], [1], [0, 0, 1, 1], [], []>} : vector<8x4xf32>, vector<4x256xf32>, vector<8x256xf32> -> vector<8x256xf32>
    %607 = arith.addf %602, %606 : vector<8x256xf32>
    %608 = vector.extract_strided_slice %15 {offsets = [0, 52], sizes = [4, 256], strides = [1, 1]} : vector<4x324xf32> to vector<4x256xf32>
    %c94 = arith.constant 94 : index
    %c0_369 = arith.constant 0 : index
    %c0_370 = arith.constant 0 : index
    %609 = vector.load %arg3[%c94, %c0_369, %c0_370] : memref<125x8x4xf32, #tpu.memory_space<vmem>>, vector<1x8x4xf32>
    %610 = vector.shape_cast %609 : vector<1x8x4xf32> to vector<8x4xf32>
    %cst_371 = arith.constant dense<0.000000e+00> : vector<8x256xf32>
    %611 = tpu.matmul %610, %608, %cst_371 {dimension_numbers = #tpu.dot_dimension_numbers<[1], [0], [0], [1], [0, 0, 1, 1], [], []>} : vector<8x4xf32>, vector<4x256xf32>, vector<8x256xf32> -> vector<8x256xf32>
    %612 = arith.addf %607, %611 : vector<8x256xf32>
    %613 = vector.extract_strided_slice %19 {offsets = [0, 52], sizes = [4, 256], strides = [1, 1]} : vector<4x324xf32> to vector<4x256xf32>
    %c119 = arith.constant 119 : index
    %c0_372 = arith.constant 0 : index
    %c0_373 = arith.constant 0 : index
    %614 = vector.load %arg3[%c119, %c0_372, %c0_373] : memref<125x8x4xf32, #tpu.memory_space<vmem>>, vector<1x8x4xf32>
    %615 = vector.shape_cast %614 : vector<1x8x4xf32> to vector<8x4xf32>
    %cst_374 = arith.constant dense<0.000000e+00> : vector<8x256xf32>
    %616 = tpu.matmul %615, %613, %cst_374 {dimension_numbers = #tpu.dot_dimension_numbers<[1], [0], [0], [1], [0, 0, 1, 1], [], []>} : vector<8x4xf32>, vector<4x256xf32>, vector<8x256xf32> -> vector<8x256xf32>
    %617 = arith.addf %612, %616 : vector<8x256xf32>
    %618 = vector.broadcast %591 : vector<1x256xf32> to vector<8x256xf32>
    %619 = arith.mulf %618, %617 : vector<8x256xf32>
    %620 = arith.addf %590, %619 : vector<8x256xf32>
    %c20 = arith.constant 20 : index
    %c0_375 = arith.constant 0 : index
    %621 = vector.load %arg4[%c20, %c0_375] : memref<25x256xf32, #tpu.memory_space<vmem>>, vector<1x256xf32>
    %cst_376 = arith.constant 0.000000e+00 : f32
    %622 = vector.broadcast %cst_376 : f32 to vector<8x256xf32>
    %623 = vector.extract_strided_slice %3 {offsets = [0, 64], sizes = [4, 256], strides = [1, 1]} : vector<4x324xf32> to vector<4x256xf32>
    %c20_377 = arith.constant 20 : index
    %c0_378 = arith.constant 0 : index
    %c0_379 = arith.constant 0 : index
    %624 = vector.load %arg3[%c20_377, %c0_378, %c0_379] : memref<125x8x4xf32, #tpu.memory_space<vmem>>, vector<1x8x4xf32>
    %625 = vector.shape_cast %624 : vector<1x8x4xf32> to vector<8x4xf32>
    %cst_380 = arith.constant dense<0.000000e+00> : vector<8x256xf32>
    %626 = tpu.matmul %625, %623, %cst_380 {dimension_numbers = #tpu.dot_dimension_numbers<[1], [0], [0], [1], [0, 0, 1, 1], [], []>} : vector<8x4xf32>, vector<4x256xf32>, vector<8x256xf32> -> vector<8x256xf32>
    %627 = arith.addf %622, %626 : vector<8x256xf32>
    %628 = vector.extract_strided_slice %7 {offsets = [0, 64], sizes = [4, 256], strides = [1, 1]} : vector<4x324xf32> to vector<4x256xf32>
    %c45 = arith.constant 45 : index
    %c0_381 = arith.constant 0 : index
    %c0_382 = arith.constant 0 : index
    %629 = vector.load %arg3[%c45, %c0_381, %c0_382] : memref<125x8x4xf32, #tpu.memory_space<vmem>>, vector<1x8x4xf32>
    %630 = vector.shape_cast %629 : vector<1x8x4xf32> to vector<8x4xf32>
    %cst_383 = arith.constant dense<0.000000e+00> : vector<8x256xf32>
    %631 = tpu.matmul %630, %628, %cst_383 {dimension_numbers = #tpu.dot_dimension_numbers<[1], [0], [0], [1], [0, 0, 1, 1], [], []>} : vector<8x4xf32>, vector<4x256xf32>, vector<8x256xf32> -> vector<8x256xf32>
    %632 = arith.addf %627, %631 : vector<8x256xf32>
    %633 = vector.extract_strided_slice %11 {offsets = [0, 64], sizes = [4, 256], strides = [1, 1]} : vector<4x324xf32> to vector<4x256xf32>
    %c70 = arith.constant 70 : index
    %c0_384 = arith.constant 0 : index
    %c0_385 = arith.constant 0 : index
    %634 = vector.load %arg3[%c70, %c0_384, %c0_385] : memref<125x8x4xf32, #tpu.memory_space<vmem>>, vector<1x8x4xf32>
    %635 = vector.shape_cast %634 : vector<1x8x4xf32> to vector<8x4xf32>
    %cst_386 = arith.constant dense<0.000000e+00> : vector<8x256xf32>
    %636 = tpu.matmul %635, %633, %cst_386 {dimension_numbers = #tpu.dot_dimension_numbers<[1], [0], [0], [1], [0, 0, 1, 1], [], []>} : vector<8x4xf32>, vector<4x256xf32>, vector<8x256xf32> -> vector<8x256xf32>
    %637 = arith.addf %632, %636 : vector<8x256xf32>
    %638 = vector.extract_strided_slice %15 {offsets = [0, 64], sizes = [4, 256], strides = [1, 1]} : vector<4x324xf32> to vector<4x256xf32>
    %c95 = arith.constant 95 : index
    %c0_387 = arith.constant 0 : index
    %c0_388 = arith.constant 0 : index
    %639 = vector.load %arg3[%c95, %c0_387, %c0_388] : memref<125x8x4xf32, #tpu.memory_space<vmem>>, vector<1x8x4xf32>
    %640 = vector.shape_cast %639 : vector<1x8x4xf32> to vector<8x4xf32>
    %cst_389 = arith.constant dense<0.000000e+00> : vector<8x256xf32>
    %641 = tpu.matmul %640, %638, %cst_389 {dimension_numbers = #tpu.dot_dimension_numbers<[1], [0], [0], [1], [0, 0, 1, 1], [], []>} : vector<8x4xf32>, vector<4x256xf32>, vector<8x256xf32> -> vector<8x256xf32>
    %642 = arith.addf %637, %641 : vector<8x256xf32>
    %643 = vector.extract_strided_slice %19 {offsets = [0, 64], sizes = [4, 256], strides = [1, 1]} : vector<4x324xf32> to vector<4x256xf32>
    %c120 = arith.constant 120 : index
    %c0_390 = arith.constant 0 : index
    %c0_391 = arith.constant 0 : index
    %644 = vector.load %arg3[%c120, %c0_390, %c0_391] : memref<125x8x4xf32, #tpu.memory_space<vmem>>, vector<1x8x4xf32>
    %645 = vector.shape_cast %644 : vector<1x8x4xf32> to vector<8x4xf32>
    %cst_392 = arith.constant dense<0.000000e+00> : vector<8x256xf32>
    %646 = tpu.matmul %645, %643, %cst_392 {dimension_numbers = #tpu.dot_dimension_numbers<[1], [0], [0], [1], [0, 0, 1, 1], [], []>} : vector<8x4xf32>, vector<4x256xf32>, vector<8x256xf32> -> vector<8x256xf32>
    %647 = arith.addf %642, %646 : vector<8x256xf32>
    %648 = vector.broadcast %621 : vector<1x256xf32> to vector<8x256xf32>
    %649 = arith.mulf %648, %647 : vector<8x256xf32>
    %650 = arith.addf %620, %649 : vector<8x256xf32>
    %c21 = arith.constant 21 : index
    %c0_393 = arith.constant 0 : index
    %651 = vector.load %arg4[%c21, %c0_393] : memref<25x256xf32, #tpu.memory_space<vmem>>, vector<1x256xf32>
    %cst_394 = arith.constant 0.000000e+00 : f32
    %652 = vector.broadcast %cst_394 : f32 to vector<8x256xf32>
    %653 = vector.extract_strided_slice %3 {offsets = [0, 65], sizes = [4, 256], strides = [1, 1]} : vector<4x324xf32> to vector<4x256xf32>
    %c21_395 = arith.constant 21 : index
    %c0_396 = arith.constant 0 : index
    %c0_397 = arith.constant 0 : index
    %654 = vector.load %arg3[%c21_395, %c0_396, %c0_397] : memref<125x8x4xf32, #tpu.memory_space<vmem>>, vector<1x8x4xf32>
    %655 = vector.shape_cast %654 : vector<1x8x4xf32> to vector<8x4xf32>
    %cst_398 = arith.constant dense<0.000000e+00> : vector<8x256xf32>
    %656 = tpu.matmul %655, %653, %cst_398 {dimension_numbers = #tpu.dot_dimension_numbers<[1], [0], [0], [1], [0, 0, 1, 1], [], []>} : vector<8x4xf32>, vector<4x256xf32>, vector<8x256xf32> -> vector<8x256xf32>
    %657 = arith.addf %652, %656 : vector<8x256xf32>
    %658 = vector.extract_strided_slice %7 {offsets = [0, 65], sizes = [4, 256], strides = [1, 1]} : vector<4x324xf32> to vector<4x256xf32>
    %c46 = arith.constant 46 : index
    %c0_399 = arith.constant 0 : index
    %c0_400 = arith.constant 0 : index
    %659 = vector.load %arg3[%c46, %c0_399, %c0_400] : memref<125x8x4xf32, #tpu.memory_space<vmem>>, vector<1x8x4xf32>
    %660 = vector.shape_cast %659 : vector<1x8x4xf32> to vector<8x4xf32>
    %cst_401 = arith.constant dense<0.000000e+00> : vector<8x256xf32>
    %661 = tpu.matmul %660, %658, %cst_401 {dimension_numbers = #tpu.dot_dimension_numbers<[1], [0], [0], [1], [0, 0, 1, 1], [], []>} : vector<8x4xf32>, vector<4x256xf32>, vector<8x256xf32> -> vector<8x256xf32>
    %662 = arith.addf %657, %661 : vector<8x256xf32>
    %663 = vector.extract_strided_slice %11 {offsets = [0, 65], sizes = [4, 256], strides = [1, 1]} : vector<4x324xf32> to vector<4x256xf32>
    %c71 = arith.constant 71 : index
    %c0_402 = arith.constant 0 : index
    %c0_403 = arith.constant 0 : index
    %664 = vector.load %arg3[%c71, %c0_402, %c0_403] : memref<125x8x4xf32, #tpu.memory_space<vmem>>, vector<1x8x4xf32>
    %665 = vector.shape_cast %664 : vector<1x8x4xf32> to vector<8x4xf32>
    %cst_404 = arith.constant dense<0.000000e+00> : vector<8x256xf32>
    %666 = tpu.matmul %665, %663, %cst_404 {dimension_numbers = #tpu.dot_dimension_numbers<[1], [0], [0], [1], [0, 0, 1, 1], [], []>} : vector<8x4xf32>, vector<4x256xf32>, vector<8x256xf32> -> vector<8x256xf32>
    %667 = arith.addf %662, %666 : vector<8x256xf32>
    %668 = vector.extract_strided_slice %15 {offsets = [0, 65], sizes = [4, 256], strides = [1, 1]} : vector<4x324xf32> to vector<4x256xf32>
    %c96 = arith.constant 96 : index
    %c0_405 = arith.constant 0 : index
    %c0_406 = arith.constant 0 : index
    %669 = vector.load %arg3[%c96, %c0_405, %c0_406] : memref<125x8x4xf32, #tpu.memory_space<vmem>>, vector<1x8x4xf32>
    %670 = vector.shape_cast %669 : vector<1x8x4xf32> to vector<8x4xf32>
    %cst_407 = arith.constant dense<0.000000e+00> : vector<8x256xf32>
    %671 = tpu.matmul %670, %668, %cst_407 {dimension_numbers = #tpu.dot_dimension_numbers<[1], [0], [0], [1], [0, 0, 1, 1], [], []>} : vector<8x4xf32>, vector<4x256xf32>, vector<8x256xf32> -> vector<8x256xf32>
    %672 = arith.addf %667, %671 : vector<8x256xf32>
    %673 = vector.extract_strided_slice %19 {offsets = [0, 65], sizes = [4, 256], strides = [1, 1]} : vector<4x324xf32> to vector<4x256xf32>
    %c121 = arith.constant 121 : index
    %c0_408 = arith.constant 0 : index
    %c0_409 = arith.constant 0 : index
    %674 = vector.load %arg3[%c121, %c0_408, %c0_409] : memref<125x8x4xf32, #tpu.memory_space<vmem>>, vector<1x8x4xf32>
    %675 = vector.shape_cast %674 : vector<1x8x4xf32> to vector<8x4xf32>
    %cst_410 = arith.constant dense<0.000000e+00> : vector<8x256xf32>
    %676 = tpu.matmul %675, %673, %cst_410 {dimension_numbers = #tpu.dot_dimension_numbers<[1], [0], [0], [1], [0, 0, 1, 1], [], []>} : vector<8x4xf32>, vector<4x256xf32>, vector<8x256xf32> -> vector<8x256xf32>
    %677 = arith.addf %672, %676 : vector<8x256xf32>
    %678 = vector.broadcast %651 : vector<1x256xf32> to vector<8x256xf32>
    %679 = arith.mulf %678, %677 : vector<8x256xf32>
    %680 = arith.addf %650, %679 : vector<8x256xf32>
    %c22 = arith.constant 22 : index
    %c0_411 = arith.constant 0 : index
    %681 = vector.load %arg4[%c22, %c0_411] : memref<25x256xf32, #tpu.memory_space<vmem>>, vector<1x256xf32>
    %cst_412 = arith.constant 0.000000e+00 : f32
    %682 = vector.broadcast %cst_412 : f32 to vector<8x256xf32>
    %683 = vector.extract_strided_slice %3 {offsets = [0, 66], sizes = [4, 256], strides = [1, 1]} : vector<4x324xf32> to vector<4x256xf32>
    %c22_413 = arith.constant 22 : index
    %c0_414 = arith.constant 0 : index
    %c0_415 = arith.constant 0 : index
    %684 = vector.load %arg3[%c22_413, %c0_414, %c0_415] : memref<125x8x4xf32, #tpu.memory_space<vmem>>, vector<1x8x4xf32>
    %685 = vector.shape_cast %684 : vector<1x8x4xf32> to vector<8x4xf32>
    %cst_416 = arith.constant dense<0.000000e+00> : vector<8x256xf32>
    %686 = tpu.matmul %685, %683, %cst_416 {dimension_numbers = #tpu.dot_dimension_numbers<[1], [0], [0], [1], [0, 0, 1, 1], [], []>} : vector<8x4xf32>, vector<4x256xf32>, vector<8x256xf32> -> vector<8x256xf32>
    %687 = arith.addf %682, %686 : vector<8x256xf32>
    %688 = vector.extract_strided_slice %7 {offsets = [0, 66], sizes = [4, 256], strides = [1, 1]} : vector<4x324xf32> to vector<4x256xf32>
    %c47 = arith.constant 47 : index
    %c0_417 = arith.constant 0 : index
    %c0_418 = arith.constant 0 : index
    %689 = vector.load %arg3[%c47, %c0_417, %c0_418] : memref<125x8x4xf32, #tpu.memory_space<vmem>>, vector<1x8x4xf32>
    %690 = vector.shape_cast %689 : vector<1x8x4xf32> to vector<8x4xf32>
    %cst_419 = arith.constant dense<0.000000e+00> : vector<8x256xf32>
    %691 = tpu.matmul %690, %688, %cst_419 {dimension_numbers = #tpu.dot_dimension_numbers<[1], [0], [0], [1], [0, 0, 1, 1], [], []>} : vector<8x4xf32>, vector<4x256xf32>, vector<8x256xf32> -> vector<8x256xf32>
    %692 = arith.addf %687, %691 : vector<8x256xf32>
    %693 = vector.extract_strided_slice %11 {offsets = [0, 66], sizes = [4, 256], strides = [1, 1]} : vector<4x324xf32> to vector<4x256xf32>
    %c72 = arith.constant 72 : index
    %c0_420 = arith.constant 0 : index
    %c0_421 = arith.constant 0 : index
    %694 = vector.load %arg3[%c72, %c0_420, %c0_421] : memref<125x8x4xf32, #tpu.memory_space<vmem>>, vector<1x8x4xf32>
    %695 = vector.shape_cast %694 : vector<1x8x4xf32> to vector<8x4xf32>
    %cst_422 = arith.constant dense<0.000000e+00> : vector<8x256xf32>
    %696 = tpu.matmul %695, %693, %cst_422 {dimension_numbers = #tpu.dot_dimension_numbers<[1], [0], [0], [1], [0, 0, 1, 1], [], []>} : vector<8x4xf32>, vector<4x256xf32>, vector<8x256xf32> -> vector<8x256xf32>
    %697 = arith.addf %692, %696 : vector<8x256xf32>
    %698 = vector.extract_strided_slice %15 {offsets = [0, 66], sizes = [4, 256], strides = [1, 1]} : vector<4x324xf32> to vector<4x256xf32>
    %c97 = arith.constant 97 : index
    %c0_423 = arith.constant 0 : index
    %c0_424 = arith.constant 0 : index
    %699 = vector.load %arg3[%c97, %c0_423, %c0_424] : memref<125x8x4xf32, #tpu.memory_space<vmem>>, vector<1x8x4xf32>
    %700 = vector.shape_cast %699 : vector<1x8x4xf32> to vector<8x4xf32>
    %cst_425 = arith.constant dense<0.000000e+00> : vector<8x256xf32>
    %701 = tpu.matmul %700, %698, %cst_425 {dimension_numbers = #tpu.dot_dimension_numbers<[1], [0], [0], [1], [0, 0, 1, 1], [], []>} : vector<8x4xf32>, vector<4x256xf32>, vector<8x256xf32> -> vector<8x256xf32>
    %702 = arith.addf %697, %701 : vector<8x256xf32>
    %703 = vector.extract_strided_slice %19 {offsets = [0, 66], sizes = [4, 256], strides = [1, 1]} : vector<4x324xf32> to vector<4x256xf32>
    %c122 = arith.constant 122 : index
    %c0_426 = arith.constant 0 : index
    %c0_427 = arith.constant 0 : index
    %704 = vector.load %arg3[%c122, %c0_426, %c0_427] : memref<125x8x4xf32, #tpu.memory_space<vmem>>, vector<1x8x4xf32>
    %705 = vector.shape_cast %704 : vector<1x8x4xf32> to vector<8x4xf32>
    %cst_428 = arith.constant dense<0.000000e+00> : vector<8x256xf32>
    %706 = tpu.matmul %705, %703, %cst_428 {dimension_numbers = #tpu.dot_dimension_numbers<[1], [0], [0], [1], [0, 0, 1, 1], [], []>} : vector<8x4xf32>, vector<4x256xf32>, vector<8x256xf32> -> vector<8x256xf32>
    %707 = arith.addf %702, %706 : vector<8x256xf32>
    %708 = vector.broadcast %681 : vector<1x256xf32> to vector<8x256xf32>
    %709 = arith.mulf %708, %707 : vector<8x256xf32>
    %710 = arith.addf %680, %709 : vector<8x256xf32>
    %c23 = arith.constant 23 : index
    %c0_429 = arith.constant 0 : index
    %711 = vector.load %arg4[%c23, %c0_429] : memref<25x256xf32, #tpu.memory_space<vmem>>, vector<1x256xf32>
    %cst_430 = arith.constant 0.000000e+00 : f32
    %712 = vector.broadcast %cst_430 : f32 to vector<8x256xf32>
    %713 = vector.extract_strided_slice %3 {offsets = [0, 67], sizes = [4, 256], strides = [1, 1]} : vector<4x324xf32> to vector<4x256xf32>
    %c23_431 = arith.constant 23 : index
    %c0_432 = arith.constant 0 : index
    %c0_433 = arith.constant 0 : index
    %714 = vector.load %arg3[%c23_431, %c0_432, %c0_433] : memref<125x8x4xf32, #tpu.memory_space<vmem>>, vector<1x8x4xf32>
    %715 = vector.shape_cast %714 : vector<1x8x4xf32> to vector<8x4xf32>
    %cst_434 = arith.constant dense<0.000000e+00> : vector<8x256xf32>
    %716 = tpu.matmul %715, %713, %cst_434 {dimension_numbers = #tpu.dot_dimension_numbers<[1], [0], [0], [1], [0, 0, 1, 1], [], []>} : vector<8x4xf32>, vector<4x256xf32>, vector<8x256xf32> -> vector<8x256xf32>
    %717 = arith.addf %712, %716 : vector<8x256xf32>
    %718 = vector.extract_strided_slice %7 {offsets = [0, 67], sizes = [4, 256], strides = [1, 1]} : vector<4x324xf32> to vector<4x256xf32>
    %c48 = arith.constant 48 : index
    %c0_435 = arith.constant 0 : index
    %c0_436 = arith.constant 0 : index
    %719 = vector.load %arg3[%c48, %c0_435, %c0_436] : memref<125x8x4xf32, #tpu.memory_space<vmem>>, vector<1x8x4xf32>
    %720 = vector.shape_cast %719 : vector<1x8x4xf32> to vector<8x4xf32>
    %cst_437 = arith.constant dense<0.000000e+00> : vector<8x256xf32>
    %721 = tpu.matmul %720, %718, %cst_437 {dimension_numbers = #tpu.dot_dimension_numbers<[1], [0], [0], [1], [0, 0, 1, 1], [], []>} : vector<8x4xf32>, vector<4x256xf32>, vector<8x256xf32> -> vector<8x256xf32>
    %722 = arith.addf %717, %721 : vector<8x256xf32>
    %723 = vector.extract_strided_slice %11 {offsets = [0, 67], sizes = [4, 256], strides = [1, 1]} : vector<4x324xf32> to vector<4x256xf32>
    %c73 = arith.constant 73 : index
    %c0_438 = arith.constant 0 : index
    %c0_439 = arith.constant 0 : index
    %724 = vector.load %arg3[%c73, %c0_438, %c0_439] : memref<125x8x4xf32, #tpu.memory_space<vmem>>, vector<1x8x4xf32>
    %725 = vector.shape_cast %724 : vector<1x8x4xf32> to vector<8x4xf32>
    %cst_440 = arith.constant dense<0.000000e+00> : vector<8x256xf32>
    %726 = tpu.matmul %725, %723, %cst_440 {dimension_numbers = #tpu.dot_dimension_numbers<[1], [0], [0], [1], [0, 0, 1, 1], [], []>} : vector<8x4xf32>, vector<4x256xf32>, vector<8x256xf32> -> vector<8x256xf32>
    %727 = arith.addf %722, %726 : vector<8x256xf32>
    %728 = vector.extract_strided_slice %15 {offsets = [0, 67], sizes = [4, 256], strides = [1, 1]} : vector<4x324xf32> to vector<4x256xf32>
    %c98 = arith.constant 98 : index
    %c0_441 = arith.constant 0 : index
    %c0_442 = arith.constant 0 : index
    %729 = vector.load %arg3[%c98, %c0_441, %c0_442] : memref<125x8x4xf32, #tpu.memory_space<vmem>>, vector<1x8x4xf32>
    %730 = vector.shape_cast %729 : vector<1x8x4xf32> to vector<8x4xf32>
    %cst_443 = arith.constant dense<0.000000e+00> : vector<8x256xf32>
    %731 = tpu.matmul %730, %728, %cst_443 {dimension_numbers = #tpu.dot_dimension_numbers<[1], [0], [0], [1], [0, 0, 1, 1], [], []>} : vector<8x4xf32>, vector<4x256xf32>, vector<8x256xf32> -> vector<8x256xf32>
    %732 = arith.addf %727, %731 : vector<8x256xf32>
    %733 = vector.extract_strided_slice %19 {offsets = [0, 67], sizes = [4, 256], strides = [1, 1]} : vector<4x324xf32> to vector<4x256xf32>
    %c123 = arith.constant 123 : index
    %c0_444 = arith.constant 0 : index
    %c0_445 = arith.constant 0 : index
    %734 = vector.load %arg3[%c123, %c0_444, %c0_445] : memref<125x8x4xf32, #tpu.memory_space<vmem>>, vector<1x8x4xf32>
    %735 = vector.shape_cast %734 : vector<1x8x4xf32> to vector<8x4xf32>
    %cst_446 = arith.constant dense<0.000000e+00> : vector<8x256xf32>
    %736 = tpu.matmul %735, %733, %cst_446 {dimension_numbers = #tpu.dot_dimension_numbers<[1], [0], [0], [1], [0, 0, 1, 1], [], []>} : vector<8x4xf32>, vector<4x256xf32>, vector<8x256xf32> -> vector<8x256xf32>
    %737 = arith.addf %732, %736 : vector<8x256xf32>
    %738 = vector.broadcast %711 : vector<1x256xf32> to vector<8x256xf32>
    %739 = arith.mulf %738, %737 : vector<8x256xf32>
    %740 = arith.addf %710, %739 : vector<8x256xf32>
    %c24 = arith.constant 24 : index
    %c0_447 = arith.constant 0 : index
    %741 = vector.load %arg4[%c24, %c0_447] : memref<25x256xf32, #tpu.memory_space<vmem>>, vector<1x256xf32>
    %cst_448 = arith.constant 0.000000e+00 : f32
    %742 = vector.broadcast %cst_448 : f32 to vector<8x256xf32>
    %743 = vector.extract_strided_slice %3 {offsets = [0, 68], sizes = [4, 256], strides = [1, 1]} : vector<4x324xf32> to vector<4x256xf32>
    %c24_449 = arith.constant 24 : index
    %c0_450 = arith.constant 0 : index
    %c0_451 = arith.constant 0 : index
    %744 = vector.load %arg3[%c24_449, %c0_450, %c0_451] : memref<125x8x4xf32, #tpu.memory_space<vmem>>, vector<1x8x4xf32>
    %745 = vector.shape_cast %744 : vector<1x8x4xf32> to vector<8x4xf32>
    %cst_452 = arith.constant dense<0.000000e+00> : vector<8x256xf32>
    %746 = tpu.matmul %745, %743, %cst_452 {dimension_numbers = #tpu.dot_dimension_numbers<[1], [0], [0], [1], [0, 0, 1, 1], [], []>} : vector<8x4xf32>, vector<4x256xf32>, vector<8x256xf32> -> vector<8x256xf32>
    %747 = arith.addf %742, %746 : vector<8x256xf32>
    %748 = vector.extract_strided_slice %7 {offsets = [0, 68], sizes = [4, 256], strides = [1, 1]} : vector<4x324xf32> to vector<4x256xf32>
    %c49 = arith.constant 49 : index
    %c0_453 = arith.constant 0 : index
    %c0_454 = arith.constant 0 : index
    %749 = vector.load %arg3[%c49, %c0_453, %c0_454] : memref<125x8x4xf32, #tpu.memory_space<vmem>>, vector<1x8x4xf32>
    %750 = vector.shape_cast %749 : vector<1x8x4xf32> to vector<8x4xf32>
    %cst_455 = arith.constant dense<0.000000e+00> : vector<8x256xf32>
    %751 = tpu.matmul %750, %748, %cst_455 {dimension_numbers = #tpu.dot_dimension_numbers<[1], [0], [0], [1], [0, 0, 1, 1], [], []>} : vector<8x4xf32>, vector<4x256xf32>, vector<8x256xf32> -> vector<8x256xf32>
    %752 = arith.addf %747, %751 : vector<8x256xf32>
    %753 = vector.extract_strided_slice %11 {offsets = [0, 68], sizes = [4, 256], strides = [1, 1]} : vector<4x324xf32> to vector<4x256xf32>
    %c74 = arith.constant 74 : index
    %c0_456 = arith.constant 0 : index
    %c0_457 = arith.constant 0 : index
    %754 = vector.load %arg3[%c74, %c0_456, %c0_457] : memref<125x8x4xf32, #tpu.memory_space<vmem>>, vector<1x8x4xf32>
    %755 = vector.shape_cast %754 : vector<1x8x4xf32> to vector<8x4xf32>
    %cst_458 = arith.constant dense<0.000000e+00> : vector<8x256xf32>
    %756 = tpu.matmul %755, %753, %cst_458 {dimension_numbers = #tpu.dot_dimension_numbers<[1], [0], [0], [1], [0, 0, 1, 1], [], []>} : vector<8x4xf32>, vector<4x256xf32>, vector<8x256xf32> -> vector<8x256xf32>
    %757 = arith.addf %752, %756 : vector<8x256xf32>
    %758 = vector.extract_strided_slice %15 {offsets = [0, 68], sizes = [4, 256], strides = [1, 1]} : vector<4x324xf32> to vector<4x256xf32>
    %c99 = arith.constant 99 : index
    %c0_459 = arith.constant 0 : index
    %c0_460 = arith.constant 0 : index
    %759 = vector.load %arg3[%c99, %c0_459, %c0_460] : memref<125x8x4xf32, #tpu.memory_space<vmem>>, vector<1x8x4xf32>
    %760 = vector.shape_cast %759 : vector<1x8x4xf32> to vector<8x4xf32>
    %cst_461 = arith.constant dense<0.000000e+00> : vector<8x256xf32>
    %761 = tpu.matmul %760, %758, %cst_461 {dimension_numbers = #tpu.dot_dimension_numbers<[1], [0], [0], [1], [0, 0, 1, 1], [], []>} : vector<8x4xf32>, vector<4x256xf32>, vector<8x256xf32> -> vector<8x256xf32>
    %762 = arith.addf %757, %761 : vector<8x256xf32>
    %763 = vector.extract_strided_slice %19 {offsets = [0, 68], sizes = [4, 256], strides = [1, 1]} : vector<4x324xf32> to vector<4x256xf32>
    %c124 = arith.constant 124 : index
    %c0_462 = arith.constant 0 : index
    %c0_463 = arith.constant 0 : index
    %764 = vector.load %arg3[%c124, %c0_462, %c0_463] : memref<125x8x4xf32, #tpu.memory_space<vmem>>, vector<1x8x4xf32>
    %765 = vector.shape_cast %764 : vector<1x8x4xf32> to vector<8x4xf32>
    %cst_464 = arith.constant dense<0.000000e+00> : vector<8x256xf32>
    %766 = tpu.matmul %765, %763, %cst_464 {dimension_numbers = #tpu.dot_dimension_numbers<[1], [0], [0], [1], [0, 0, 1, 1], [], []>} : vector<8x4xf32>, vector<4x256xf32>, vector<8x256xf32> -> vector<8x256xf32>
    %767 = arith.addf %762, %766 : vector<8x256xf32>
    %768 = vector.broadcast %741 : vector<1x256xf32> to vector<8x256xf32>
    %769 = arith.mulf %768, %767 : vector<8x256xf32>
    %770 = arith.addf %740, %769 : vector<8x256xf32>
    %c0_465 = arith.constant 0 : index
    %c0_466 = arith.constant 0 : index
    %771 = vector.load %arg5[%c0_465, %c0_466] : memref<8x1xf32, #tpu.memory_space<vmem>>, vector<8x1xf32>
    %772 = vector.broadcast %771 : vector<8x1xf32> to vector<8x256xf32>
    %773 = arith.addf %770, %772 : vector<8x256xf32>
    %c0_467 = arith.constant 0 : index
    %c0_468 = arith.constant 0 : index
    %c0_469 = arith.constant 0 : index
    %c0_470 = arith.constant 0 : index
    %774 = vector.load %arg6[%c0_467, %c0_468, %c0_469, %c0_470] : memref<1x1x8x256xf32, #tpu.memory_space<vmem>>, vector<1x1x8x256xf32>
    %775 = vector.shape_cast %774 : vector<1x1x8x256xf32> to vector<8x256xf32>
    %776 = vector.shape_cast %773 : vector<8x256xf32> to vector<1x1x8x256xf32>
    tpu.vector_store %arg6[%c0_467, %c0_468, %c0_469, %c0_470], %776 {strides = array<i32>} : memref<1x1x8x256xf32, #tpu.memory_space<vmem>>, vector<1x1x8x256xf32>,
    return
  }
  func.func @transform_0(%arg0: i32, %arg1: i32) -> (i32, i32, i32, i32) {
    %c0_i32 = arith.constant 0 : i32
    %c0_i32_0 = arith.constant 0 : i32
    %c0_i32_1 = arith.constant 0 : i32
    %c0_i32_2 = arith.constant 0 : i32
    return %arg0, %c0_i32, %c0_i32_0, %c0_i32_1 : i32, i32, i32, i32
  }
  func.func @transform_1(%arg0: i32, %arg1: i32) -> (i32, i32, i32) {
    %c0_i32 = arith.constant 0 : i32
    %c0_i32_0 = arith.constant 0 : i32
    %c0_i32_1 = arith.constant 0 : i32
    %c0_i32_2 = arith.constant 0 : i32
    return %c0_i32, %c0_i32_0, %c0_i32_1 : i32, i32, i32
  }
  func.func @transform_2(%arg0: i32, %arg1: i32) -> (i32, i32) {
    %c0_i32 = arith.constant 0 : i32
    %c0_i32_0 = arith.constant 0 : i32
    %c0_i32_1 = arith.constant 0 : i32
    return %c0_i32, %c0_i32_0 : i32, i32
  }
  func.func @transform_3(%arg0: i32, %arg1: i32) -> (i32, i32) {
    %c0_i32 = arith.constant 0 : i32
    %c0_i32_0 = arith.constant 0 : i32
    %c0_i32_1 = arith.constant 0 : i32
    return %c0_i32, %c0_i32_0 : i32, i32
  }
  func.func @transform_4(%arg0: i32, %arg1: i32) -> (i32, i32, i32, i32) {
    %c0_i32 = arith.constant 0 : i32
    %c0_i32_0 = arith.constant 0 : i32
    %c0_i32_1 = arith.constant 0 : i32
    return %arg0, %arg1, %c0_i32, %c0_i32_0 : i32, i32, i32, i32
  }
}

</mosaic_0001>

<bundles_post_ra>
// kernel: conv3d_same5.1
= control target key start
LH: loop header
LB: loop body
LE: loop exit
PB: predicated region body
PF: predicated region fallthrough
CT: control target
= control target key end

     0   :  { %s12861_s15 = smov 0   ;;  %s12863_s16 = smov 0   ;;  %s14998_s0 = inlined_call_operand.vmem [shape: f32[2,20,4,324], index: 0, kind: input, shape index: {}]   ;;  %s14999_s1 = inlined_call_operand.vmem [shape: f32[125,8,4], index: 1, kind: input, shape index: {}]   ;;  %s15000_s2 = inlined_call_operand.vmem [shape: f32[25,256], index: 2, kind: input, shape index: {}]   ;;  %s15001_s3 = inlined_call_operand.vmem [shape: f32[8,1], index: 3, kind: input, shape index: {}]   ;;  %s15002_s4 = inlined_call_operand.vmem [shape: f32[2,16,8,256], index: 4, kind: output, shape index: {}]  }
   0x1   :  { %s12865_s17 = smov 0   ;;  %s12867_s18 = smov 0  }
   0x2   :  { %s12869_s19 = smov 0  }
   0x3 LB: > { %s23_s20 = sadd.s32 1, %s12800_s17  ;;  %s26_s21 = sadd.s32 1, %s12804_s18  ;;  %s12808_s19 = sphi %s12869_s19, %s14_s19   ;;  %s12804_s18 = sphi %s12867_s18, %s15006_s18   ;;  %s12800_s17 = sphi %s12865_s17, %s15005_s17   ;;  %s12796_s16 = sphi %s12863_s16, %s15004_s16   ;;  %s12792_s15 = sphi %s12861_s15, %s15003_s15  }
   0x4   : > { %p24_p0 = scmp.ge.s32.totalorder %s23_s20, 16  ;;  %p11937_p1 = scmp.ge.s32.totalorder %s12808_s19, 1 }
   0x5   : > { %p176_p2 = scmp.lt.s32.totalorder %s12808_s19, 33 }
   0x6   : > { %s15008_s20 = smov (%p24_p0, %s23_s20), 0  ;;  %s15010_s21 = smov (!%p24_p0, %s26_s21), %s12804_s18 }
   0x7   : > { %p177_p3 = pnand %p11937_p1, %p176_p2  ;;  %p28_p4 = scmp.ge.s32.totalorder %s15010_s21, 2 }
   0x8   : > { %p206_p5 = scmp.lt.s32.totalorder (!%p177_p3), %s12796_s16, 1  ;;  %v12810_v0 = vmov (!%p177_p3), 0.0   ;;  %s12476_s22 = smul.u32 (!%p177_p3), 12, %s12792_s15  ;;  %vm259_vm0 = vcmask (!%p177_p3), 1043456   ;;  %v11951_v7 = vld [vmem:[%s14999_s1 + $0xc8] sm:$0xff] (!%p177_p3)  ;;  %vm255_vm1 = vcmask (!%p177_p3), 31744  }
   0x9   : > { %s15012_s21 = smov (%p28_p4, %s15010_s21), 0  ;;  %180 = sbr.rel (%p177_p3) target bundleno = 1077 (0x435), region = 36 }
   0xa   : > { %328 = vmatprep.mubr.f32.mxu1 (!%p177_p3), %v12810_v0  ;;  %490 = vmatprep.mubr.f32.mxu0 (!%p177_p3), %v12810_v0  ;;  %s12811_s28 = smov (!%p177_p3), 127   ;;  %v11958_v9 = vld [vmem:[%s14999_s1 + $0x190] sm:$0xff] (!%p177_p3)  ;;  %v250_v15 = vld [vmem:[%s14999_s1] sm:$0xff] (!%p177_p3)  ;;  %v11962_v16 = vld [vmem:[%s14999_s1 + $0x258] sm:$0xff] (!%p177_p3)  ;;  %s12812_s11 = smov (!%p177_p3), 126   ;;  %vm695_vm2 = vcmask (!%p177_p3), 1039360  }
   0xb   : > { %v11966_v18 = vld [vmem:[%s14999_s1 + $0x320] sm:$0xff] (!%p177_p3)  ;;  %s12813_s14 = smov (!%p177_p3), 125   ;;  %v11972_v27 = vld [vmem:[%s14999_s1 + $0xd0] sm:$0xff] (!%p177_p3)  ;;  %v11971_v34 = vld [vmem:[%s14999_s1 + $0x8] sm:$0xff] (!%p177_p3)  ;;  %vm1163_vm3 = vcmask (!%p177_p3), 1031168   ;;  %vm1627_vm4 = vcmask (!%p177_p3), 1022976  }
   0xc   : > { %v11993_v41 = vld [vmem:[%s14999_s1 + $0xd8] sm:$0xff] (!%p177_p3)  ;;  %v11992_v50 = vld [vmem:[%s14999_s1 + $0x10] sm:$0xff] (!%p177_p3)  ;;  %v12000_v57 = vld [vmem:[%s14999_s1 + $0x1a0] sm:$0xff] (!%p177_p3)  ;;  %s12817_s5 = smov (!%p177_p3), 110   ;;  %vm2091_vm5 = vcmask (!%p177_p3), 1014784   ;;  %vm2555_vm6 = vcmask (!%p177_p3), 916480  }
   0xd   : > { %v11979_v43 = vld [vmem:[%s14999_s1 + $0x198] sm:$0xff] (!%p177_p3)  ;;  %v11983_v62 = vld [vmem:[%s14999_s1 + $0x260] sm:$0xff] (!%p177_p3)  ;;  %s12819_s9 = smov (!%p177_p3), 108   ;;  %vm3019_vm7 = vcmask (!%p177_p3), 908288   ;;  %vm3483_vm8 = vcmask (!%p177_p3), 900096   ;;  %s12821_s13 = smov (!%p177_p3), 95  }
   0xe   : > { %vm3947_vm9 = vcmask (!%p177_p3), 891904   ;;  %vm4411_vm10 = vcmask (!%p177_p3), 883712   ;;  %s12823_s25 = smov (!%p177_p3), 93   ;;  %vm4875_vm11 = vcmask (!%p177_p3), 785408   ;;  %vm5339_vm12 = vcmask (!%p177_p3), 777216   ;;  %s12825_s30 = smov (!%p177_p3), 80  }
   0xf   : > { %vm5803_vm13 = vcmask (!%p177_p3), 769024   ;;  %vm6267_vm14 = vcmask (!%p177_p3), 760832   ;;  %vm6731_vm15 = vcmask (!%p177_p3), 752640   ;;  %s12828_s29 = smov (!%p177_p3), 77   ;;  %s12831_s24 = smov (!%p177_p3), 63  }
  0x10   : > { %s15014_s16 = smov (!%p206_p5, %s12796_s16), 1  ;;  %s12833_s8 = smov 61  }
  0x11   : > { %s12677_s23 = smul.u32 240, %s15014_s16  ;;  %p213_p6 = scmp.lt.s32.totalorder %s12792_s15, 15 }
  0x12   : > { %s11940_s6 = sshll.u32 %s15014_s16, 5 }
  0x13   : > { %s210_s26 = scalar_lea.vmem %s14998_s0, %s12677_s23  ;;  %s12815_s23 = smov 112  }
  0x14   : > { %s12902_s27 = scalar_lea.vmem %s210_s26, %s12476_s22  ;;  %s12814_s22 = smov 124  }
  0x15   : > { %v12905_v1 = vld [vmem:[%s12902_s27 + $0x14] sm:$0xf]  ;;  %v12908_v2 = vld [vmem:[%s12902_s27 + $0x18] sm:$0xff]  ;;  %v12913_v3 = vld [vmem:[%s12902_s27 + $0xc] sm:$0xff]  ;;  %s12816_s26 = smov 111   ;;  %s15016_s15 = smov (!%p213_p6, %s12792_s15), 15 }
  0x16   : > { %693 = vrot.lane.b32.xlu1 %v12905_v1, %s12811_s28  ;;  %v12917_v4 = vcombine.high %v12908_v2, %v12908_v2  ;;  %689 = vrot.lane.b32.xlu0 %v12913_v3, %s12811_s28  ;;  %v12923_v5 = vcombine.high %v12913_v3, %v12913_v3  ;;  %v12926_v6 = vld [vmem:[%s12902_s27] sm:$0xff]  ;;  %v12949_v10 = vld [vmem:[%s12902_s27 + $0x30] sm:$0xff] }
  0x17   : > { %v12941_v8 = vcombine.high %v12926_v6, %v12926_v6  ;;  %v12954_v11 = vld [vmem:[%s12902_s27 + $0x8] sm:$0xf]  ;;  %v12974_v14 = vcombine.high %v12949_v10, %v12949_v10  ;;  %v13003_v17 = vld [vmem:[%s12902_s27 + $0x20] sm:$0xf]  ;;  %v13025_v19 = vld [vmem:[%s12902_s27 + $0x2c] sm:$0xf] }
  0x18   : > { %11959 = vmatprep.subr.msk.mxu0 %vm259_vm0, %v12917_v4  ;;  %11952 = vmatprep.subr.msk.mxu1 %vm259_vm0, %v12923_v5  ;;  %v12957_v12 = vld [vmem:[%s12902_s27 + $0x24] sm:$0xff]  ;;  %v13033_v20 = vld [vmem:[%s12902_s27 + $0x38] sm:$0xf] }
  0x19   : > { %11960 = vmatpush1.msk.msra.mxu0 %vm259_vm0, %v12908_v2  ;;  %11953 = vmatpush1.msk.msra.mxu1 %vm259_vm0, %v12913_v3  ;;  %v12962_v13 = vcombine.high %v12957_v12, %v12957_v12 }
  0x1a   : > { %777 = vrot.lane.b32.xlu1 %v12926_v6, %s12811_s28  ;;  %691 = vrot.lane.b32.xlu0 %v12923_v5, %s12811_s28 }
  0x1b   : > { %11954 = vmatmul.mubr.msk.f32.vlgmr.msra.gmra.mrb[0].mxu1 %vm255_vm1, %v11951_v7  ;;  %11955 = vmatprep.subr.msk.mxu1 %vm259_vm0, %v12941_v8 }
  0x1c   : > { %408 = vmatprep.mubr.f32.mxu1 %v12810_v0  ;;  %11956 = vmatpush1.msk.msra.mxu1 %vm259_vm0, %v12926_v6 }
  0x1d   : > { %11961 = vmatmul.mubr.msk.f32.vlgmr.msra.gmra.mrb[0].mxu0 %vm255_vm1, %v11958_v9  ;;  %11963 = vmatprep.subr.msk.mxu0 %vm259_vm0, %v12962_v13 }
  0x1e   : > { %781 = vrot.lane.b32.xlu1 %v12954_v11, %s12811_s28  ;;  %779 = vrot.lane.b32.xlu0 %v12941_v8, %s12811_s28 }
  0x1f   : > { %11964 = vmatpush1.msk.msra.mxu0 %vm259_vm0, %v12957_v12  ;;  %574 = vmatprep.mubr.f32.mxu0 %v12810_v0 }
  0x20   : > { %11967 = vmatprep.subr.msk.mxu0 %vm259_vm0, %v12974_v14 }
  0x22   : > { %868 = vrot.lane.b32.xlu1 %v12917_v4, %s12811_s28  ;;  %866 = vrot.lane.b32.xlu0 %v12908_v2, %s12811_s28 }
  0x23   : > { %11957 = vmatmul.mubr.msk.f32.vlgmr.msra.gmra.mrb[0].mxu1 %vm255_vm1, %v250_v15 }
  0x24   : > { %769 = vmatprep.mubr.f32.mxu1 %v12810_v0 }
  0x25   : > { %11965 = vmatmul.mubr.msk.f32.vlgmr.msra.gmra.mrb[0].mxu0 %vm255_vm1, %v11962_v16 }
  0x26   : > { %1161 = vrot.lane.b32.xlu1 %v12905_v1, %s12812_s11  ;;  %11968 = vmatpush1.msk.msra.mxu0 %vm259_vm0, %v12949_v10 }
  0x27   : > { %1159 = vrot.lane.b32.xlu0 %v12923_v5, %s12812_s11  ;;  %658 = vmatprep.mubr.f32.mxu0 %v12810_v0 }
  0x2a   : > { %870 = vrot.lane.b32.xlu1 %v13003_v17, %s12811_s28 }
  0x2b   : > { %1157 = vrot.lane.b32.xlu0 %v12913_v3, %s12812_s11 }
  0x2d   : > { %11969 = vmatmul.mubr.msk.f32.vlgmr.msra.gmra.mrb[0].mxu0 %vm255_vm1, %v11966_v18  ;;  %v12004_v18 = vld [vmem:[%s14999_s1 + $0x268] sm:$0xff] }
  0x2e   : > { %1248 = vrot.lane.b32.xlu1 %v12954_v11, %s12812_s11  ;;  %1237 = vmatprep.mubr.f32.mxu0 %v12810_v0 }
  0x2f   : > { %1246 = vrot.lane.b32.xlu0 %v12941_v8, %s12812_s11 }
  0x32   : > { %957 = vrot.lane.b32.xlu1 %v12957_v12, %s12811_s28 }
  0x33   : > { %1244 = vrot.lane.b32.xlu0 %v12926_v6, %s12812_s11 }
  0x36   : > { %1336 = vrot.lane.b32.xlu1 %v13003_v17, %s12812_s11 }
  0x37   : > { %1334 = vrot.lane.b32.xlu0 %v12917_v4, %s12812_s11 }
  0x3a   : > { %959 = vrot.lane.b32.xlu1 %v12962_v13, %s12811_s28 }
  0x3b   : > { %1332 = vrot.lane.b32.xlu0 %v12908_v2, %s12812_s11 }
  0x3e   : > { %1424 = vrot.lane.b32.xlu1 %v12962_v13, %s12812_s11 }
  0x3f   : > { %961 = vrot.lane.b32.xlu0 %v13025_v19, %s12811_s28 }
  0x42   : > { %1422 = vrot.lane.b32.xlu1 %v12957_v12, %s12812_s11 }
  0x43   : > { %1426 = vrot.lane.b32.xlu0 %v13025_v19, %s12812_s11 }
  0x46   : > { %1052 = vrot.lane.b32.xlu1 %v13033_v20, %s12811_s28 }
  0x47   : > { %1050 = vrot.lane.b32.xlu0 %v12974_v14, %s12811_s28 }
  0x4a   : > { %1514 = vrot.lane.b32.xlu1 %v12974_v14, %s12812_s11 }
  0x4b   : > { %1048 = vrot.lane.b32.xlu0 %v12949_v10, %s12811_s28 }
  0x4e   : > { %1512 = vrot.lane.b32.xlu1 %v12949_v10, %s12812_s11 }
  0x4f   : > { %1516 = vrot.lane.b32.xlu0 %v13033_v20, %s12812_s11  ;;  %s12829_s11 = smov 76  }
  0x52   : > { %1625 = vrot.lane.b32.xlu1 %v12905_v1, %s12813_s14 }
  0x53   : > { %1623 = vrot.lane.b32.xlu0 %v12923_v5, %s12813_s14 }
  0x56   : > { %2087 = vrot.lane.b32.xlu1 %v12923_v5, %s12814_s22 }
  0x57   : > { %1621 = vrot.lane.b32.xlu0 %v12913_v3, %s12813_s14 }
  0x5a   : > { %2085 = vrot.lane.b32.xlu1 %v12913_v3, %s12814_s22 }
  0x5b   : > { %2089 = vrot.lane.b32.xlu0 %v12905_v1, %s12814_s22 }
  0x5e   : > { %1712 = vrot.lane.b32.xlu1 %v12954_v11, %s12813_s14 }
  0x5f   : > { %1710 = vrot.lane.b32.xlu0 %v12941_v8, %s12813_s14 }
  0x62   : > { %2174 = vrot.lane.b32.xlu1 %v12941_v8, %s12814_s22 }
  0x63   : > { %1708 = vrot.lane.b32.xlu0 %v12926_v6, %s12813_s14 }
  0x66   : > { %2172 = vrot.lane.b32.xlu1 %v12926_v6, %s12814_s22 }
  0x67   : > { %2176 = vrot.lane.b32.xlu0 %v12954_v11, %s12814_s22 }
  0x6a   : > { %1800 = vrot.lane.b32.xlu1 %v13003_v17, %s12813_s14 }
  0x6b   : > { %1798 = vrot.lane.b32.xlu0 %v12917_v4, %s12813_s14 }
  0x6e   : > { %2262 = vrot.lane.b32.xlu1 %v12917_v4, %s12814_s22 }
  0x6f   : > { %1796 = vrot.lane.b32.xlu0 %v12908_v2, %s12813_s14 }
  0x72   : > { %2260 = vrot.lane.b32.xlu1 %v12908_v2, %s12814_s22 }
  0x73   : > { %2264 = vrot.lane.b32.xlu0 %v13003_v17, %s12814_s22 }
  0x76   : > { %1890 = vrot.lane.b32.xlu1 %v13025_v19, %s12813_s14 }
  0x77   : > { %1888 = vrot.lane.b32.xlu0 %v12962_v13, %s12813_s14 }
  0x7a   : > { %2352 = vrot.lane.b32.xlu1 %v12962_v13, %s12814_s22 }
  0x7b   : > { %1886 = vrot.lane.b32.xlu0 %v12957_v12, %s12813_s14 }
  0x7e   : > { %2350 = vrot.lane.b32.xlu1 %v12957_v12, %s12814_s22 }
  0x7f   : > { %2354 = vrot.lane.b32.xlu0 %v13025_v19, %s12814_s22 }
  0x82   : > { %1980 = vrot.lane.b32.xlu1 %v13033_v20, %s12813_s14 }
  0x83   : > { %1978 = vrot.lane.b32.xlu0 %v12974_v14, %s12813_s14 }
  0x86   : > { %2442 = vrot.lane.b32.xlu1 %v12974_v14, %s12814_s22 }
  0x87   : > { %1976 = vrot.lane.b32.xlu0 %v12949_v10, %s12813_s14 }
  0x88   : > { %v694_v21 = vpop.permute.xlu1 %693  ;;  %v690_v22 = vpop.permute.xlu0 %689 }
  0x8a   : > { %2440 = vrot.lane.b32.xlu1 %v12949_v10, %s12814_s22 }
  0x8b   : > { %2444 = vrot.lane.b32.xlu0 %v13033_v20, %s12814_s22 }
  0x8c   : > { %v778_v23 = vpop.permute.xlu1 %777  ;;  %v692_v24 = vpop.permute.xlu0 %691 }
  0x8d   : > { %v696_v25 = vsel %vm695_vm2, %v690_v22, %v692_v24  ;;  %v697_v26 = vsel %vm695_vm2, %v692_v24, %v694_v21 }
  0x8e   : > { %2553 = vrot.lane.b32.xlu1 %v12905_v1, %s12815_s23  ;;  %11973 = vmatprep.subr.msk.mxu1 %vm259_vm0, %v697_v26  ;;  %v11987_v26 = vld [vmem:[%s14999_s1 + $0x328] sm:$0xff] }
  0x8f   : > { %2551 = vrot.lane.b32.xlu0 %v12923_v5, %s12815_s23  ;;  %11974 = vmatpush1.msk.msra.mxu1 %vm259_vm0, %v696_v25 }
  0x90   : > { %v782_v28 = vpop.permute.xlu1 %781  ;;  %v780_v29 = vpop.permute.xlu0 %779  ;;  %11975 = vmatmul.mubr.msk.f32.vlgmr.msra.gmra.mrb[2].mxu1 %vm255_vm1, %v11972_v27 }
  0x91   : > { %v783_v30 = vsel %vm695_vm2, %v778_v23, %v780_v29  ;;  %v784_v31 = vsel %vm695_vm2, %v780_v29, %v782_v28  ;;  %856 = vmatprep.mubr.f32.mxu1 %v12810_v0 }
  0x92   : > { %3015 = vrot.lane.b32.xlu1 %v12923_v5, %s12816_s26  ;;  %11976 = vmatprep.subr.msk.mxu1 %vm259_vm0, %v784_v31 }
  0x93   : > { %2549 = vrot.lane.b32.xlu0 %v12913_v3, %s12815_s23  ;;  %11977 = vmatpush1.msk.msra.mxu1 %vm259_vm0, %v783_v30 }
  0x94   : > { %v869_v32 = vpop.permute.xlu1 %868  ;;  %v867_v33 = vpop.permute.xlu0 %866 }
  0x95   : > { %v872_v44 = vsel %vm695_vm2, %v867_v33, %v869_v32 }
  0x96   : > { %3013 = vrot.lane.b32.xlu1 %v12913_v3, %s12816_s26 }
  0x97   : > { %3017 = vrot.lane.b32.xlu0 %v12905_v1, %s12816_s26 }
  0x98   : > { %v1162_v35 = vpop.permute.xlu1 %1161  ;;  %11978 = vmatmul.mubr.msk.f32.vlgmr.msra.gmra.mrb[2].mxu1 %vm255_vm1, %v11971_v34 }
  0x99   : > { %v1160_v36 = vpop.permute.xlu0 %1159  ;;  %945 = vmatprep.mubr.f32.mxu1 %v12810_v0 }
  0x9a   : > { %2640 = vrot.lane.b32.xlu1 %v12954_v11, %s12815_s23  ;;  %v1165_v37 = vsel %vm1163_vm3, %v1160_v36, %v1162_v35 }
  0x9b   : > { %2638 = vrot.lane.b32.xlu0 %v12941_v8, %s12815_s23  ;;  %11994 = vmatprep.subr.msk.mxu0 %vm259_vm0, %v1165_v37 }
  0x9c   : > { %v871_v38 = vpop.permute.xlu1 %870 }
  0x9d   : > { %v873_v39 = vsel %vm695_vm2, %v869_v32, %v871_v38  ;;  %v1158_v40 = vpop.permute.xlu0 %1157  ;;  %v12008_v32 = vld [vmem:[%s14999_s1 + $0x330] sm:$0xff]  ;;  %v12014_v38 = vld [vmem:[%s14999_s1 + $0xe0] sm:$0xff] }
  0x9e   : > { %v1164_v42 = vsel %vm1163_vm3, %v1158_v40, %v1160_v36  ;;  %3102 = vrot.lane.b32.xlu1 %v12941_v8, %s12816_s26  ;;  %11980 = vmatprep.subr.msk.mxu1 %vm259_vm0, %v873_v39 }
  0x9f   : > { %2636 = vrot.lane.b32.xlu0 %v12926_v6, %s12815_s23  ;;  %11995 = vmatpush1.msk.msra.mxu0 %vm259_vm0, %v1164_v42 }
  0xa0   : > { %11981 = vmatpush1.msk.msra.mxu1 %vm259_vm0, %v872_v44  ;;  %v1249_v45 = vpop.permute.xlu1 %1248  ;;  %11996 = vmatmul.mubr.msk.f32.vlgmr.msra.gmra.mrb[2].mxu0 %vm255_vm1, %v11993_v41  ;;  %v12035_v44 = vld [vmem:[%s14999_s1 + $0xe8] sm:$0xff] }
  0xa1   : > { %v1247_v46 = vpop.permute.xlu0 %1246  ;;  %1323 = vmatprep.mubr.f32.mxu0 %v12810_v0  ;;  %11982 = vmatmul.mubr.msk.f32.vlgmr.msra.gmra.mrb[2].mxu1 %vm255_vm1, %v11979_v43 }
  0xa2   : > { %3100 = vrot.lane.b32.xlu1 %v12926_v6, %s12816_s26  ;;  %v1251_v47 = vsel %vm1163_vm3, %v1247_v46, %v1249_v45  ;;  %1036 = vmatprep.mubr.f32.mxu1 %v12810_v0 }
  0xa3   : > { %3104 = vrot.lane.b32.xlu0 %v12954_v11, %s12816_s26  ;;  %11997 = vmatprep.subr.msk.mxu0 %vm259_vm0, %v1251_v47 }
  0xa4   : > { %v958_v48 = vpop.permute.xlu1 %957 }
  0xa5   : > { %v1245_v49 = vpop.permute.xlu0 %1244 }
  0xa6   : > { %v1250_v51 = vsel %vm1163_vm3, %v1245_v49, %v1247_v46  ;;  %2728 = vrot.lane.b32.xlu1 %v13003_v17, %s12815_s23 }
  0xa7   : > { %2726 = vrot.lane.b32.xlu0 %v12917_v4, %s12815_s23  ;;  %11998 = vmatpush1.msk.msra.mxu0 %vm259_vm0, %v1250_v51 }
  0xa8   : > { %v1337_v52 = vpop.permute.xlu1 %1336  ;;  %11999 = vmatmul.mubr.msk.f32.vlgmr.msra.gmra.mrb[2].mxu0 %vm255_vm1, %v11992_v50  ;;  %v12013_v50 = vld [vmem:[%s14999_s1 + $0x18] sm:$0xff] }
  0xa9   : > { %v1335_v53 = vpop.permute.xlu0 %1334  ;;  %1411 = vmatprep.mubr.f32.mxu0 %v12810_v0 }
  0xaa   : > { %3190 = vrot.lane.b32.xlu1 %v12917_v4, %s12816_s26  ;;  %v1339_v54 = vsel %vm1163_vm3, %v1335_v53, %v1337_v52 }
  0xab   : > { %2724 = vrot.lane.b32.xlu0 %v12908_v2, %s12815_s23  ;;  %12001 = vmatprep.subr.msk.mxu0 %vm259_vm0, %v1339_v54 }
  0xac   : > { %v960_v55 = vpop.permute.xlu1 %959 }
  0xad   : > { %v1333_v56 = vpop.permute.xlu0 %1332  ;;  %v963_v63 = vsel %vm695_vm2, %v958_v48, %v960_v55 }
  0xae   : > { %v1338_v58 = vsel %vm1163_vm3, %v1333_v56, %v1335_v53  ;;  %3188 = vrot.lane.b32.xlu1 %v12908_v2, %s12816_s26  ;;  %v12034_v56 = vld [vmem:[%s14999_s1 + $0x20] sm:$0xff] }
  0xaf   : > { %3192 = vrot.lane.b32.xlu0 %v13003_v17, %s12816_s26  ;;  %12002 = vmatpush1.msk.msra.mxu0 %vm259_vm0, %v1338_v58 }
  0xb0   : > { %v1425_v59 = vpop.permute.xlu1 %1424  ;;  %12003 = vmatmul.mubr.msk.f32.vlgmr.msra.gmra.mrb[2].mxu0 %vm255_vm1, %v12000_v57 }
  0xb1   : > { %v962_v60 = vpop.permute.xlu0 %961  ;;  %1501 = vmatprep.mubr.f32.mxu0 %v12810_v0 }
  0xb2   : > { %v964_v61 = vsel %vm695_vm2, %v960_v55, %v962_v60  ;;  %2818 = vrot.lane.b32.xlu1 %v13025_v19, %s12815_s23 }
  0xb3   : > { %2816 = vrot.lane.b32.xlu0 %v12962_v13, %s12815_s23  ;;  %11984 = vmatprep.subr.msk.mxu1 %vm259_vm0, %v964_v61 }
  0xb4   : > { %11985 = vmatpush1.msk.msra.mxu1 %vm259_vm0, %v963_v63  ;;  %v1423_v7 = vpop.permute.xlu1 %1422 }
  0xb5   : > { %v1428_v9 = vsel %vm1163_vm3, %v1423_v7, %v1425_v59  ;;  %v1427_v15 = vpop.permute.xlu0 %1426  ;;  %11986 = vmatmul.mubr.msk.f32.vlgmr.msra.gmra.mrb[2].mxu1 %vm255_vm1, %v11983_v62  ;;  %v12021_v62 = vld [vmem:[%s14999_s1 + $0x1a8] sm:$0xff] }
  0xb6   : > { %v1429_v16 = vsel %vm1163_vm3, %v1425_v59, %v1427_v15  ;;  %3280 = vrot.lane.b32.xlu1 %v12962_v13, %s12816_s26  ;;  %1127 = vmatprep.mubr.f32.mxu1 %v12810_v0 }
  0xb7   : > { %2814 = vrot.lane.b32.xlu0 %v12957_v12, %s12815_s23  ;;  %12005 = vmatprep.subr.msk.mxu0 %vm259_vm0, %v1429_v16 }
  0xb8   : > { %12006 = vmatpush1.msk.msra.mxu0 %vm259_vm0, %v1428_v9  ;;  %v1053_v21 = vpop.permute.xlu1 %1052 }
  0xb9   : > { %v1051_v22 = vpop.permute.xlu0 %1050  ;;  %12007 = vmatmul.mubr.msk.f32.vlgmr.msra.gmra.mrb[2].mxu0 %vm255_vm1, %v12004_v18  ;;  %v12042_v18 = vld [vmem:[%s14999_s1 + $0x1b0] sm:$0xff] }
  0xba   : > { %3278 = vrot.lane.b32.xlu1 %v12957_v12, %s12816_s26  ;;  %v1055_v23 = vsel %vm695_vm2, %v1051_v22, %v1053_v21  ;;  %1591 = vmatprep.mubr.f32.mxu0 %v12810_v0 }
  0xbb   : > { %3282 = vrot.lane.b32.xlu0 %v13025_v19, %s12816_s26  ;;  %11988 = vmatprep.subr.msk.mxu1 %vm259_vm0, %v1055_v23 }
  0xbc   : > { %v1515_v24 = vpop.permute.xlu1 %1514 }
  0xbd   : > { %v1049_v25 = vpop.permute.xlu0 %1048 }
  0xbe   : > { %v1054_v27 = vsel %vm695_vm2, %v1049_v25, %v1051_v22  ;;  %2908 = vrot.lane.b32.xlu1 %v13033_v20, %s12815_s23  ;;  %vm7195_vm2 = vcmask 654336  }
  0xbf   : > { %2906 = vrot.lane.b32.xlu0 %v12974_v14, %s12815_s23  ;;  %11989 = vmatpush1.msk.msra.mxu1 %vm259_vm0, %v1054_v27 }
  0xc0   : > { %v1513_v28 = vpop.permute.xlu1 %1512  ;;  %11990 = vmatmul.mubr.msk.f32.vlgmr.msra.gmra.mrb[2].mxu1 %vm255_vm1, %v11987_v26  ;;  %v12025_v26 = vld [vmem:[%s14999_s1 + $0x270] sm:$0xff] }
  0xc1   : > { %v1518_v29 = vsel %vm1163_vm3, %v1513_v28, %v1515_v24  ;;  %v1517_v30 = vpop.permute.xlu0 %1516  ;;  %1701 = vmatprep.mubr.f32.mxu1 %v12810_v0 }
  0xc2   : > { %v1519_v31 = vsel %vm1163_vm3, %v1515_v24, %v1517_v30  ;;  %3370 = vrot.lane.b32.xlu1 %v12974_v14, %s12816_s26  ;;  %vm7659_vm3 = vcmask 646144  }
  0xc3   : > { %2904 = vrot.lane.b32.xlu0 %v12949_v10, %s12815_s23  ;;  %12009 = vmatprep.subr.msk.mxu0 %vm259_vm0, %v1519_v31  ;;  %s11939_s23 = sshll.u32 %s15016_s15, 1 }
  0xc4   : > { %12010 = vmatpush1.msk.msra.mxu0 %vm259_vm0, %v1518_v29  ;;  %v1626_v33 = vpop.permute.xlu1 %1625  ;;  %s217_s7 = sadd.s32 %s11940_s6, %s11939_s23 }
  0xc5   : > { %v1624_v34 = vpop.permute.xlu0 %1623  ;;  %12011 = vmatmul.mubr.msk.f32.vlgmr.msra.gmra.mrb[2].mxu0 %vm255_vm1, %v12008_v32  ;;  %v12046_v32 = vld [vmem:[%s14999_s1 + $0x278] sm:$0xff] }
  0xc6   : > { %3368 = vrot.lane.b32.xlu1 %v12949_v10, %s12816_s26  ;;  %v1629_v35 = vsel %vm1627_vm4, %v1624_v34, %v1626_v33  ;;  %2165 = vmatprep.mubr.f32.mxu0 %v12810_v0 }
  0xc7   : > { %3372 = vrot.lane.b32.xlu0 %v13033_v20, %s12816_s26  ;;  %12015 = vmatprep.subr.msk.mxu1 %vm259_vm0, %v1629_v35  ;;  %s12818_s26 = smov 109  }
  0xc8   : > { %v2088_v36 = vpop.permute.xlu1 %2087 }
  0xc9   : > { %v1622_v37 = vpop.permute.xlu0 %1621 }
  0xca   : > { %v1628_v39 = vsel %vm1627_vm4, %v1622_v37, %v1624_v34  ;;  %3481 = vrot.lane.b32.xlu1 %v12905_v1, %s12817_s5 }
  0xcb   : > { %3479 = vrot.lane.b32.xlu0 %v12923_v5, %s12817_s5  ;;  %12016 = vmatpush1.msk.msra.mxu1 %vm259_vm0, %v1628_v39 }
  0xcc   : > { %v2086_v40 = vpop.permute.xlu1 %2085  ;;  %12017 = vmatmul.mubr.msk.f32.vlgmr.msra.gmra.mrb[4].mxu1 %vm255_vm1, %v12014_v38  ;;  %v12029_v38 = vld [vmem:[%s14999_s1 + $0x338] sm:$0xff] }
  0xcd   : > { %v2092_v41 = vsel %vm2091_vm5, %v2086_v40, %v2088_v36  ;;  %v2090_v42 = vpop.permute.xlu0 %2089  ;;  %1787 = vmatprep.mubr.f32.mxu1 %v12810_v0 }
  0xce   : > { %v2093_v43 = vsel %vm2091_vm5, %v2088_v36, %v2090_v42  ;;  %3943 = vrot.lane.b32.xlu1 %v12923_v5, %s12818_s26 }
  0xcf   : > { %3477 = vrot.lane.b32.xlu0 %v12913_v3, %s12817_s5  ;;  %12036 = vmatprep.subr.msk.mxu0 %vm259_vm0, %v2093_v43 }
  0xd0   : > { %12037 = vmatpush1.msk.msra.mxu0 %vm259_vm0, %v2092_v41  ;;  %v1713_v45 = vpop.permute.xlu1 %1712 }
  0xd1   : > { %v1711_v46 = vpop.permute.xlu0 %1710  ;;  %12038 = vmatmul.mubr.msk.f32.vlgmr.msra.gmra.mrb[4].mxu0 %vm255_vm1, %v12035_v44  ;;  %v12050_v44 = vld [vmem:[%s14999_s1 + $0x340] sm:$0xff] }
  0xd2   : > { %3941 = vrot.lane.b32.xlu1 %v12913_v3, %s12818_s26  ;;  %v1715_v47 = vsel %vm1627_vm4, %v1711_v46, %v1713_v45  ;;  %2251 = vmatprep.mubr.f32.mxu0 %v12810_v0 }
  0xd3   : > { %3945 = vrot.lane.b32.xlu0 %v12905_v1, %s12818_s26  ;;  %12018 = vmatprep.subr.msk.mxu1 %vm259_vm0, %v1715_v47 }
  0xd4   : > { %v2175_v48 = vpop.permute.xlu1 %2174 }
  0xd5   : > { %v1709_v49 = vpop.permute.xlu0 %1708 }
  0xd6   : > { %v1714_v51 = vsel %vm1627_vm4, %v1709_v49, %v1711_v46  ;;  %3568 = vrot.lane.b32.xlu1 %v12954_v11, %s12817_s5 }
  0xd7   : > { %3566 = vrot.lane.b32.xlu0 %v12941_v8, %s12817_s5  ;;  %12019 = vmatpush1.msk.msra.mxu1 %vm259_vm0, %v1714_v51 }
  0xd8   : > { %v2173_v52 = vpop.permute.xlu1 %2172  ;;  %12020 = vmatmul.mubr.msk.f32.vlgmr.msra.gmra.mrb[4].mxu1 %vm255_vm1, %v12013_v50  ;;  %v12056_v50 = vld [vmem:[%s14999_s1 + $0xf0] sm:$0xff] }
  0xd9   : > { %v2178_v53 = vsel %vm2091_vm5, %v2173_v52, %v2175_v48  ;;  %v2177_v54 = vpop.permute.xlu0 %2176  ;;  %1875 = vmatprep.mubr.f32.mxu1 %v12810_v0 }
  0xda   : > { %v2179_v55 = vsel %vm2091_vm5, %v2175_v48, %v2177_v54  ;;  %4030 = vrot.lane.b32.xlu1 %v12941_v8, %s12818_s26 }
  0xdb   : > { %3564 = vrot.lane.b32.xlu0 %v12926_v6, %s12817_s5  ;;  %12039 = vmatprep.subr.msk.mxu0 %vm259_vm0, %v2179_v55 }
  0xdc   : > { %12040 = vmatpush1.msk.msra.mxu0 %vm259_vm0, %v2178_v53  ;;  %v1801_v57 = vpop.permute.xlu1 %1800 }
  0xdd   : > { %v1799_v58 = vpop.permute.xlu0 %1798  ;;  %12041 = vmatmul.mubr.msk.f32.vlgmr.msra.gmra.mrb[4].mxu0 %vm255_vm1, %v12034_v56  ;;  %v12077_v56 = vld [vmem:[%s14999_s1 + $0xf8] sm:$0xff] }
  0xde   : > { %4028 = vrot.lane.b32.xlu1 %v12926_v6, %s12818_s26  ;;  %v1803_v59 = vsel %vm1627_vm4, %v1799_v58, %v1801_v57  ;;  %2339 = vmatprep.mubr.f32.mxu0 %v12810_v0 }
  0xdf   : > { %4032 = vrot.lane.b32.xlu0 %v12954_v11, %s12818_s26  ;;  %12022 = vmatprep.subr.msk.mxu1 %vm259_vm0, %v1803_v59 }
  0xe0   : > { %v2263_v60 = vpop.permute.xlu1 %2262 }
  0xe1   : > { %v1797_v61 = vpop.permute.xlu0 %1796 }
  0xe2   : > { %v1802_v63 = vsel %vm1627_vm4, %v1797_v61, %v1799_v58  ;;  %3656 = vrot.lane.b32.xlu1 %v13003_v17, %s12817_s5 }
  0xe3   : > { %3654 = vrot.lane.b32.xlu0 %v12917_v4, %s12817_s5  ;;  %12023 = vmatpush1.msk.msra.mxu1 %vm259_vm0, %v1802_v63 }
  0xe4   : > { %v2261_v7 = vpop.permute.xlu1 %2260  ;;  %12024 = vmatmul.mubr.msk.f32.vlgmr.msra.gmra.mrb[4].mxu1 %vm255_vm1, %v12021_v62  ;;  %v12055_v62 = vld [vmem:[%s14999_s1 + $0x28] sm:$0xff] }
  0xe5   : > { %v2266_v9 = vsel %vm2091_vm5, %v2261_v7, %v2263_v60  ;;  %v2265_v15 = vpop.permute.xlu0 %2264  ;;  %1965 = vmatprep.mubr.f32.mxu1 %v12810_v0 }
  0xe6   : > { %v2267_v16 = vsel %vm2091_vm5, %v2263_v60, %v2265_v15  ;;  %4118 = vrot.lane.b32.xlu1 %v12917_v4, %s12818_s26  ;;  %v12076_v15 = vld [vmem:[%s14999_s1 + $0x30] sm:$0xff] }
  0xe7   : > { %3652 = vrot.lane.b32.xlu0 %v12908_v2, %s12817_s5  ;;  %12043 = vmatprep.subr.msk.mxu0 %vm259_vm0, %v2267_v16 }
  0xe8   : > { %12044 = vmatpush1.msk.msra.mxu0 %vm259_vm0, %v2266_v9  ;;  %v1891_v21 = vpop.permute.xlu1 %1890 }
  0xe9   : > { %v1889_v22 = vpop.permute.xlu0 %1888  ;;  %12045 = vmatmul.mubr.msk.f32.vlgmr.msra.gmra.mrb[4].mxu0 %vm255_vm1, %v12042_v18 }
  0xea   : > { %4116 = vrot.lane.b32.xlu1 %v12908_v2, %s12818_s26  ;;  %v1893_v23 = vsel %vm1627_vm4, %v1889_v22, %v1891_v21  ;;  %2429 = vmatprep.mubr.f32.mxu0 %v12810_v0 }
  0xeb   : > { %4120 = vrot.lane.b32.xlu0 %v13003_v17, %s12818_s26  ;;  %12026 = vmatprep.subr.msk.mxu1 %vm259_vm0, %v1893_v23 }
  0xec   : > { %v2353_v24 = vpop.permute.xlu1 %2352 }
  0xed   : > { %v1887_v25 = vpop.permute.xlu0 %1886 }
  0xee   : > { %v1892_v27 = vsel %vm1627_vm4, %v1887_v25, %v1889_v22  ;;  %3746 = vrot.lane.b32.xlu1 %v13025_v19, %s12817_s5 }
  0xef   : > { %3744 = vrot.lane.b32.xlu0 %v12962_v13, %s12817_s5  ;;  %12027 = vmatpush1.msk.msra.mxu1 %vm259_vm0, %v1892_v27 }
  0xf0   : > { %v2351_v28 = vpop.permute.xlu1 %2350  ;;  %12028 = vmatmul.mubr.msk.f32.vlgmr.msra.gmra.mrb[4].mxu1 %vm255_vm1, %v12025_v26 }
  0xf1   : > { %v2356_v29 = vsel %vm2091_vm5, %v2351_v28, %v2353_v24  ;;  %v2355_v30 = vpop.permute.xlu0 %2354  ;;  %2055 = vmatprep.mubr.f32.mxu1 %v12810_v0  ;;  %v12084_v28 = vld [vmem:[%s14999_s1 + $0x1c0] sm:$0xff] }
  0xf2   : > { %v2357_v31 = vsel %vm2091_vm5, %v2353_v24, %v2355_v30  ;;  %4208 = vrot.lane.b32.xlu1 %v12962_v13, %s12818_s26  ;;  %v12063_v24 = vld [vmem:[%s14999_s1 + $0x1b8] sm:$0xff] }
  0xf3   : > { %3742 = vrot.lane.b32.xlu0 %v12957_v12, %s12817_s5  ;;  %12047 = vmatprep.subr.msk.mxu0 %vm259_vm0, %v2357_v31 }
  0xf4   : > { %12048 = vmatpush1.msk.msra.mxu0 %vm259_vm0, %v2356_v29  ;;  %v1981_v33 = vpop.permute.xlu1 %1980 }
  0xf5   : > { %v1979_v34 = vpop.permute.xlu0 %1978  ;;  %12049 = vmatmul.mubr.msk.f32.vlgmr.msra.gmra.mrb[4].mxu0 %vm255_vm1, %v12046_v32 }
  0xf6   : > { %4206 = vrot.lane.b32.xlu1 %v12957_v12, %s12818_s26  ;;  %v1983_v35 = vsel %vm1627_vm4, %v1979_v34, %v1981_v33  ;;  %2519 = vmatprep.mubr.f32.mxu0 %v12810_v0 }
  0xf7   : > { %4210 = vrot.lane.b32.xlu0 %v13025_v19, %s12818_s26  ;;  %12030 = vmatprep.subr.msk.mxu1 %vm259_vm0, %v1983_v35 }
  0xf8   : > { %v2443_v36 = vpop.permute.xlu1 %2442 }
  0xf9   : > { %v1977_v37 = vpop.permute.xlu0 %1976 }
  0xfa   : > { %v1982_v39 = vsel %vm1627_vm4, %v1977_v37, %v1979_v34  ;;  %3836 = vrot.lane.b32.xlu1 %v13033_v20, %s12817_s5  ;;  %v12067_v34 = vld [vmem:[%s14999_s1 + $0x280] sm:$0xff]  ;;  %vm8123_vm4 = vcmask 637952  }
  0xfb   : > { %3834 = vrot.lane.b32.xlu0 %v12974_v14, %s12817_s5  ;;  %12031 = vmatpush1.msk.msra.mxu1 %vm259_vm0, %v1982_v39 }
  0xfc   : > { %v2441_v40 = vpop.permute.xlu1 %2440  ;;  %12032 = vmatmul.mubr.msk.f32.vlgmr.msra.gmra.mrb[4].mxu1 %vm255_vm1, %v12029_v38  ;;  %v12088_v38 = vld [vmem:[%s14999_s1 + $0x288] sm:$0xff] }
  0xfd   : > { %v2446_v41 = vsel %vm2091_vm5, %v2441_v40, %v2443_v36  ;;  %v2445_v42 = vpop.permute.xlu0 %2444  ;;  %2629 = vmatprep.mubr.f32.mxu1 %v12810_v0 }
  0xfe   : > { %v2447_v43 = vsel %vm2091_vm5, %v2443_v36, %v2445_v42  ;;  %4298 = vrot.lane.b32.xlu1 %v12974_v14, %s12818_s26  ;;  %vm8587_vm5 = vcmask 629760  }
  0xff   : > { %3832 = vrot.lane.b32.xlu0 %v12949_v10, %s12817_s5  ;;  %12051 = vmatprep.subr.msk.mxu0 %vm259_vm0, %v2447_v43 }
 0x100   : > { %12052 = vmatpush1.msk.msra.mxu0 %vm259_vm0, %v2446_v41  ;;  %v2554_v45 = vpop.permute.xlu1 %2553 }
 0x101   : > { %v2552_v46 = vpop.permute.xlu0 %2551  ;;  %12053 = vmatmul.mubr.msk.f32.vlgmr.msra.gmra.mrb[4].mxu0 %vm255_vm1, %v12050_v44  ;;  %v12071_v44 = vld [vmem:[%s14999_s1 + $0x348] sm:$0xff] }
 0x102   : > { %4296 = vrot.lane.b32.xlu1 %v12949_v10, %s12818_s26  ;;  %v2557_v47 = vsel %vm2555_vm6, %v2552_v46, %v2554_v45  ;;  %3093 = vmatprep.mubr.f32.mxu0 %v12810_v0 }
 0x103   : > { %4300 = vrot.lane.b32.xlu0 %v13033_v20, %s12818_s26  ;;  %12057 = vmatprep.subr.msk.mxu1 %vm259_vm0, %v2557_v47  ;;  %s12820_s26 = smov 96  }
 0x104   : > { %v3016_v48 = vpop.permute.xlu1 %3015 }
 0x105   : > { %v2550_v49 = vpop.permute.xlu0 %2549 }
 0x106   : > { %v2556_v51 = vsel %vm2555_vm6, %v2550_v49, %v2552_v46  ;;  %4409 = vrot.lane.b32.xlu1 %v12905_v1, %s12819_s9 }
 0x107   : > { %4407 = vrot.lane.b32.xlu0 %v12923_v5, %s12819_s9  ;;  %12058 = vmatpush1.msk.msra.mxu1 %vm259_vm0, %v2556_v51 }
 0x108   : > { %v3014_v52 = vpop.permute.xlu1 %3013  ;;  %12059 = vmatmul.mubr.msk.f32.vlgmr.msra.gmra.mrb[6].mxu1 %vm255_vm1, %v12056_v50 }
 0x109   : > { %v3020_v53 = vsel %vm3019_vm7, %v3014_v52, %v3016_v48  ;;  %v3018_v54 = vpop.permute.xlu0 %3017  ;;  %2715 = vmatprep.mubr.f32.mxu1 %v12810_v0 }
 0x10a   : > { %v3021_v55 = vsel %vm3019_vm7, %v3016_v48, %v3018_v54  ;;  %4871 = vrot.lane.b32.xlu1 %v12923_v5, %s12820_s26  ;;  %v12092_v48 = vld [vmem:[%s14999_s1 + $0x350] sm:$0xff]  ;;  %v12098_v54 = vld [vmem:[%s14999_s1 + $0x100] sm:$0xff] }
 0x10b   : > { %4405 = vrot.lane.b32.xlu0 %v12913_v3, %s12819_s9  ;;  %12078 = vmatprep.subr.msk.mxu0 %vm259_vm0, %v3021_v55 }
 0x10c   : > { %12079 = vmatpush1.msk.msra.mxu0 %vm259_vm0, %v3020_v53  ;;  %v2641_v57 = vpop.permute.xlu1 %2640 }
 0x10d   : > { %v2639_v58 = vpop.permute.xlu0 %2638  ;;  %12080 = vmatmul.mubr.msk.f32.vlgmr.msra.gmra.mrb[6].mxu0 %vm255_vm1, %v12077_v56  ;;  %v13531_v56 = vld [vmem:[%s12902_s27 + $0x14] sm:$0xf] }
 0x10e   : > { %4869 = vrot.lane.b32.xlu1 %v12913_v3, %s12820_s26  ;;  %v2643_v59 = vsel %vm2555_vm6, %v2639_v58, %v2641_v57  ;;  %3179 = vmatprep.mubr.f32.mxu0 %v12810_v0 }
 0x10f   : > { %4873 = vrot.lane.b32.xlu0 %v12905_v1, %s12820_s26  ;;  %12060 = vmatprep.subr.msk.mxu1 %vm259_vm0, %v2643_v59  ;;  %v12119_v59 = vld [vmem:[%s14999_s1 + $0x108] sm:$0xff] }
 0x110   : > { %v3103_v60 = vpop.permute.xlu1 %3102 }
 0x111   : > { %v2637_v61 = vpop.permute.xlu0 %2636 }
 0x112   : > { %v2642_v63 = vsel %vm2555_vm6, %v2637_v61, %v2639_v58  ;;  %4496 = vrot.lane.b32.xlu1 %v12954_v11, %s12819_s9 }
 0x113   : > { %4494 = vrot.lane.b32.xlu0 %v12941_v8, %s12819_s9  ;;  %12061 = vmatpush1.msk.msra.mxu1 %vm259_vm0, %v2642_v63 }
 0x114   : > { %v3101_v3 = vpop.permute.xlu1 %3100  ;;  %12062 = vmatmul.mubr.msk.f32.vlgmr.msra.gmra.mrb[6].mxu1 %vm255_vm1, %v12055_v62 }
 0x115   : > { %v3106_v1 = vsel %vm3019_vm7, %v3101_v3, %v3103_v60  ;;  %v3105_v7 = vpop.permute.xlu0 %3104  ;;  %2803 = vmatprep.mubr.f32.mxu1 %v12810_v0 }
 0x116   : > { %v3107_v9 = vsel %vm3019_vm7, %v3103_v60, %v3105_v7  ;;  %4958 = vrot.lane.b32.xlu1 %v12941_v8, %s12820_s26  ;;  %v13548_v60 = vld [vmem:[%s12902_s27 + $0xc] sm:$0xff]  ;;  %v12097_v7 = vld [vmem:[%s14999_s1 + $0x38] sm:$0xff] }
 0x117   : > { %4492 = vrot.lane.b32.xlu0 %v12926_v6, %s12819_s9  ;;  %12081 = vmatprep.subr.msk.mxu0 %vm259_vm0, %v3107_v9 }
 0x118   : > { %12082 = vmatpush1.msk.msra.mxu0 %vm259_vm0, %v3106_v1  ;;  %v2729_v16 = vpop.permute.xlu1 %2728 }
 0x119   : > { %v2727_v18 = vpop.permute.xlu0 %2726  ;;  %12083 = vmatmul.mubr.msk.f32.vlgmr.msra.gmra.mrb[6].mxu0 %vm255_vm1, %v12076_v15  ;;  %v13567_v15 = vld [vmem:[%s12902_s27 + $0x8] sm:$0xf] }
 0x11a   : > { %4956 = vrot.lane.b32.xlu1 %v12926_v6, %s12820_s26  ;;  %v2731_v21 = vsel %vm2555_vm6, %v2727_v18, %v2729_v16  ;;  %3267 = vmatprep.mubr.f32.mxu0 %v12810_v0 }
 0x11b   : > { %4960 = vrot.lane.b32.xlu0 %v12954_v11, %s12820_s26  ;;  %12064 = vmatprep.subr.msk.mxu1 %vm259_vm0, %v2731_v21 }
 0x11c   : > { %v3191_v22 = vpop.permute.xlu1 %3190 }
 0x11d   : > { %v2725_v23 = vpop.permute.xlu0 %2724 }
 0x11e   : > { %v2730_v25 = vsel %vm2555_vm6, %v2725_v23, %v2727_v18  ;;  %4584 = vrot.lane.b32.xlu1 %v13003_v17, %s12819_s9  ;;  %v12118_v23 = vld [vmem:[%s14999_s1 + $0x40] sm:$0xff] }
 0x11f   : > { %4582 = vrot.lane.b32.xlu0 %v12917_v4, %s12819_s9  ;;  %12065 = vmatpush1.msk.msra.mxu1 %vm259_vm0, %v2730_v25 }
 0x120   : > { %v3189_v6 = vpop.permute.xlu1 %3188  ;;  %12066 = vmatmul.mubr.msk.f32.vlgmr.msra.gmra.mrb[6].mxu1 %vm255_vm1, %v12063_v24  ;;  %v13584_v24 = vld [vmem:[%s12902_s27] sm:$0xff] }
 0x121   : > { %v3194_v11 = vsel %vm3019_vm7, %v3189_v6, %v3191_v22  ;;  %v3193_v26 = vpop.permute.xlu0 %3192  ;;  %2893 = vmatprep.mubr.f32.mxu1 %v12810_v0 }
 0x122   : > { %v3195_v27 = vsel %vm3019_vm7, %v3191_v22, %v3193_v26  ;;  %5046 = vrot.lane.b32.xlu1 %v12917_v4, %s12820_s26 }
 0x123   : > { %4580 = vrot.lane.b32.xlu0 %v12908_v2, %s12819_s9  ;;  %12085 = vmatprep.subr.msk.mxu0 %vm259_vm0, %v3195_v27 }
 0x124   : > { %12086 = vmatpush1.msk.msra.mxu0 %vm259_vm0, %v3194_v11  ;;  %v2819_v29 = vpop.permute.xlu1 %2818 }
 0x125   : > { %v2817_v30 = vpop.permute.xlu0 %2816  ;;  %12087 = vmatmul.mubr.msk.f32.vlgmr.msra.gmra.mrb[6].mxu0 %vm255_vm1, %v12084_v28  ;;  %v12105_v28 = vld [vmem:[%s14999_s1 + $0x1c8] sm:$0xff] }
 0x126   : > { %5044 = vrot.lane.b32.xlu1 %v12908_v2, %s12820_s26  ;;  %v2821_v31 = vsel %vm2555_vm6, %v2817_v30, %v2819_v29  ;;  %3357 = vmatprep.mubr.f32.mxu0 %v12810_v0 }
 0x127   : > { %5048 = vrot.lane.b32.xlu0 %v13003_v17, %s12820_s26  ;;  %12068 = vmatprep.subr.msk.mxu1 %vm259_vm0, %v2821_v31 }
 0x128   : > { %v3281_v32 = vpop.permute.xlu1 %3280 }
 0x129   : > { %v2815_v33 = vpop.permute.xlu0 %2814 }
 0x12a   : > { %v2820_v35 = vsel %vm2555_vm6, %v2815_v33, %v2817_v30  ;;  %4674 = vrot.lane.b32.xlu1 %v13025_v19, %s12819_s9  ;;  %v13603_v30 = vld [vmem:[%s12902_s27 + $0x20] sm:$0xf] }
 0x12b   : > { %4672 = vrot.lane.b32.xlu0 %v12962_v13, %s12819_s9  ;;  %12069 = vmatpush1.msk.msra.mxu1 %vm259_vm0, %v2820_v35  ;;  %v12126_v35 = vld [vmem:[%s14999_s1 + $0x1d0] sm:$0xff] }
 0x12c   : > { %v3279_v2 = vpop.permute.xlu1 %3278  ;;  %12070 = vmatmul.mubr.msk.f32.vlgmr.msra.gmra.mrb[6].mxu1 %vm255_vm1, %v12067_v34 }
 0x12d   : > { %v3284_v17 = vsel %vm3019_vm7, %v3279_v2, %v3281_v32  ;;  %v3283_v36 = vpop.permute.xlu0 %3282  ;;  %2983 = vmatprep.mubr.f32.mxu1 %v12810_v0  ;;  %v13620_v2 = vld [vmem:[%s12902_s27 + $0x18] sm:$0xff] }
 0x12e   : > { %v3285_v37 = vsel %vm3019_vm7, %v3281_v32, %v3283_v36  ;;  %5136 = vrot.lane.b32.xlu1 %v12962_v13, %s12820_s26 }
 0x12f   : > { %4670 = vrot.lane.b32.xlu0 %v12957_v12, %s12819_s9  ;;  %12089 = vmatprep.subr.msk.mxu0 %vm259_vm0, %v3285_v37 }
 0x130   : > { %12090 = vmatpush1.msk.msra.mxu0 %vm259_vm0, %v3284_v17  ;;  %v2909_v39 = vpop.permute.xlu1 %2908 }
 0x131   : > { %v2907_v40 = vpop.permute.xlu0 %2906  ;;  %12091 = vmatmul.mubr.msk.f32.vlgmr.msra.gmra.mrb[6].mxu0 %vm255_vm1, %v12088_v38 }
 0x132   : > { %5134 = vrot.lane.b32.xlu1 %v12957_v12, %s12820_s26  ;;  %v2911_v41 = vsel %vm2555_vm6, %v2907_v40, %v2909_v39  ;;  %3447 = vmatprep.mubr.f32.mxu0 %v12810_v0 }
 0x133   : > { %5138 = vrot.lane.b32.xlu0 %v13025_v19, %s12820_s26  ;;  %12072 = vmatprep.subr.msk.mxu1 %vm259_vm0, %v2911_v41 }
 0x134   : > { %v3371_v42 = vpop.permute.xlu1 %3370 }
 0x135   : > { %v2905_v43 = vpop.permute.xlu0 %2904 }
 0x136   : > { %v2910_v45 = vsel %vm2555_vm6, %v2905_v43, %v2907_v40  ;;  %4764 = vrot.lane.b32.xlu1 %v13033_v20, %s12819_s9  ;;  %v12109_v40 = vld [vmem:[%s14999_s1 + $0x290] sm:$0xff]  ;;  %vm9051_vm6 = vcmask 621568  }
 0x137   : > { %4762 = vrot.lane.b32.xlu0 %v12974_v14, %s12819_s9  ;;  %12073 = vmatpush1.msk.msra.mxu1 %vm259_vm0, %v2910_v45 }
 0x138   : > { %v3369_v12 = vpop.permute.xlu1 %3368  ;;  %12074 = vmatmul.mubr.msk.f32.vlgmr.msra.gmra.mrb[6].mxu1 %vm255_vm1, %v12071_v44 }
 0x139   : > { %v3374_v19 = vsel %vm3019_vm7, %v3369_v12, %v3371_v42  ;;  %v3373_v46 = vpop.permute.xlu0 %3372  ;;  %3557 = vmatprep.mubr.f32.mxu1 %v12810_v0 }
 0x13a   : > { %v3375_v47 = vsel %vm3019_vm7, %v3371_v42, %v3373_v46  ;;  %5226 = vrot.lane.b32.xlu1 %v12974_v14, %s12820_s26  ;;  %v13639_v42 = vld [vmem:[%s12902_s27 + $0x2c] sm:$0xf]  ;;  %v13656_v46 = vld [vmem:[%s12902_s27 + $0x24] sm:$0xff]  ;;  %vm9515_vm7 = vcmask 523264  }
 0x13b   : > { %4760 = vrot.lane.b32.xlu0 %v12949_v10, %s12819_s9  ;;  %12093 = vmatprep.subr.msk.mxu0 %vm259_vm0, %v3375_v47 }
 0x13c   : > { %12094 = vmatpush1.msk.msra.mxu0 %vm259_vm0, %v3374_v19  ;;  %v3482_v49 = vpop.permute.xlu1 %3481  ;;  %v12130_v19 = vld [vmem:[%s14999_s1 + $0x298] sm:$0xff] }
 0x13d   : > { %v3480_v50 = vpop.permute.xlu0 %3479  ;;  %12095 = vmatmul.mubr.msk.f32.vlgmr.msra.gmra.mrb[6].mxu0 %vm255_vm1, %v12092_v48 }
 0x13e   : > { %5224 = vrot.lane.b32.xlu1 %v12949_v10, %s12820_s26  ;;  %v3485_v51 = vsel %vm3483_vm8, %v3480_v50, %v3482_v49  ;;  %4021 = vmatprep.mubr.f32.mxu0 %v12810_v0 }
 0x13f   : > { %5228 = vrot.lane.b32.xlu0 %v13033_v20, %s12820_s26  ;;  %12099 = vmatprep.subr.msk.mxu1 %vm259_vm0, %v3485_v51  ;;  %s12822_s26 = smov 94  }
 0x140   : > { %v3944_v52 = vpop.permute.xlu1 %3943 }
 0x141   : > { %v3478_v53 = vpop.permute.xlu0 %3477 }
 0x142   : > { %v3484_v55 = vsel %vm3483_vm8, %v3478_v53, %v3480_v50  ;;  %5337 = vrot.lane.b32.xlu1 %v13531_v56, %s12821_s13 }
 0x143   : > { %5335 = vrot.lane.b32.xlu0 %v12923_v5, %s12821_s13  ;;  %12100 = vmatpush1.msk.msra.mxu1 %vm259_vm0, %v3484_v55 }
 0x144   : > { %v3942_v10 = vpop.permute.xlu1 %3941  ;;  %12101 = vmatmul.mubr.msk.f32.vlgmr.msra.gmra.mrb[8].mxu1 %vm255_vm1, %v12098_v54  ;;  %v13675_v54 = vld [vmem:[%s12902_s27 + $0x38] sm:$0xf] }
 0x145   : > { %v3948_v20 = vsel %vm3947_vm9, %v3942_v10, %v3944_v52  ;;  %v3946_v57 = vpop.permute.xlu0 %3945  ;;  %3643 = vmatprep.mubr.f32.mxu1 %v12810_v0 }
 0x146   : > { %v3949_v58 = vsel %vm3947_vm9, %v3944_v52, %v3946_v57  ;;  %5799 = vrot.lane.b32.xlu1 %v12923_v5, %s12822_s26  ;;  %v12113_v52 = vld [vmem:[%s14999_s1 + $0x358] sm:$0xff] }
 0x147   : > { %5333 = vrot.lane.b32.xlu0 %v13548_v60, %s12821_s13  ;;  %12120 = vmatprep.subr.msk.mxu0 %vm259_vm0, %v3949_v58  ;;  %v12134_v58 = vld [vmem:[%s14999_s1 + $0x360] sm:$0xff] }
 0x148   : > { %12121 = vmatpush1.msk.msra.mxu0 %vm259_vm0, %v3948_v20  ;;  %v3569_v61 = vpop.permute.xlu1 %3568 }
 0x149   : > { %v3567_v62 = vpop.permute.xlu0 %3566  ;;  %12122 = vmatmul.mubr.msk.f32.vlgmr.msra.gmra.mrb[8].mxu0 %vm255_vm1, %v12119_v59  ;;  %v13692_v59 = vld [vmem:[%s12902_s27 + $0x30] sm:$0xff] }
 0x14a   : > { %5797 = vrot.lane.b32.xlu1 %v13548_v60, %s12822_s26  ;;  %v3571_v63 = vsel %vm3483_vm8, %v3567_v62, %v3569_v61  ;;  %4107 = vmatprep.mubr.f32.mxu0 %v12810_v0 }
 0x14b   : > { %5801 = vrot.lane.b32.xlu0 %v13531_v56, %s12822_s26  ;;  %12102 = vmatprep.subr.msk.mxu1 %vm259_vm0, %v3571_v63 }
 0x14c   : > { %v4031_v3 = vpop.permute.xlu1 %4030 }
 0x14d   : > { %v3565_v1 = vpop.permute.xlu0 %3564 }
 0x14e   : > { %v3570_v9 = vsel %vm3483_vm8, %v3565_v1, %v3567_v62  ;;  %5424 = vrot.lane.b32.xlu1 %v13567_v15, %s12821_s13 }
 0x14f   : > { %5422 = vrot.lane.b32.xlu0 %v12941_v8, %s12821_s13  ;;  %12103 = vmatpush1.msk.msra.mxu1 %vm259_vm0, %v3570_v9 }
 0x150   : > { %v4029_v16 = vpop.permute.xlu1 %4028  ;;  %12104 = vmatmul.mubr.msk.f32.vlgmr.msra.gmra.mrb[8].mxu1 %vm255_vm1, %v12097_v7  ;;  %v12140_v7 = vld [vmem:[%s14999_s1 + $0x110] sm:$0xff] }
 0x151   : > { %v4034_v18 = vsel %vm3947_vm9, %v4029_v16, %v4031_v3  ;;  %v4033_v21 = vpop.permute.xlu0 %4032  ;;  %3731 = vmatprep.mubr.f32.mxu1 %v12810_v0 }
 0x152   : > { %v4035_v22 = vsel %vm3947_vm9, %v4031_v3, %v4033_v21  ;;  %5886 = vrot.lane.b32.xlu1 %v12941_v8, %s12822_s26 }
 0x153   : > { %5420 = vrot.lane.b32.xlu0 %v13584_v24, %s12821_s13  ;;  %12123 = vmatprep.subr.msk.mxu0 %vm259_vm0, %v4035_v22 }
 0x154   : > { %12124 = vmatpush1.msk.msra.mxu0 %vm259_vm0, %v4034_v18  ;;  %v3657_v25 = vpop.permute.xlu1 %3656 }
 0x155   : > { %v3655_v6 = vpop.permute.xlu0 %3654  ;;  %12125 = vmatmul.mubr.msk.f32.vlgmr.msra.gmra.mrb[8].mxu0 %vm255_vm1, %v12118_v23  ;;  %v12161_v23 = vld [vmem:[%s14999_s1 + $0x118] sm:$0xff] }
 0x156   : > { %5884 = vrot.lane.b32.xlu1 %v13584_v24, %s12822_s26  ;;  %v3659_v11 = vsel %vm3483_vm8, %v3655_v6, %v3657_v25  ;;  %4195 = vmatprep.mubr.f32.mxu0 %v12810_v0 }
 0x157   : > { %5888 = vrot.lane.b32.xlu0 %v13567_v15, %s12822_s26  ;;  %12106 = vmatprep.subr.msk.mxu1 %vm259_vm0, %v3659_v11 }
 0x158   : > { %v4119_v26 = vpop.permute.xlu1 %4118 }
 0x159   : > { %v3653_v27 = vpop.permute.xlu0 %3652 }
 0x15a   : > { %v3658_v29 = vsel %vm3483_vm8, %v3653_v27, %v3655_v6  ;;  %5512 = vrot.lane.b32.xlu1 %v13603_v30, %s12821_s13 }
 0x15b   : > { %5510 = vrot.lane.b32.xlu0 %v12917_v4, %s12821_s13  ;;  %12107 = vmatpush1.msk.msra.mxu1 %vm259_vm0, %v3658_v29 }
 0x15c   : > { %v4117_v31 = vpop.permute.xlu1 %4116  ;;  %12108 = vmatmul.mubr.msk.f32.vlgmr.msra.gmra.mrb[8].mxu1 %vm255_vm1, %v12105_v28  ;;  %v12139_v28 = vld [vmem:[%s14999_s1 + $0x48] sm:$0xff] }
 0x15d   : > { %v4122_v32 = vsel %vm3947_vm9, %v4117_v31, %v4119_v26  ;;  %v4121_v33 = vpop.permute.xlu0 %4120  ;;  %3821 = vmatprep.mubr.f32.mxu1 %v12810_v0 }
 0x15e   : > { %v4123_v34 = vsel %vm3947_vm9, %v4119_v26, %v4121_v33  ;;  %5974 = vrot.lane.b32.xlu1 %v12917_v4, %s12822_s26 }
 0x15f   : > { %5508 = vrot.lane.b32.xlu0 %v13620_v2, %s12821_s13  ;;  %12127 = vmatprep.subr.msk.mxu0 %vm259_vm0, %v4123_v34 }
 0x160   : > { %12128 = vmatpush1.msk.msra.mxu0 %vm259_vm0, %v4122_v32  ;;  %v3747_v17 = vpop.permute.xlu1 %3746 }
 0x161   : > { %v3745_v36 = vpop.permute.xlu0 %3744  ;;  %12129 = vmatmul.mubr.msk.f32.vlgmr.msra.gmra.mrb[8].mxu0 %vm255_vm1, %v12126_v35  ;;  %v12160_v35 = vld [vmem:[%s14999_s1 + $0x50] sm:$0xff] }
 0x162   : > { %5972 = vrot.lane.b32.xlu1 %v13620_v2, %s12822_s26  ;;  %v3749_v37 = vsel %vm3483_vm8, %v3745_v36, %v3747_v17  ;;  %4285 = vmatprep.mubr.f32.mxu0 %v12810_v0 }
 0x163   : > { %5976 = vrot.lane.b32.xlu0 %v13603_v30, %s12822_s26  ;;  %12110 = vmatprep.subr.msk.mxu1 %vm259_vm0, %v3749_v37 }
 0x164   : > { %v4209_v38 = vpop.permute.xlu1 %4208 }
 0x165   : > { %v3743_v39 = vpop.permute.xlu0 %3742 }
 0x166   : > { %v3748_v41 = vsel %vm3483_vm8, %v3743_v39, %v3745_v36  ;;  %5602 = vrot.lane.b32.xlu1 %v13639_v42, %s12821_s13 }
 0x167   : > { %5600 = vrot.lane.b32.xlu0 %v12962_v13, %s12821_s13  ;;  %12111 = vmatpush1.msk.msra.mxu1 %vm259_vm0, %v3748_v41 }
 0x168   : > { %v4207_v43 = vpop.permute.xlu1 %4206  ;;  %12112 = vmatmul.mubr.msk.f32.vlgmr.msra.gmra.mrb[8].mxu1 %vm255_vm1, %v12109_v40  ;;  %v12147_v40 = vld [vmem:[%s14999_s1 + $0x1d8] sm:$0xff] }
 0x169   : > { %v4212_v44 = vsel %vm3947_vm9, %v4207_v43, %v4209_v38  ;;  %v4211_v45 = vpop.permute.xlu0 %4210  ;;  %3911 = vmatprep.mubr.f32.mxu1 %v12810_v0 }
 0x16a   : > { %v4213_v12 = vsel %vm3947_vm9, %v4209_v38, %v4211_v45  ;;  %6064 = vrot.lane.b32.xlu1 %v12962_v13, %s12822_s26 }
 0x16b   : > { %5598 = vrot.lane.b32.xlu0 %v13656_v46, %s12821_s13  ;;  %12131 = vmatprep.subr.msk.mxu0 %vm259_vm0, %v4213_v12 }
 0x16c   : > { %12132 = vmatpush1.msk.msra.mxu0 %vm259_vm0, %v4212_v44  ;;  %v3837_v47 = vpop.permute.xlu1 %3836 }
 0x16d   : > { %v3835_v48 = vpop.permute.xlu0 %3834  ;;  %12133 = vmatmul.mubr.msk.f32.vlgmr.msra.gmra.mrb[8].mxu0 %vm255_vm1, %v12130_v19  ;;  %v12168_v19 = vld [vmem:[%s14999_s1 + $0x1e0] sm:$0xff] }
 0x16e   : > { %6062 = vrot.lane.b32.xlu1 %v13656_v46, %s12822_s26  ;;  %v3839_v49 = vsel %vm3483_vm8, %v3835_v48, %v3837_v47  ;;  %4375 = vmatprep.mubr.f32.mxu0 %v12810_v0 }
 0x16f   : > { %6066 = vrot.lane.b32.xlu0 %v13639_v42, %s12822_s26  ;;  %12114 = vmatprep.subr.msk.mxu1 %vm259_vm0, %v3839_v49 }
 0x170   : > { %v4299_v50 = vpop.permute.xlu1 %4298 }
 0x171   : > { %v3833_v51 = vpop.permute.xlu0 %3832 }
 0x172   : > { %v3838_v53 = vsel %vm3483_vm8, %v3833_v51, %v3835_v48  ;;  %5692 = vrot.lane.b32.xlu1 %v13675_v54, %s12821_s13  ;;  %vm9979_vm8 = vcmask 515072  }
 0x173   : > { %5690 = vrot.lane.b32.xlu0 %v12974_v14, %s12821_s13  ;;  %12115 = vmatpush1.msk.msra.mxu1 %vm259_vm0, %v3838_v53 }
 0x174   : > { %v4297_v55 = vpop.permute.xlu1 %4296  ;;  %12116 = vmatmul.mubr.msk.f32.vlgmr.msra.gmra.mrb[8].mxu1 %vm255_vm1, %v12113_v52  ;;  %v12151_v52 = vld [vmem:[%s14999_s1 + $0x2a0] sm:$0xff] }
 0x175   : > { %v4302_v10 = vsel %vm3947_vm9, %v4297_v55, %v4299_v50  ;;  %v4301_v20 = vpop.permute.xlu0 %4300  ;;  %4485 = vmatprep.mubr.f32.mxu1 %v12810_v0 }
 0x176   : > { %v4303_v57 = vsel %vm3947_vm9, %v4299_v50, %v4301_v20  ;;  %6154 = vrot.lane.b32.xlu1 %v12974_v14, %s12822_s26  ;;  %vm10443_vm9 = vcmask 506880  }
 0x177   : > { %5688 = vrot.lane.b32.xlu0 %v13692_v59, %s12821_s13  ;;  %12135 = vmatprep.subr.msk.mxu0 %vm259_vm0, %v4303_v57 }
 0x178   : > { %12136 = vmatpush1.msk.msra.mxu0 %vm259_vm0, %v4302_v10  ;;  %v4410_v61 = vpop.permute.xlu1 %4409 }
 0x179   : > { %v4408_v62 = vpop.permute.xlu0 %4407  ;;  %12137 = vmatmul.mubr.msk.f32.vlgmr.msra.gmra.mrb[8].mxu0 %vm255_vm1, %v12134_v58  ;;  %v12172_v58 = vld [vmem:[%s14999_s1 + $0x2a8] sm:$0xff] }
 0x17a   : > { %6152 = vrot.lane.b32.xlu1 %v13692_v59, %s12822_s26  ;;  %v4413_v63 = vsel %vm4411_vm10, %v4408_v62, %v4410_v61  ;;  %4949 = vmatprep.mubr.f32.mxu0 %v12810_v0 }
 0x17b   : > { %6156 = vrot.lane.b32.xlu0 %v13675_v54, %s12822_s26  ;;  %12141 = vmatprep.subr.msk.mxu1 %vm259_vm0, %v4413_v63  ;;  %s12824_s26 = smov 92  }
 0x17c   : > { %v4872_v3 = vpop.permute.xlu1 %4871 }
 0x17d   : > { %v4406_v1 = vpop.permute.xlu0 %4405 }
 0x17e   : > { %v4412_v9 = vsel %vm4411_vm10, %v4406_v1, %v4408_v62  ;;  %6265 = vrot.lane.b32.xlu1 %v13531_v56, %s12823_s25 }
 0x17f   : > { %6263 = vrot.lane.b32.xlu0 %v12923_v5, %s12823_s25  ;;  %12142 = vmatpush1.msk.msra.mxu1 %vm259_vm0, %v4412_v9 }
 0x180   : > { %v4870_v16 = vpop.permute.xlu1 %4869  ;;  %12143 = vmatmul.mubr.msk.f32.vlgmr.msra.gmra.mrb[10].mxu1 %vm255_vm1, %v12140_v7  ;;  %v12155_v7 = vld [vmem:[%s14999_s1 + $0x368] sm:$0xff] }
 0x181   : > { %v4876_v18 = vsel %vm4875_vm11, %v4870_v16, %v4872_v3  ;;  %v4874_v21 = vpop.permute.xlu0 %4873  ;;  %4571 = vmatprep.mubr.f32.mxu1 %v12810_v0 }
 0x182   : > { %v4877_v22 = vsel %vm4875_vm11, %v4872_v3, %v4874_v21  ;;  %6727 = vrot.lane.b32.xlu1 %v12923_v5, %s12824_s26 }
 0x183   : > { %6261 = vrot.lane.b32.xlu0 %v13548_v60, %s12823_s25  ;;  %12162 = vmatprep.subr.msk.mxu0 %vm259_vm0, %v4877_v22 }
 0x184   : > { %12163 = vmatpush1.msk.msra.mxu0 %vm259_vm0, %v4876_v18  ;;  %v4497_v25 = vpop.permute.xlu1 %4496 }
 0x185   : > { %v4495_v6 = vpop.permute.xlu0 %4494  ;;  %12164 = vmatmul.mubr.msk.f32.vlgmr.msra.gmra.mrb[10].mxu0 %vm255_vm1, %v12161_v23  ;;  %v12176_v23 = vld [vmem:[%s14999_s1 + $0x370] sm:$0xff] }
 0x186   : > { %6725 = vrot.lane.b32.xlu1 %v13548_v60, %s12824_s26  ;;  %v4499_v11 = vsel %vm4411_vm10, %v4495_v6, %v4497_v25  ;;  %5035 = vmatprep.mubr.f32.mxu0 %v12810_v0 }
 0x187   : > { %6729 = vrot.lane.b32.xlu0 %v13531_v56, %s12824_s26  ;;  %12144 = vmatprep.subr.msk.mxu1 %vm259_vm0, %v4499_v11 }
 0x188   : > { %v4959_v26 = vpop.permute.xlu1 %4958 }
 0x189   : > { %v4493_v27 = vpop.permute.xlu0 %4492 }
 0x18a   : > { %v4498_v29 = vsel %vm4411_vm10, %v4493_v27, %v4495_v6  ;;  %6352 = vrot.lane.b32.xlu1 %v13567_v15, %s12823_s25 }
 0x18b   : > { %6350 = vrot.lane.b32.xlu0 %v12941_v8, %s12823_s25  ;;  %12145 = vmatpush1.msk.msra.mxu1 %vm259_vm0, %v4498_v29 }
 0x18c   : > { %v4957_v31 = vpop.permute.xlu1 %4956  ;;  %12146 = vmatmul.mubr.msk.f32.vlgmr.msra.gmra.mrb[10].mxu1 %vm255_vm1, %v12139_v28  ;;  %v12182_v28 = vld [vmem:[%s14999_s1 + $0x120] sm:$0xff] }
 0x18d   : > { %v4962_v32 = vsel %vm4875_vm11, %v4957_v31, %v4959_v26  ;;  %v4961_v33 = vpop.permute.xlu0 %4960  ;;  %4659 = vmatprep.mubr.f32.mxu1 %v12810_v0 }
 0x18e   : > { %v4963_v34 = vsel %vm4875_vm11, %v4959_v26, %v4961_v33  ;;  %6814 = vrot.lane.b32.xlu1 %v12941_v8, %s12824_s26 }
 0x18f   : > { %6348 = vrot.lane.b32.xlu0 %v13584_v24, %s12823_s25  ;;  %12165 = vmatprep.subr.msk.mxu0 %vm259_vm0, %v4963_v34 }
 0x190   : > { %12166 = vmatpush1.msk.msra.mxu0 %vm259_vm0, %v4962_v32  ;;  %v4585_v17 = vpop.permute.xlu1 %4584 }
 0x191   : > { %v4583_v36 = vpop.permute.xlu0 %4582  ;;  %12167 = vmatmul.mubr.msk.f32.vlgmr.msra.gmra.mrb[10].mxu0 %vm255_vm1, %v12160_v35  ;;  %v12203_v35 = vld [vmem:[%s14999_s1 + $0x128] sm:$0xff] }
 0x192   : > { %6812 = vrot.lane.b32.xlu1 %v13584_v24, %s12824_s26  ;;  %v4587_v37 = vsel %vm4411_vm10, %v4583_v36, %v4585_v17  ;;  %5123 = vmatprep.mubr.f32.mxu0 %v12810_v0 }
 0x193   : > { %6816 = vrot.lane.b32.xlu0 %v13567_v15, %s12824_s26  ;;  %12148 = vmatprep.subr.msk.mxu1 %vm259_vm0, %v4587_v37 }
 0x194   : > { %v5047_v38 = vpop.permute.xlu1 %5046 }
 0x195   : > { %v4581_v39 = vpop.permute.xlu0 %4580 }
 0x196   : > { %v4586_v41 = vsel %vm4411_vm10, %v4581_v39, %v4583_v36  ;;  %6440 = vrot.lane.b32.xlu1 %v13603_v30, %s12823_s25 }
 0x197   : > { %6438 = vrot.lane.b32.xlu0 %v12917_v4, %s12823_s25  ;;  %12149 = vmatpush1.msk.msra.mxu1 %vm259_vm0, %v4586_v41 }
 0x198   : > { %v5045_v43 = vpop.permute.xlu1 %5044  ;;  %12150 = vmatmul.mubr.msk.f32.vlgmr.msra.gmra.mrb[10].mxu1 %vm255_vm1, %v12147_v40  ;;  %v12181_v40 = vld [vmem:[%s14999_s1 + $0x58] sm:$0xff] }
 0x199   : > { %v5050_v44 = vsel %vm4875_vm11, %v5045_v43, %v5047_v38  ;;  %v5049_v45 = vpop.permute.xlu0 %5048  ;;  %4749 = vmatprep.mubr.f32.mxu1 %v12810_v0 }
 0x19a   : > { %v5051_v12 = vsel %vm4875_vm11, %v5047_v38, %v5049_v45  ;;  %6902 = vrot.lane.b32.xlu1 %v12917_v4, %s12824_s26 }
 0x19b   : > { %6436 = vrot.lane.b32.xlu0 %v13620_v2, %s12823_s25  ;;  %12169 = vmatprep.subr.msk.mxu0 %vm259_vm0, %v5051_v12 }
 0x19c   : > { %12170 = vmatpush1.msk.msra.mxu0 %vm259_vm0, %v5050_v44  ;;  %v4675_v47 = vpop.permute.xlu1 %4674 }
 0x19d   : > { %v4673_v48 = vpop.permute.xlu0 %4672  ;;  %12171 = vmatmul.mubr.msk.f32.vlgmr.msra.gmra.mrb[10].mxu0 %vm255_vm1, %v12168_v19  ;;  %v12202_v19 = vld [vmem:[%s14999_s1 + $0x60] sm:$0xff] }
 0x19e   : > { %6900 = vrot.lane.b32.xlu1 %v13620_v2, %s12824_s26  ;;  %v4677_v49 = vsel %vm4411_vm10, %v4673_v48, %v4675_v47  ;;  %5213 = vmatprep.mubr.f32.mxu0 %v12810_v0 }
 0x19f   : > { %6904 = vrot.lane.b32.xlu0 %v13603_v30, %s12824_s26  ;;  %12152 = vmatprep.subr.msk.mxu1 %vm259_vm0, %v4677_v49 }
 0x1a0   : > { %v5137_v50 = vpop.permute.xlu1 %5136 }
 0x1a1   : > { %v4671_v51 = vpop.permute.xlu0 %4670 }
 0x1a2   : > { %v4676_v53 = vsel %vm4411_vm10, %v4671_v51, %v4673_v48  ;;  %6530 = vrot.lane.b32.xlu1 %v13639_v42, %s12823_s25 }
 0x1a3   : > { %6528 = vrot.lane.b32.xlu0 %v12962_v13, %s12823_s25  ;;  %12153 = vmatpush1.msk.msra.mxu1 %vm259_vm0, %v4676_v53 }
 0x1a4   : > { %v5135_v55 = vpop.permute.xlu1 %5134  ;;  %12154 = vmatmul.mubr.msk.f32.vlgmr.msra.gmra.mrb[10].mxu1 %vm255_vm1, %v12151_v52  ;;  %v12189_v52 = vld [vmem:[%s14999_s1 + $0x1e8] sm:$0xff] }
 0x1a5   : > { %v5140_v10 = vsel %vm4875_vm11, %v5135_v55, %v5137_v50  ;;  %v5139_v20 = vpop.permute.xlu0 %5138  ;;  %4839 = vmatprep.mubr.f32.mxu1 %v12810_v0 }
 0x1a6   : > { %v5141_v57 = vsel %vm4875_vm11, %v5137_v50, %v5139_v20  ;;  %6992 = vrot.lane.b32.xlu1 %v12962_v13, %s12824_s26 }
 0x1a7   : > { %6526 = vrot.lane.b32.xlu0 %v13656_v46, %s12823_s25  ;;  %12173 = vmatprep.subr.msk.mxu0 %vm259_vm0, %v5141_v57 }
 0x1a8   : > { %12174 = vmatpush1.msk.msra.mxu0 %vm259_vm0, %v5140_v10  ;;  %v4765_v61 = vpop.permute.xlu1 %4764 }
 0x1a9   : > { %v4763_v62 = vpop.permute.xlu0 %4762  ;;  %12175 = vmatmul.mubr.msk.f32.vlgmr.msra.gmra.mrb[10].mxu0 %vm255_vm1, %v12172_v58  ;;  %v12210_v58 = vld [vmem:[%s14999_s1 + $0x1f0] sm:$0xff] }
 0x1aa   : > { %6990 = vrot.lane.b32.xlu1 %v13656_v46, %s12824_s26  ;;  %v4767_v63 = vsel %vm4411_vm10, %v4763_v62, %v4765_v61  ;;  %5303 = vmatprep.mubr.f32.mxu0 %v12810_v0 }
 0x1ab   : > { %6994 = vrot.lane.b32.xlu0 %v13639_v42, %s12824_s26  ;;  %12156 = vmatprep.subr.msk.mxu1 %vm259_vm0, %v4767_v63 }
 0x1ac   : > { %v5227_v3 = vpop.permute.xlu1 %5226 }
 0x1ad   : > { %v4761_v1 = vpop.permute.xlu0 %4760 }
 0x1ae   : > { %v4766_v9 = vsel %vm4411_vm10, %v4761_v1, %v4763_v62  ;;  %6620 = vrot.lane.b32.xlu1 %v13675_v54, %s12823_s25  ;;  %vm10907_vm10 = vcmask 498688  }
 0x1af   : > { %6618 = vrot.lane.b32.xlu0 %v12974_v14, %s12823_s25  ;;  %12157 = vmatpush1.msk.msra.mxu1 %vm259_vm0, %v4766_v9 }
 0x1b0   : > { %v5225_v16 = vpop.permute.xlu1 %5224  ;;  %12158 = vmatmul.mubr.msk.f32.vlgmr.msra.gmra.mrb[10].mxu1 %vm255_vm1, %v12155_v7  ;;  %v12193_v7 = vld [vmem:[%s14999_s1 + $0x2b0] sm:$0xff] }
 0x1b1   : > { %v5230_v18 = vsel %vm4875_vm11, %v5225_v16, %v5227_v3  ;;  %v5229_v21 = vpop.permute.xlu0 %5228  ;;  %5413 = vmatprep.mubr.f32.mxu1 %v12810_v0 }
 0x1b2   : > { %v5231_v22 = vsel %vm4875_vm11, %v5227_v3, %v5229_v21  ;;  %7082 = vrot.lane.b32.xlu1 %v12974_v14, %s12824_s26  ;;  %vm11371_vm11 = vcmask 490496  }
 0x1b3   : > { %6616 = vrot.lane.b32.xlu0 %v13692_v59, %s12823_s25  ;;  %12177 = vmatprep.subr.msk.mxu0 %vm259_vm0, %v5231_v22 }
 0x1b4   : > { %12178 = vmatpush1.msk.msra.mxu0 %vm259_vm0, %v5230_v18  ;;  %v5338_v25 = vpop.permute.xlu1 %5337 }
 0x1b5   : > { %12179 = vmatmul.mubr.msk.f32.vlgmr.msra.gmra.mrb[10].mxu0 %vm255_vm1, %v12176_v23  ;;  %v5336_v6 = vpop.permute.xlu0 %5335  ;;  %v12214_v23 = vld [vmem:[%s14999_s1 + $0x2b8] sm:$0xff] }
 0x1b6   : > { %7080 = vrot.lane.b32.xlu1 %v13692_v59, %s12824_s26  ;;  %v5341_v11 = vsel %vm5339_vm12, %v5336_v6, %v5338_v25  ;;  %5877 = vmatprep.mubr.f32.mxu0 %v12810_v0 }
 0x1b7   : > { %7084 = vrot.lane.b32.xlu0 %v13675_v54, %s12824_s26  ;;  %12183 = vmatprep.subr.msk.mxu1 %vm259_vm0, %v5341_v11  ;;  %s12826_s26 = smov 79  }
 0x1b8   : > { %v5800_v26 = vpop.permute.xlu1 %5799 }
 0x1b9   : > { %v5334_v27 = vpop.permute.xlu0 %5333 }
 0x1ba   : > { %v5340_v29 = vsel %vm5339_vm12, %v5334_v27, %v5336_v6  ;;  %7193 = vrot.lane.b32.xlu1 %v13531_v56, %s12825_s30 }
 0x1bb   : > { %7191 = vrot.lane.b32.xlu0 %v12923_v5, %s12825_s30  ;;  %12184 = vmatpush1.msk.msra.mxu1 %vm259_vm0, %v5340_v29  ;;  %v12197_v29 = vld [vmem:[%s14999_s1 + $0x378] sm:$0xff] }
 0x1bc   : > { %v5798_v31 = vpop.permute.xlu1 %5797  ;;  %12185 = vmatmul.mubr.msk.f32.vlgmr.msra.gmra.mrb[12].mxu1 %vm255_vm1, %v12182_v28 }
 0x1bd   : > { %v5804_v32 = vsel %vm5803_vm13, %v5798_v31, %v5800_v26  ;;  %v5802_v33 = vpop.permute.xlu0 %5801  ;;  %5499 = vmatprep.mubr.f32.mxu1 %v12810_v0 }
 0x1be   : > { %v5805_v34 = vsel %vm5803_vm13, %v5800_v26, %v5802_v33  ;;  %7655 = vrot.lane.b32.xlu1 %v12923_v5, %s12826_s26  ;;  %v668_v26 = vlaneseq  ;;  %v410_v33 = vpop.f32.mrb[0].mxu1 }
 0x1bf   : > { %7189 = vrot.lane.b32.xlu0 %v13548_v60, %s12825_s30  ;;  %12204 = vmatprep.subr.msk.mxu0 %vm259_vm0, %v5805_v34  ;;  %v660_v34 = vpop.f32.mrb[0].mxu0 }
 0x1c0   : > { %12205 = vmatpush1.msk.msra.mxu0 %vm259_vm0, %v5804_v32  ;;  %v5425_v17 = vpop.permute.xlu1 %5424  ;;  %v669_v31 = vshrl.u32 %v668_v26, 7  ;;  %v12033_v26 = vld [vmem:[%s15000_s2 + $0x4] ss:$8 sm:$0x3] }
 0x1c1   : > { %v5423_v36 = vpop.permute.xlu0 %5422  ;;  %12206 = vmatmul.mubr.msk.f32.vlgmr.msra.gmra.mrb[12].mxu0 %vm255_vm1, %v12203_v35 }
 0x1c2   : > { %7653 = vrot.lane.b32.xlu1 %v13548_v60, %s12826_s26  ;;  %v5427_v37 = vsel %vm5339_vm12, %v5423_v36, %v5425_v17  ;;  %5963 = vmatprep.mubr.f32.mxu0 %v12810_v0  ;;  %v13985_v35 = vsub.s32 0, %v669_v31  ;;  %v13987_v17 = vsub.s32 1, %v669_v31 }
 0x1c3   : > { %7657 = vrot.lane.b32.xlu0 %v13531_v56, %s12826_s26  ;;  %12186 = vmatprep.subr.msk.mxu1 %vm259_vm0, %v5427_v37  ;;  %v249_v37 = vld [vmem:[%s15000_s2] ss:$8 sm:$0x3] }
 0x1c4   : > { %v5887_v38 = vpop.permute.xlu1 %5886  ;;  %v2532_v31 = vrot.slane %v12033_v26, %v13985_v35 }
 0x1c5   : > { %v5421_v39 = vpop.permute.xlu0 %5420 }
 0x1c6   : > { %v5426_v41 = vsel %vm5339_vm12, %v5421_v39, %v5423_v36  ;;  %7280 = vrot.lane.b32.xlu1 %v13567_v15, %s12825_s30 }
 0x1c7   : > { %7278 = vrot.lane.b32.xlu0 %v12941_v8, %s12825_s30  ;;  %12187 = vmatpush1.msk.msra.mxu1 %vm259_vm0, %v5426_v41  ;;  %v12477_v41 = vadd.f32 %v660_v34, %v410_v33 }
 0x1c8   : > { %v5885_v43 = vpop.permute.xlu1 %5884  ;;  %12188 = vmatmul.mubr.msk.f32.vlgmr.msra.gmra.mrb[12].mxu1 %vm255_vm1, %v12181_v40 }
 0x1c9   : > { %v5890_v44 = vsel %vm5803_vm13, %v5885_v43, %v5887_v38  ;;  %v5889_v45 = vpop.permute.xlu0 %5888  ;;  %5587 = vmatprep.mubr.f32.mxu1 %v12810_v0  ;;  %v671_v43 = vrot.slane %v249_v37, %v13985_v35 }
 0x1ca   : > { %v5891_v12 = vsel %vm5803_vm13, %v5887_v38, %v5889_v45  ;;  %7742 = vrot.lane.b32.xlu1 %v12941_v8, %s12826_s26  ;;  %v662_v38 = vpop.f32.mrb[1].mxu0  ;;  %v675_v45 = vrot.slane %v249_v37, %v13987_v17  ;;  %v2536_v37 = vrot.slane %v12033_v26, %v13987_v17 }
 0x1cb   : > { %7276 = vrot.lane.b32.xlu0 %v13584_v24, %s12825_s30  ;;  %12207 = vmatprep.subr.msk.mxu0 %vm259_vm0, %v5891_v12  ;;  %v11970_v12 = vld [vmem:[%s15000_s2 + $0x1] ss:$8 sm:$0x3] }
 0x1cc   : > { %12208 = vmatpush1.msk.msra.mxu0 %vm259_vm0, %v5890_v44  ;;  %v5513_v47 = vpop.permute.xlu1 %5512  ;;  %v412_v44 = vpop.f32.mrb[1].mxu1 }
 0x1cd   : > { %v5511_v48 = vpop.permute.xlu0 %5510  ;;  %12209 = vmatmul.mubr.msk.f32.vlgmr.msra.gmra.mrb[12].mxu0 %vm255_vm1, %v12202_v19 }
 0x1ce   : > { %7740 = vrot.lane.b32.xlu1 %v13584_v24, %s12826_s26  ;;  %v5515_v49 = vsel %vm5339_vm12, %v5511_v48, %v5513_v47  ;;  %6051 = vmatprep.mubr.f32.mxu0 %v12810_v0  ;;  %v12218_v47 = vld [vmem:[%s14999_s1 + $0x380] sm:$0xff] }
 0x1cf   : > { %7744 = vrot.lane.b32.xlu0 %v13567_v15, %s12826_s26  ;;  %12190 = vmatprep.subr.msk.mxu1 %vm259_vm0, %v5515_v49  ;;  %v1129_v49 = vpop.f32.mrb[2].mxu1 }
 0x1d0   : > { %v5975_v50 = vpop.permute.xlu1 %5974 }
 0x1d1   : > { %v5509_v51 = vpop.permute.xlu0 %5508 }
 0x1d2   : > { %v5514_v53 = vsel %vm5339_vm12, %v5509_v51, %v5511_v48  ;;  %7368 = vrot.lane.b32.xlu1 %v13603_v30, %s12825_s30  ;;  %v12478_v48 = vadd.f32 %v662_v38, %v412_v44  ;;  %v1144_v51 = vrot.slane %v11970_v12, %v13987_v17 }
 0x1d3   : > { %7366 = vrot.lane.b32.xlu0 %v12917_v4, %s12825_s30  ;;  %12191 = vmatpush1.msk.msra.mxu1 %vm259_vm0, %v5514_v53  ;;  %v678_v53 = vmul.f32 %v12477_v41, %v671_v43 }
 0x1d4   : > { %v5973_v55 = vpop.permute.xlu1 %5972  ;;  %12192 = vmatmul.mubr.msk.f32.vlgmr.msra.gmra.mrb[12].mxu1 %vm255_vm1, %v12189_v52  ;;  %v11991_v52 = vld [vmem:[%s15000_s2 + $0x2] ss:$8 sm:$0x3] }
 0x1d5   : > { %v5978_v10 = vsel %vm5803_vm13, %v5973_v55, %v5975_v50  ;;  %v5977_v20 = vpop.permute.xlu0 %5976  ;;  %5677 = vmatprep.mubr.f32.mxu1 %v12810_v0  ;;  %v1131_v55 = vpop.f32.mrb[3].mxu1 }
 0x1d6   : > { %v5979_v57 = vsel %vm5803_vm13, %v5975_v50, %v5977_v20  ;;  %7830 = vrot.lane.b32.xlu1 %v12917_v4, %s12826_s26  ;;  %v1140_v50 = vrot.slane %v11970_v12, %v13985_v35  ;;  %v1604_v20 = vrot.slane %v11991_v52, %v13985_v35 }
 0x1d7   : > { %7364 = vrot.lane.b32.xlu0 %v13620_v2, %s12825_s30  ;;  %12211 = vmatprep.subr.msk.mxu0 %vm259_vm0, %v5979_v57  ;;  %v1608_v57 = vrot.slane %v11991_v52, %v13987_v17 }
 0x1d8   : > { %12212 = vmatpush1.msk.msra.mxu0 %vm259_vm0, %v5978_v10  ;;  %v5603_v61 = vpop.permute.xlu1 %5602  ;;  %v1593_v10 = vpop.f32.mrb[2].mxu0 }
 0x1d9   : > { %v5601_v62 = vpop.permute.xlu0 %5600  ;;  %12213 = vmatmul.mubr.msk.f32.vlgmr.msra.gmra.mrb[12].mxu0 %vm255_vm1, %v12210_v58 }
 0x1da   : > { %7828 = vrot.lane.b32.xlu1 %v13620_v2, %s12826_s26  ;;  %v5605_v63 = vsel %vm5339_vm12, %v5601_v62, %v5603_v61  ;;  %6141 = vmatprep.mubr.f32.mxu0 %v12810_v0  ;;  %v679_v61 = vmul.f32 %v12478_v48, %v675_v45 }
 0x1db   : > { %7832 = vrot.lane.b32.xlu0 %v13603_v30, %s12826_s26  ;;  %12194 = vmatprep.subr.msk.mxu1 %vm259_vm0, %v5605_v63  ;;  %v1148_v63 = vmul.f32 %v1144_v51, %v1131_v55  ;;  %v12245_v51 = vld [vmem:[%s14999_s1 + $0x138] sm:$0xff] }
 0x1dc   : > { %v6065_v3 = vpop.permute.xlu1 %6064 }
 0x1dd   : > { %v5599_v1 = vpop.permute.xlu0 %5598 }
 0x1de   : > { %v5604_v9 = vsel %vm5339_vm12, %v5599_v1, %v5601_v62  ;;  %7458 = vrot.lane.b32.xlu1 %v13639_v42, %s12825_s30  ;;  %v1147_v62 = vmul.f32 %v1140_v50, %v1129_v49  ;;  %v12012_v1 = vld [vmem:[%s15000_s2 + $0x3] ss:$8 sm:$0x3] }
 0x1df   : > { %7456 = vrot.lane.b32.xlu0 %v12962_v13, %s12825_s30  ;;  %12195 = vmatpush1.msk.msra.mxu1 %vm259_vm0, %v5604_v9  ;;  %v1611_v9 = vmul.f32 %v1604_v20, %v1593_v10 }
 0x1e0   : > { %v6063_v16 = vpop.permute.xlu1 %6062  ;;  %12196 = vmatmul.mubr.msk.f32.vlgmr.msra.gmra.mrb[12].mxu1 %vm255_vm1, %v12193_v7 }
 0x1e1   : > { %v6068_v18 = vsel %vm5803_vm13, %v6063_v16, %v6065_v3  ;;  %v6067_v21 = vpop.permute.xlu0 %6066  ;;  %5767 = vmatprep.mubr.f32.mxu1 %v12810_v0 }
 0x1e2   : > { %v6069_v22 = vsel %vm5803_vm13, %v6065_v3, %v6067_v21  ;;  %7920 = vrot.lane.b32.xlu1 %v12962_v13, %s12826_s26  ;;  %v1595_v3 = vpop.f32.mrb[3].mxu0  ;;  %v2068_v21 = vrot.slane %v12012_v1, %v13985_v35 }
 0x1e3   : > { %7454 = vrot.lane.b32.xlu0 %v13656_v46, %s12825_s30  ;;  %12215 = vmatprep.subr.msk.mxu0 %vm259_vm0, %v6069_v22  ;;  %v1612_v16 = vmul.f32 %v1608_v57, %v1595_v3  ;;  %v2072_v22 = vrot.slane %v12012_v1, %v13987_v17  ;;  %v12223_v57 = vld [vmem:[%s14999_s1 + $0x68] sm:$0xff]  ;;  %v12244_v3 = vld [vmem:[%s14999_s1 + $0x70] sm:$0xff] }
 0x1e4   : > { %12216 = vmatpush1.msk.msra.mxu0 %vm259_vm0, %v6068_v18  ;;  %v5693_v25 = vpop.permute.xlu1 %5692  ;;  %v2057_v18 = vpop.f32.mrb[4].mxu1 }
 0x1e5   : > { %v5691_v6 = vpop.permute.xlu0 %5690  ;;  %12217 = vmatmul.mubr.msk.f32.vlgmr.msra.gmra.mrb[12].mxu0 %vm255_vm1, %v12214_v23 }
 0x1e6   : > { %7918 = vrot.lane.b32.xlu1 %v13656_v46, %s12826_s26  ;;  %v5695_v11 = vsel %vm5339_vm12, %v5691_v6, %v5693_v25  ;;  %6231 = vmatprep.mubr.f32.mxu0 %v12810_v0  ;;  %v1149_v25 = vadd.f32 %v1147_v62, %v678_v53  ;;  %v12054_v62 = vld [vmem:[%s15000_s2 + $0x5] ss:$8 sm:$0x3] }
 0x1e7   : > { %7922 = vrot.lane.b32.xlu0 %v13639_v42, %s12826_s26  ;;  %12198 = vmatprep.subr.msk.mxu1 %vm259_vm0, %v5695_v11  ;;  %v2059_v11 = vpop.f32.mrb[5].mxu1 }
 0x1e8   : > { %v6155_v27 = vpop.permute.xlu1 %6154  ;;  %v1613_v33 = vadd.f32 %v1611_v9, %v1149_v25 }
 0x1e9   : > { %v5689_v28 = vpop.permute.xlu0 %5688 }
 0x1ea   : > { %v5694_v32 = vsel %vm5339_vm12, %v5689_v28, %v5691_v6  ;;  %7548 = vrot.lane.b32.xlu1 %v13675_v54, %s12825_s30  ;;  %v1150_v6 = vadd.f32 %v1148_v63, %v679_v61  ;;  %v2076_v28 = vmul.f32 %v2072_v22, %v2059_v11 }
 0x1eb   : > { %7546 = vrot.lane.b32.xlu0 %v12974_v14, %s12825_s30  ;;  %12199 = vmatpush1.msk.msra.mxu1 %vm259_vm0, %v5694_v32 }
 0x1ec   : > { %12200 = vmatmul.mubr.msk.f32.vlgmr.msra.gmra.mrb[12].mxu1 %vm255_vm1, %v12197_v29  ;;  %v6153_v36 = vpop.permute.xlu1 %6152  ;;  %v2521_v29 = vpop.f32.mrb[4].mxu0  ;;  %v1614_v34 = vadd.f32 %v1612_v16, %v1150_v6  ;;  %v3000_v16 = vrot.slane %v12054_v62, %v13987_v17 }
 0x1ed   : > { %v6158_v39 = vsel %vm5803_vm13, %v6153_v36, %v6155_v27  ;;  %v6157_v40 = vpop.permute.xlu0 %6156  ;;  %6341 = vmatprep.mubr.f32.mxu1 %v12810_v0  ;;  %v2523_v36 = vpop.f32.mrb[5].mxu0 }
 0x1ee   : > { %v6159_v19 = vsel %vm5803_vm13, %v6155_v27, %v6157_v40  ;;  %8010 = vrot.lane.b32.xlu1 %v12974_v14, %s12826_s26  ;;  %v2075_v27 = vmul.f32 %v2068_v21, %v2057_v18  ;;  %v2539_v40 = vmul.f32 %v2532_v31, %v2521_v29  ;;  %v2078_v44 = vadd.f32 %v2076_v28, %v1614_v34  ;;  %v12075_v21 = vld [vmem:[%s15000_s2 + $0x6] ss:$8 sm:$0x3] }
 0x1ef   : > { %7544 = vrot.lane.b32.xlu0 %v13692_v59, %s12825_s30  ;;  %12219 = vmatprep.subr.msk.mxu0 %vm259_vm0, %v6159_v19  ;;  %v2540_v45 = vmul.f32 %v2536_v37, %v2523_v36  ;;  %v3464_v29 = vrot.slane %v12075_v21, %v13987_v17 }
 0x1f0   : > { %12220 = vmatpush1.msk.msra.mxu0 %vm259_vm0, %v6158_v39  ;;  %v6266_v58 = vpop.permute.xlu1 %6265  ;;  %v12224_v39 = vld [vmem:[%s14999_s1 + $0x130] sm:$0xff]  ;;  %v2077_v43 = vadd.f32 %v2075_v27, %v1613_v33  ;;  %v3460_v27 = vrot.slane %v12075_v21, %v13985_v35 }
 0x1f1   : > { %12221 = vmatmul.mubr.msk.f32.vlgmr.msra.gmra.mrb[12].mxu0 %vm255_vm1, %v12218_v47  ;;  %v6264_v7 = vpop.permute.xlu0 %6263  ;;  %v14045_v47 = vadd.f32 %v2540_v45, %v2078_v44 }
 0x1f2   : > { %8008 = vrot.lane.b32.xlu1 %v13692_v59, %s12826_s26  ;;  %v6269_v23 = vsel %vm6267_vm14, %v6264_v7, %v6266_v58  ;;  %6805 = vmatprep.mubr.f32.mxu0 %v12810_v0  ;;  %v2541_v19 = vadd.f32 %v2539_v40, %v2077_v43  ;;  %v12252_v40 = vld [vmem:[%s14999_s1 + $0x200] sm:$0xff] }
 0x1f3   : > { %8012 = vrot.lane.b32.xlu0 %v13675_v54, %s12826_s26  ;;  %12225 = vmatprep.subr.msk.mxu1 %vm259_vm0, %v6269_v23  ;;  %s12827_s26 = smov 78  }
 0x1f4   : > { %v6728_v32 = vpop.permute.xlu1 %6727 }
 0x1f5   : > { %v6262_v38 = vpop.permute.xlu0 %6261 }
 0x1f6   : > { %v6268_v41 = vsel %vm6267_vm14, %v6262_v38, %v6264_v7  ;;  %8121 = vrot.lane.b32.xlu1 %v13531_v56, %s12827_s26  ;;  %v2996_v7 = vrot.slane %v12054_v62, %v13985_v35 }
 0x1f7   : > { %8119 = vrot.lane.b32.xlu0 %v12923_v5, %s12827_s26  ;;  %12226 = vmatpush1.msk.msra.mxu1 %vm259_vm0, %v6268_v41 }
 0x1f8   : > { %v6726_v12 = vpop.permute.xlu1 %6725  ;;  %12227 = vmatmul.mubr.msk.f32.vlgmr.msra.gmra.mrb[14].mxu1 %vm255_vm1, %v12224_v39 }
 0x1f9   : > { %v6732_v48 = vsel %vm6731_vm15, %v6726_v12, %v6728_v32  ;;  %v6730_v49 = vpop.permute.xlu0 %6729  ;;  %6427 = vmatprep.mubr.f32.mxu1 %v12810_v0 }
 0x1fa   : > { %v6733_v50 = vsel %vm6731_vm15, %v6728_v32, %v6730_v49  ;;  %8583 = vrot.lane.b32.xlu1 %v12923_v5, %s12828_s29  ;;  %v12235_v49 = vld [vmem:[%s14999_s1 + $0x2c0] sm:$0xff] }
 0x1fb   : > { %8117 = vrot.lane.b32.xlu0 %v13548_v60, %s12827_s26  ;;  %12246 = vmatprep.subr.msk.mxu0 %vm259_vm0, %v6733_v50 }
 0x1fc   : > { %12247 = vmatpush1.msk.msra.mxu0 %vm259_vm0, %v6732_v48  ;;  %v6353_v52 = vpop.permute.xlu1 %6352 }
 0x1fd   : > { %v6351_v53 = vpop.permute.xlu0 %6350  ;;  %12248 = vmatmul.mubr.msk.f32.vlgmr.msra.gmra.mrb[14].mxu0 %vm255_vm1, %v12245_v51 }
 0x1fe   : > { %8581 = vrot.lane.b32.xlu1 %v13548_v60, %s12828_s29  ;;  %v6355_v55 = vsel %vm6267_vm14, %v6351_v53, %v6353_v52  ;;  %6891 = vmatprep.mubr.f32.mxu0 %v12810_v0 }
 0x1ff   : > { %8585 = vrot.lane.b32.xlu0 %v13531_v56, %s12828_s29  ;;  %12228 = vmatprep.subr.msk.mxu1 %vm259_vm0, %v6355_v55 }
 0x200   : > { %v6815_v10 = vpop.permute.xlu1 %6814 }
 0x201   : > { %v6349_v20 = vpop.permute.xlu0 %6348 }
 0x202   : > { %v6354_v58 = vsel %vm6267_vm14, %v6349_v20, %v6351_v53  ;;  %8208 = vrot.lane.b32.xlu1 %v13567_v15, %s12827_s26  ;;  %v12256_v53 = vld [vmem:[%s14999_s1 + $0x2c8] sm:$0xff] }
 0x203   : > { %8206 = vrot.lane.b32.xlu0 %v12941_v8, %s12827_s26  ;;  %12229 = vmatpush1.msk.msra.mxu1 %vm259_vm0, %v6354_v58 }
 0x204   : > { %v6813_v60 = vpop.permute.xlu1 %6812  ;;  %12230 = vmatmul.mubr.msk.f32.vlgmr.msra.gmra.mrb[14].mxu1 %vm255_vm1, %v12223_v57 }
 0x205   : > { %v6818_v56 = vsel %vm6731_vm15, %v6813_v60, %v6815_v10  ;;  %v6817_v61 = vpop.permute.xlu0 %6816  ;;  %6515 = vmatprep.mubr.f32.mxu1 %v12810_v0  ;;  %v12239_v60 = vld [vmem:[%s14999_s1 + $0x388] sm:$0xff] }
 0x206   : > { %v6819_v63 = vsel %vm6731_vm15, %v6815_v10, %v6817_v61  ;;  %8670 = vrot.lane.b32.xlu1 %v12941_v8, %s12828_s29 }
 0x207   : > { %8204 = vrot.lane.b32.xlu0 %v13584_v24, %s12827_s26  ;;  %12249 = vmatprep.subr.msk.mxu0 %vm259_vm0, %v6819_v63  ;;  %v12260_v63 = vld [vmem:[%s14999_s1 + $0x390] sm:$0xff] }
 0x208   : > { %12250 = vmatpush1.msk.msra.mxu0 %vm259_vm0, %v6818_v56  ;;  %v6441_v1 = vpop.permute.xlu1 %6440 }
 0x209   : > { %v6439_v9 = vpop.permute.xlu0 %6438  ;;  %12251 = vmatmul.mubr.msk.f32.vlgmr.msra.gmra.mrb[14].mxu0 %vm255_vm1, %v12244_v3 }
 0x20a   : > { %8668 = vrot.lane.b32.xlu1 %v13584_v24, %s12828_s29  ;;  %v6443_v18 = vsel %vm6267_vm14, %v6439_v9, %v6441_v1  ;;  %6979 = vmatprep.mubr.f32.mxu0 %v12810_v0  ;;  %v12231_v24 = vld [vmem:[%s14999_s1 + $0x1f8] sm:$0xff] }
 0x20b   : > { %8672 = vrot.lane.b32.xlu0 %v13567_v15, %s12828_s29  ;;  %12232 = vmatprep.subr.msk.mxu1 %vm259_vm0, %v6443_v18  ;;  %v2985_v22 = vpop.f32.mrb[6].mxu1  ;;  %v12266_v18 = vld [vmem:[%s14999_s1 + $0x140] sm:$0xff] }
 0x20c   : > { %v6903_v23 = vpop.permute.xlu1 %6902  ;;  %v3003_v25 = vmul.f32 %v2996_v7, %v2985_v22  ;;  %v2987_v6 = vpop.f32.mrb[7].mxu1  ;;  %v14207_v22 = vld [vmem:[%s12902_s27 + $0x14] sm:$0xf] }
 0x20d   : > { %v6437_v11 = vpop.permute.xlu0 %6436  ;;  %v3004_v26 = vmul.f32 %v3000_v16, %v2987_v6  ;;  %v12287_v6 = vld [vmem:[%s14999_s1 + $0x148] sm:$0xff] }
 0x20e   : > { %v6442_v28 = vsel %vm6267_vm14, %v6437_v11, %v6439_v9  ;;  %8296 = vrot.lane.b32.xlu1 %v13603_v30, %s12827_s26  ;;  %v3005_v15 = vadd.f32 %v3003_v25, %v2541_v19  ;;  %v14224_v11 = vld [vmem:[%s12902_s27 + $0xc] sm:$0xff] }
 0x20f   : > { %8294 = vrot.lane.b32.xlu0 %v12917_v4, %s12827_s26  ;;  %12233 = vmatpush1.msk.msra.mxu1 %vm259_vm0, %v6442_v28  ;;  %v3006_v31 = vadd.f32 %v3004_v26, %v14045_v47 }
 0x210   : > { %v6901_v32 = vpop.permute.xlu1 %6900  ;;  %12234 = vmatmul.mubr.msk.f32.vlgmr.msra.gmra.mrb[14].mxu1 %vm255_vm1, %v12231_v24  ;;  %v3449_v33 = vpop.f32.mrb[6].mxu0 }
 0x211   : > { %v6906_v34 = vsel %vm6731_vm15, %v6901_v32, %v6903_v23  ;;  %v6905_v36 = vpop.permute.xlu0 %6904  ;;  %6605 = vmatprep.mubr.f32.mxu1 %v12810_v0  ;;  %v3467_v37 = vmul.f32 %v3460_v27, %v3449_v33  ;;  %v3451_v38 = vpop.f32.mrb[7].mxu0  ;;  %v14243_v32 = vld [vmem:[%s12902_s27 + $0x8] sm:$0xf] }
 0x212   : > { %v6907_v39 = vsel %vm6731_vm15, %v6903_v23, %v6905_v36  ;;  %8758 = vrot.lane.b32.xlu1 %v12917_v4, %s12828_s29  ;;  %v3468_v41 = vmul.f32 %v3464_v29, %v3451_v38  ;;  %v12265_v29 = vld [vmem:[%s14999_s1 + $0x78] sm:$0xff] }
 0x213   : > { %8292 = vrot.lane.b32.xlu0 %v13620_v2, %s12827_s26  ;;  %12253 = vmatprep.subr.msk.mxu0 %vm259_vm0, %v6907_v39  ;;  %v14129_v43 = vadd.f32 %v3467_v37, %v3005_v15  ;;  %v12096_v37 = vld [vmem:[%s15000_s2 + $0x7] ss:$8 sm:$0x3] }
 0x214   : > { %12254 = vmatpush1.msk.msra.mxu0 %vm259_vm0, %v6906_v34  ;;  %v6531_v44 = vpop.permute.xlu1 %6530  ;;  %v14132_v45 = vadd.f32 %v3468_v41, %v3006_v31  ;;  %v12286_v39 = vld [vmem:[%s14999_s1 + $0x80] sm:$0xff] }
 0x215   : > { %v6529_v12 = vpop.permute.xlu0 %6528  ;;  %12255 = vmatmul.mubr.msk.f32.vlgmr.msra.gmra.mrb[14].mxu0 %vm255_vm1, %v12252_v40  ;;  %v14263_v40 = vld [vmem:[%s12902_s27] sm:$0xff] }
 0x216   : > { %8756 = vrot.lane.b32.xlu1 %v13620_v2, %s12828_s29  ;;  %v6533_v19 = vsel %vm6267_vm14, %v6529_v12, %v6531_v44  ;;  %7069 = vmatprep.mubr.f32.mxu0 %v12810_v0  ;;  %v3924_v44 = vrot.slane %v12096_v37, %v13985_v35 }
 0x217   : > { %8760 = vrot.lane.b32.xlu0 %v13603_v30, %s12828_s29  ;;  %12236 = vmatprep.subr.msk.mxu1 %vm259_vm0, %v6533_v19  ;;  %v3928_v19 = vrot.slane %v12096_v37, %v13987_v17 }
 0x218   : > { %v6993_v47 = vpop.permute.xlu1 %6992 }
 0x219   : > { %v6527_v48 = vpop.permute.xlu0 %6526 }
 0x21a   : > { %v6532_v50 = vsel %vm6267_vm14, %v6527_v48, %v6529_v12  ;;  %8386 = vrot.lane.b32.xlu1 %v13639_v42, %s12827_s26  ;;  %v12117_v48 = vld [vmem:[%s15000_s2 + $0x10] ss:$8 sm:$0x3] }
 0x21b   : > { %8384 = vrot.lane.b32.xlu0 %v12962_v13, %s12827_s26  ;;  %12237 = vmatpush1.msk.msra.mxu1 %vm259_vm0, %v6532_v50 }
 0x21c   : > { %v6991_v2 = vpop.permute.xlu1 %6990  ;;  %12238 = vmatmul.mubr.msk.f32.vlgmr.msra.gmra.mrb[14].mxu1 %vm255_vm1, %v12235_v49 }
 0x21d   : > { %v6996_v30 = vsel %vm6731_vm15, %v6991_v2, %v6993_v47  ;;  %v6995_v51 = vpop.permute.xlu0 %6994  ;;  %6695 = vmatprep.mubr.f32.mxu1 %v12810_v0 }
 0x21e   : > { %v6997_v52 = vsel %vm6731_vm15, %v6993_v47, %v6995_v51  ;;  %8848 = vrot.lane.b32.xlu1 %v12962_v13, %s12828_s29 }
 0x21f   : > { %8382 = vrot.lane.b32.xlu0 %v13656_v46, %s12827_s26  ;;  %12257 = vmatprep.subr.msk.mxu0 %vm259_vm0, %v6997_v52  ;;  %v12273_v52 = vld [vmem:[%s14999_s1 + $0x208] sm:$0xff] }
 0x220   : > { %12258 = vmatpush1.msk.msra.mxu0 %vm259_vm0, %v6996_v30  ;;  %v6621_v55 = vpop.permute.xlu1 %6620 }
 0x221   : > { %v6619_v10 = vpop.permute.xlu0 %6618  ;;  %12259 = vmatmul.mubr.msk.f32.vlgmr.msra.gmra.mrb[14].mxu0 %vm255_vm1, %v12256_v53 }
 0x222   : > { %8846 = vrot.lane.b32.xlu1 %v13656_v46, %s12828_s29  ;;  %v6623_v20 = vsel %vm6267_vm14, %v6619_v10, %v6621_v55  ;;  %7159 = vmatprep.mubr.f32.mxu0 %v12810_v0  ;;  %v4388_v55 = vrot.slane %v12117_v48, %v13985_v35 }
 0x223   : > { %8850 = vrot.lane.b32.xlu0 %v13639_v42, %s12828_s29  ;;  %12240 = vmatprep.subr.msk.mxu1 %vm259_vm0, %v6623_v20  ;;  %v14288_v20 = vld [vmem:[%s12902_s27 + $0x20] sm:$0xf] }
 0x224   : > { %v7083_v57 = vpop.permute.xlu1 %7082 }
 0x225   : > { %v6617_v58 = vpop.permute.xlu0 %6616 }
 0x226   : > { %v6622_v56 = vsel %vm6267_vm14, %v6617_v58, %v6619_v10  ;;  %8476 = vrot.lane.b32.xlu1 %v13675_v54, %s12827_s26  ;;  %v4392_v58 = vrot.slane %v12117_v48, %v13987_v17  ;;  %v12302_v48 = vld [vmem:[%s14999_s1 + $0x3a0] sm:$0xff] }
 0x227   : > { %8474 = vrot.lane.b32.xlu0 %v12974_v14, %s12827_s26  ;;  %12241 = vmatpush1.msk.msra.mxu1 %vm259_vm0, %v6622_v56 }
 0x228   : > { %12242 = vmatmul.mubr.msk.f32.vlgmr.msra.gmra.mrb[14].mxu1 %vm255_vm1, %v12239_v60  ;;  %v7081_v42 = vpop.permute.xlu1 %7080 }
 0x229   : > { %v7086_v46 = vsel %vm6731_vm15, %v7081_v42, %v7083_v57  ;;  %v7085_v61 = vpop.permute.xlu0 %7084  ;;  %7269 = vmatprep.mubr.f32.mxu1 %v12810_v0 }
 0x22a   : > { %v7087_v62 = vsel %vm6731_vm15, %v7083_v57, %v7085_v61  ;;  %8938 = vrot.lane.b32.xlu1 %v12974_v14, %s12828_s29 }
 0x22b   : > { %8472 = vrot.lane.b32.xlu0 %v13692_v59, %s12827_s26  ;;  %12261 = vmatprep.subr.msk.mxu0 %vm259_vm0, %v7087_v62 }
 0x22c   : > { %12262 = vmatpush1.msk.msra.mxu0 %vm259_vm0, %v7086_v46  ;;  %v7194_v3 = vpop.permute.xlu1 %7193 }
 0x22d   : > { %12263 = vmatmul.mubr.msk.f32.vlgmr.msra.gmra.mrb[14].mxu0 %vm255_vm1, %v12260_v63  ;;  %v7192_v1 = vpop.permute.xlu0 %7191 }
 0x22e   : > { %8936 = vrot.lane.b32.xlu1 %v13692_v59, %s12828_s29  ;;  %v7197_v7 = vsel %vm7195_vm2, %v7192_v1, %v7194_v3  ;;  %7733 = vmatprep.mubr.f32.mxu0 %v12810_v0 }
 0x22f   : > { %8940 = vrot.lane.b32.xlu0 %v13675_v54, %s12828_s29  ;;  %12267 = vmatprep.subr.msk.mxu1 %vm259_vm0, %v7197_v7  ;;  %s12830_s29 = smov 64  }
 0x230   : > { %v7656_v9 = vpop.permute.xlu1 %7655 }
 0x231   : > { %v7190_v16 = vpop.permute.xlu0 %7189 }
 0x232   : > { %v7196_v21 = vsel %vm7195_vm2, %v7190_v16, %v7192_v1  ;;  %9049 = vrot.lane.b32.xlu1 %v14207_v22, %s12829_s11  ;;  %v14308_v1 = vld [vmem:[%s12902_s27 + $0x18] sm:$0xff] }
 0x233   : > { %9047 = vrot.lane.b32.xlu0 %v12923_v5, %s12829_s11  ;;  %12268 = vmatpush1.msk.msra.mxu1 %vm259_vm0, %v7196_v21 }
 0x234   : > { %v7654_v54 = vpop.permute.xlu1 %7653  ;;  %12269 = vmatmul.mubr.msk.f32.vlgmr.msra.gmra.mrb[16].mxu1 %vm255_vm1, %v12266_v18 }
 0x235   : > { %v7660_v59 = vsel %vm7659_vm3, %v7654_v54, %v7656_v9  ;;  %v7658_v23 = vpop.permute.xlu0 %7657  ;;  %7355 = vmatprep.mubr.f32.mxu1 %v12810_v0 }
 0x236   : > { %v7661_v25 = vsel %vm7659_vm3, %v7656_v9, %v7658_v23  ;;  %9511 = vrot.lane.b32.xlu1 %v12923_v5, %s12830_s29  ;;  %v12277_v23 = vld [vmem:[%s14999_s1 + $0x2d0] sm:$0xff] }
 0x237   : > { %9045 = vrot.lane.b32.xlu0 %v14224_v11, %s12829_s11  ;;  %12288 = vmatprep.subr.msk.mxu0 %vm259_vm0, %v7661_v25 }
 0x238   : > { %12289 = vmatpush1.msk.msra.mxu0 %vm259_vm0, %v7660_v59  ;;  %v7281_v24 = vpop.permute.xlu1 %7280 }
 0x239   : > { %v7279_v26 = vpop.permute.xlu0 %7278  ;;  %12290 = vmatmul.mubr.msk.f32.vlgmr.msra.gmra.mrb[16].mxu0 %vm255_vm1, %v12287_v6  ;;  %v14331_v6 = vld [vmem:[%s12902_s27 + $0x2c] sm:$0xf] }
 0x23a   : > { %9509 = vrot.lane.b32.xlu1 %v14224_v11, %s12830_s29  ;;  %v7283_v27 = vsel %vm7195_vm2, %v7279_v26, %v7281_v24  ;;  %7819 = vmatprep.mubr.f32.mxu0 %v12810_v0 }
 0x23b   : > { %9513 = vrot.lane.b32.xlu0 %v14207_v22, %s12830_s29  ;;  %12270 = vmatprep.subr.msk.mxu1 %vm259_vm0, %v7283_v27 }
 0x23c   : > { %v7743_v28 = vpop.permute.xlu1 %7742 }
 0x23d   : > { %v7277_v15 = vpop.permute.xlu0 %7276 }
 0x23e   : > { %v7282_v31 = vsel %vm7195_vm2, %v7277_v15, %v7279_v26  ;;  %9136 = vrot.lane.b32.xlu1 %v14243_v32, %s12829_s11  ;;  %v12298_v15 = vld [vmem:[%s14999_s1 + $0x2d8] sm:$0xff] }
 0x23f   : > { %9134 = vrot.lane.b32.xlu0 %v12941_v8, %s12829_s11  ;;  %12271 = vmatpush1.msk.msra.mxu1 %vm259_vm0, %v7282_v31 }
 0x240   : > { %v7741_v33 = vpop.permute.xlu1 %7740  ;;  %12272 = vmatmul.mubr.msk.f32.vlgmr.msra.gmra.mrb[16].mxu1 %vm255_vm1, %v12265_v29  ;;  %v14348_v29 = vld [vmem:[%s12902_s27 + $0x24] sm:$0xff] }
 0x241   : > { %v7746_v34 = vsel %vm7659_vm3, %v7741_v33, %v7743_v28  ;;  %v7745_v36 = vpop.permute.xlu0 %7744  ;;  %7443 = vmatprep.mubr.f32.mxu1 %v12810_v0 }
 0x242   : > { %v7747_v38 = vsel %vm7659_vm3, %v7743_v28, %v7745_v36  ;;  %9598 = vrot.lane.b32.xlu1 %v12941_v8, %s12830_s29 }
 0x243   : > { %9132 = vrot.lane.b32.xlu0 %v14263_v40, %s12829_s11  ;;  %12291 = vmatprep.subr.msk.mxu0 %vm259_vm0, %v7747_v38  ;;  %v12281_v38 = vld [vmem:[%s14999_s1 + $0x398] sm:$0xff] }
 0x244   : > { %12292 = vmatpush1.msk.msra.mxu0 %vm259_vm0, %v7746_v34  ;;  %v7369_v41 = vpop.permute.xlu1 %7368 }
 0x245   : > { %v7367_v12 = vpop.permute.xlu0 %7366  ;;  %12293 = vmatmul.mubr.msk.f32.vlgmr.msra.gmra.mrb[16].mxu0 %vm255_vm1, %v12286_v39 }
 0x246   : > { %9596 = vrot.lane.b32.xlu1 %v14263_v40, %s12830_s29  ;;  %v7371_v47 = vsel %vm7195_vm2, %v7367_v12, %v7369_v41  ;;  %7907 = vmatprep.mubr.f32.mxu0 %v12810_v0  ;;  %v14367_v41 = vld [vmem:[%s12902_s27 + $0x38] sm:$0xf] }
 0x247   : > { %9600 = vrot.lane.b32.xlu0 %v14243_v32, %s12830_s29  ;;  %12274 = vmatprep.subr.msk.mxu1 %vm259_vm0, %v7371_v47  ;;  %v3913_v49 = vpop.f32.mrb[8].mxu1 }
 0x248   : > { %v7831_v50 = vpop.permute.xlu1 %7830  ;;  %v3931_v2 = vmul.f32 %v3924_v44, %v3913_v49  ;;  %v3915_v30 = vpop.f32.mrb[9].mxu1  ;;  %v14384_v49 = vld [vmem:[%s12902_s27 + $0x30] sm:$0xff] }
 0x249   : > { %v7365_v51 = vpop.permute.xlu0 %7364  ;;  %v3932_v53 = vmul.f32 %v3928_v19, %v3915_v30 }
 0x24a   : > { %v7370_v10 = vsel %vm7195_vm2, %v7365_v51, %v7367_v12  ;;  %9224 = vrot.lane.b32.xlu1 %v14288_v20, %s12829_s11  ;;  %v3933_v57 = vadd.f32 %v3931_v2, %v14129_v43 }
 0x24b   : > { %9222 = vrot.lane.b32.xlu0 %v12917_v4, %s12829_s11  ;;  %12275 = vmatpush1.msk.msra.mxu1 %vm259_vm0, %v7370_v10  ;;  %v3934_v60 = vadd.f32 %v3932_v53, %v14132_v45  ;;  %v12294_v45 = vld [vmem:[%s14999_s1 + $0x210] sm:$0xff] }
 0x24c   : > { %v7829_v56 = vpop.permute.xlu1 %7828  ;;  %12276 = vmatmul.mubr.msk.f32.vlgmr.msra.gmra.mrb[16].mxu1 %vm255_vm1, %v12273_v52  ;;  %v4377_v42 = vpop.f32.mrb[8].mxu0  ;;  %v12308_v53 = vld [vmem:[%s14999_s1 + $0x150] sm:$0xff] }
 0x24d   : > { %v7834_v46 = vsel %vm7659_vm3, %v7829_v56, %v7831_v50  ;;  %v7833_v61 = vpop.permute.xlu0 %7832  ;;  %7533 = vmatprep.mubr.f32.mxu1 %v12810_v0  ;;  %v4395_v43 = vmul.f32 %v4388_v55, %v4377_v42  ;;  %v4379_v62 = vpop.f32.mrb[9].mxu0  ;;  %v12329_v56 = vld [vmem:[%s14999_s1 + $0x158] sm:$0xff] }
 0x24e   : > { %v7835_v63 = vsel %vm7659_vm3, %v7831_v50, %v7833_v61  ;;  %9686 = vrot.lane.b32.xlu1 %v12917_v4, %s12830_s29  ;;  %v4396_v3 = vmul.f32 %v4392_v58, %v4379_v62 }
 0x24f   : > { %9220 = vrot.lane.b32.xlu0 %v14308_v1, %s12829_s11  ;;  %12295 = vmatprep.subr.msk.mxu0 %vm259_vm0, %v7835_v63  ;;  %v14313_v7 = vadd.f32 %v4395_v43, %v3933_v57  ;;  %v12307_v63 = vld [vmem:[%s14999_s1 + $0x88] sm:$0xff] }
 0x250   : > { %12296 = vmatpush1.msk.msra.mxu0 %vm259_vm0, %v7834_v46  ;;  %v7459_v9 = vpop.permute.xlu1 %7458  ;;  %v14316_v16 = vadd.f32 %v4396_v3, %v3934_v60 }
 0x251   : > { %v7457_v18 = vpop.permute.xlu0 %7456  ;;  %12297 = vmatmul.mubr.msk.f32.vlgmr.msra.gmra.mrb[16].mxu0 %vm255_vm1, %v12294_v45 }
 0x252   : > { %9684 = vrot.lane.b32.xlu1 %v14308_v1, %s12830_s29  ;;  %v7461_v21 = vsel %vm7195_vm2, %v7457_v18, %v7459_v9  ;;  %7997 = vmatprep.mubr.f32.mxu0 %v12810_v0 }
 0x253   : > { %9688 = vrot.lane.b32.xlu0 %v14288_v20, %s12830_s29  ;;  %12278 = vmatprep.subr.msk.mxu1 %vm259_vm0, %v7461_v21  ;;  %v12138_v21 = vld [vmem:[%s15000_s2 + $0x11] ss:$8 sm:$0x3] }
 0x254   : > { %v7921_v54 = vpop.permute.xlu1 %7920 }
 0x255   : > { %v7455_v59 = vpop.permute.xlu0 %7454 }
 0x256   : > { %v7460_v25 = vsel %vm7195_vm2, %v7455_v59, %v7457_v18  ;;  %9314 = vrot.lane.b32.xlu1 %v14331_v6, %s12829_s11  ;;  %v12328_v59 = vld [vmem:[%s14999_s1 + $0x90] sm:$0xff] }
 0x257   : > { %9312 = vrot.lane.b32.xlu0 %v12962_v13, %s12829_s11  ;;  %12279 = vmatpush1.msk.msra.mxu1 %vm259_vm0, %v7460_v25  ;;  %v4852_v25 = vrot.slane %v12138_v21, %v13985_v35 }
 0x258   : > { %v7919_v24 = vpop.permute.xlu1 %7918  ;;  %12280 = vmatmul.mubr.msk.f32.vlgmr.msra.gmra.mrb[16].mxu1 %vm255_vm1, %v12277_v23 }
 0x259   : > { %v7924_v26 = vsel %vm7659_vm3, %v7919_v24, %v7921_v54  ;;  %v7923_v27 = vpop.permute.xlu0 %7922  ;;  %7623 = vmatprep.mubr.f32.mxu1 %v12810_v0 }
 0x25a   : > { %v7925_v28 = vsel %vm7659_vm3, %v7921_v54, %v7923_v27  ;;  %9776 = vrot.lane.b32.xlu1 %v12962_v13, %s12830_s29 }
 0x25b   : > { %9310 = vrot.lane.b32.xlu0 %v14348_v29, %s12829_s11  ;;  %12299 = vmatprep.subr.msk.mxu0 %vm259_vm0, %v7925_v28  ;;  %v12159_v28 = vld [vmem:[%s15000_s2 + $0x12] ss:$8 sm:$0x3] }
 0x25c   : > { %12300 = vmatpush1.msk.msra.mxu0 %vm259_vm0, %v7924_v26  ;;  %v7549_v31 = vpop.permute.xlu1 %7548  ;;  %v4856_v26 = vrot.slane %v12138_v21, %v13987_v17 }
 0x25d   : > { %v7547_v33 = vpop.permute.xlu0 %7546  ;;  %12301 = vmatmul.mubr.msk.f32.vlgmr.msra.gmra.mrb[16].mxu0 %vm255_vm1, %v12298_v15 }
 0x25e   : > { %9774 = vrot.lane.b32.xlu1 %v14348_v29, %s12830_s29  ;;  %v7551_v34 = vsel %vm7195_vm2, %v7547_v33, %v7549_v31  ;;  %8087 = vmatprep.mubr.f32.mxu0 %v12810_v0 }
 0x25f   : > { %9778 = vrot.lane.b32.xlu0 %v14331_v6, %s12830_s29  ;;  %12282 = vmatprep.subr.msk.mxu1 %vm259_vm0, %v7551_v34 }
 0x260   : > { %v8011_v36 = vpop.permute.xlu1 %8010 }
 0x261   : > { %v7545_v37 = vpop.permute.xlu0 %7544 }
 0x262   : > { %v7550_v39 = vsel %vm7195_vm2, %v7545_v37, %v7547_v33  ;;  %9404 = vrot.lane.b32.xlu1 %v14367_v41, %s12829_s11 }
 0x263   : > { %9402 = vrot.lane.b32.xlu0 %v12974_v14, %s12829_s11  ;;  %12283 = vmatpush1.msk.msra.mxu1 %vm259_vm0, %v7550_v39  ;;  %v12315_v39 = vld [vmem:[%s14999_s1 + $0x218] sm:$0xff] }
 0x264   : > { %12284 = vmatmul.mubr.msk.f32.vlgmr.msra.gmra.mrb[16].mxu1 %vm255_vm1, %v12281_v38  ;;  %v8009_v44 = vpop.permute.xlu1 %8008  ;;  %v5316_v38 = vrot.slane %v12159_v28, %v13985_v35 }
 0x265   : > { %v8014_v12 = vsel %vm7659_vm3, %v8009_v44, %v8011_v36  ;;  %v8013_v19 = vpop.permute.xlu0 %8012  ;;  %8197 = vmatprep.mubr.f32.mxu1 %v12810_v0 }
 0x266   : > { %v8015_v47 = vsel %vm7659_vm3, %v8011_v36, %v8013_v19  ;;  %9866 = vrot.lane.b32.xlu1 %v12974_v14, %s12830_s29  ;;  %v5320_v19 = vrot.slane %v12159_v28, %v13987_v17 }
 0x267   : > { %9400 = vrot.lane.b32.xlu0 %v14384_v49, %s12829_s11  ;;  %12303 = vmatprep.subr.msk.mxu0 %vm259_vm0, %v8015_v47 }
 0x268   : > { %12304 = vmatpush1.msk.msra.mxu0 %vm259_vm0, %v8014_v12  ;;  %v8122_v50 = vpop.permute.xlu1 %8121 }
 0x269   : > { %12305 = vmatmul.mubr.msk.f32.vlgmr.msra.gmra.mrb[16].mxu0 %vm255_vm1, %v12302_v48  ;;  %v8120_v2 = vpop.permute.xlu0 %8119 }
 0x26a   : > { %9864 = vrot.lane.b32.xlu1 %v14384_v49, %s12830_s29  ;;  %v8125_v30 = vsel %vm8123_vm4, %v8120_v2, %v8122_v50  ;;  %8661 = vmatprep.mubr.f32.mxu0 %v12810_v0 }
 0x26b   : > { %9868 = vrot.lane.b32.xlu0 %v14367_v41, %s12830_s29  ;;  %12309 = vmatprep.subr.msk.mxu1 %vm259_vm0, %v8125_v30  ;;  %s12832_s29 = smov 62  }
 0x26c   : > { %v8584_v51 = vpop.permute.xlu1 %8583 }
 0x26d   : > { %v8118_v52 = vpop.permute.xlu0 %8117 }
 0x26e   : > { %v8124_v55 = vsel %vm8123_vm4, %v8118_v52, %v8120_v2  ;;  %9977 = vrot.lane.b32.xlu1 %v14207_v22, %s12831_s24 }
 0x26f   : > { %9975 = vrot.lane.b32.xlu0 %v12923_v5, %s12831_s24  ;;  %12310 = vmatpush1.msk.msra.mxu1 %vm259_vm0, %v8124_v55 }
 0x270   : > { %v8582_v10 = vpop.permute.xlu1 %8581  ;;  %12311 = vmatmul.mubr.msk.f32.vlgmr.msra.gmra.mrb[18].mxu1 %vm255_vm1, %v12308_v53 }
 0x271   : > { %v8588_v57 = vsel %vm8587_vm5, %v8582_v10, %v8584_v51  ;;  %v8586_v58 = vpop.permute.xlu0 %8585  ;;  %8283 = vmatprep.mubr.f32.mxu1 %v12810_v0 }
 0x272   : > { %v8589_v60 = vsel %vm8587_vm5, %v8584_v51, %v8586_v58  ;;  %10439 = vrot.lane.b32.xlu1 %v12923_v5, %s12832_s29 }
 0x273   : > { %9973 = vrot.lane.b32.xlu0 %v14224_v11, %s12831_s24  ;;  %12330 = vmatprep.subr.msk.mxu0 %vm259_vm0, %v8589_v60 }
 0x274   : > { %12331 = vmatpush1.msk.msra.mxu0 %vm259_vm0, %v8588_v57  ;;  %v8209_v42 = vpop.permute.xlu1 %8208 }
 0x275   : > { %v8207_v46 = vpop.permute.xlu0 %8206  ;;  %12332 = vmatmul.mubr.msk.f32.vlgmr.msra.gmra.mrb[18].mxu0 %vm255_vm1, %v12329_v56 }
 0x276   : > { %10437 = vrot.lane.b32.xlu1 %v14224_v11, %s12832_s29  ;;  %v8211_v61 = vsel %vm8123_vm4, %v8207_v46, %v8209_v42  ;;  %8747 = vmatprep.mubr.f32.mxu0 %v12810_v0 }
 0x277   : > { %10441 = vrot.lane.b32.xlu0 %v14207_v22, %s12832_s29  ;;  %12312 = vmatprep.subr.msk.mxu1 %vm259_vm0, %v8211_v61 }
 0x278   : > { %v8671_v43 = vpop.permute.xlu1 %8670 }
 0x279   : > { %v8205_v62 = vpop.permute.xlu0 %8204 }
 0x27a   : > { %v8210_v45 = vsel %vm8123_vm4, %v8205_v62, %v8207_v46  ;;  %10064 = vrot.lane.b32.xlu1 %v14243_v32, %s12831_s24  ;;  %v12319_v46 = vld [vmem:[%s14999_s1 + $0x2e0] sm:$0xff] }
 0x27b   : > { %10062 = vrot.lane.b32.xlu0 %v12941_v8, %s12831_s24  ;;  %12313 = vmatpush1.msk.msra.mxu1 %vm259_vm0, %v8210_v45 }
 0x27c   : > { %v8669_v3 = vpop.permute.xlu1 %8668  ;;  %12314 = vmatmul.mubr.msk.f32.vlgmr.msra.gmra.mrb[18].mxu1 %vm255_vm1, %v12307_v63 }
 0x27d   : > { %v8674_v9 = vsel %vm8587_vm5, %v8669_v3, %v8671_v43  ;;  %v8673_v18 = vpop.permute.xlu0 %8672  ;;  %8371 = vmatprep.mubr.f32.mxu1 %v12810_v0  ;;  %v12340_v3 = vld [vmem:[%s14999_s1 + $0x2e8] sm:$0xff] }
 0x27e   : > { %v8675_v54 = vsel %vm8587_vm5, %v8671_v43, %v8673_v18  ;;  %10526 = vrot.lane.b32.xlu1 %v12941_v8, %s12832_s29 }
 0x27f   : > { %10060 = vrot.lane.b32.xlu0 %v14263_v40, %s12831_s24  ;;  %12333 = vmatprep.subr.msk.mxu0 %vm259_vm0, %v8675_v54 }
 0x280   : > { %12334 = vmatpush1.msk.msra.mxu0 %vm259_vm0, %v8674_v9  ;;  %v8297_v23 = vpop.permute.xlu1 %8296 }
 0x281   : > { %v8295_v24 = vpop.permute.xlu0 %8294  ;;  %12335 = vmatmul.mubr.msk.f32.vlgmr.msra.gmra.mrb[18].mxu0 %vm255_vm1, %v12328_v59 }
 0x282   : > { %10524 = vrot.lane.b32.xlu1 %v14263_v40, %s12832_s29  ;;  %v8299_v27 = vsel %vm8123_vm4, %v8295_v24, %v8297_v23  ;;  %8835 = vmatprep.mubr.f32.mxu0 %v12810_v0  ;;  %v12323_v23 = vld [vmem:[%s14999_s1 + $0x3a8] sm:$0xff] }
 0x283   : > { %10528 = vrot.lane.b32.xlu0 %v14243_v32, %s12832_s29  ;;  %12316 = vmatprep.subr.msk.mxu1 %vm259_vm0, %v8299_v27  ;;  %v4841_v15 = vpop.f32.mrb[10].mxu1 }
 0x284   : > { %v4859_v31 = vmul.f32 %v4852_v25, %v4841_v15  ;;  %v8759_v33 = vpop.permute.xlu1 %8758  ;;  %v4843_v34 = vpop.f32.mrb[11].mxu1  ;;  %v12344_v15 = vld [vmem:[%s14999_s1 + $0x3b0] sm:$0xff] }
 0x285   : > { %v8293_v36 = vpop.permute.xlu0 %8292  ;;  %v4860_v37 = vmul.f32 %v4856_v26, %v4843_v34 }
 0x286   : > { %v4861_v44 = vadd.f32 %v4859_v31, %v14313_v7  ;;  %v8298_v12 = vsel %vm8123_vm4, %v8293_v36, %v8295_v24  ;;  %10152 = vrot.lane.b32.xlu1 %v14288_v20, %s12831_s24 }
 0x287   : > { %v4862_v47 = vadd.f32 %v4860_v37, %v14316_v16  ;;  %10150 = vrot.lane.b32.xlu0 %v12917_v4, %s12831_s24  ;;  %12317 = vmatpush1.msk.msra.mxu1 %vm259_vm0, %v8298_v12  ;;  %v12336_v16 = vld [vmem:[%s14999_s1 + $0x220] sm:$0xff] }
 0x288   : > { %v5305_v48 = vpop.f32.mrb[10].mxu0  ;;  %v8757_v50 = vpop.permute.xlu1 %8756  ;;  %12318 = vmatmul.mubr.msk.f32.vlgmr.msra.gmra.mrb[18].mxu1 %vm255_vm1, %v12315_v39 }
 0x289   : > { %v5323_v2 = vmul.f32 %v5316_v38, %v5305_v48  ;;  %v8762_v7 = vsel %vm8587_vm5, %v8757_v50, %v8759_v33  ;;  %v5307_v30 = vpop.f32.mrb[11].mxu0  ;;  %v8761_v51 = vpop.permute.xlu0 %8760  ;;  %8461 = vmatprep.mubr.f32.mxu1 %v12810_v0  ;;  %v12350_v38 = vld [vmem:[%s14999_s1 + $0x160] sm:$0xff]  ;;  %v12371_v48 = vld [vmem:[%s14999_s1 + $0x168] sm:$0xff] }
 0x28a   : > { %v5324_v52 = vmul.f32 %v5320_v19, %v5307_v30  ;;  %v8763_v53 = vsel %vm8587_vm5, %v8759_v33, %v8761_v51  ;;  %10614 = vrot.lane.b32.xlu1 %v12917_v4, %s12832_s29  ;;  %v12349_v51 = vld [vmem:[%s14999_s1 + $0x98] sm:$0xff] }
 0x28b   : > { %v14488_v55 = vadd.f32 %v5323_v2, %v4861_v44  ;;  %10148 = vrot.lane.b32.xlu0 %v14308_v1, %s12831_s24  ;;  %12337 = vmatprep.subr.msk.mxu0 %vm259_vm0, %v8763_v53 }
 0x28c   : > { %v14493_v10 = vadd.f32 %v5324_v52, %v4862_v47  ;;  %12338 = vmatpush1.msk.msra.mxu0 %vm259_vm0, %v8762_v7  ;;  %v8387_v57 = vpop.permute.xlu1 %8386 }
 0x28d   : > { %v8385_v58 = vpop.permute.xlu0 %8384  ;;  %12339 = vmatmul.mubr.msk.f32.vlgmr.msra.gmra.mrb[18].mxu0 %vm255_vm1, %v12336_v16  ;;  %v12180_v16 = vld [vmem:[%s15000_s2 + $0x13] ss:$8 sm:$0x3] }
 0x28e   : > { %10612 = vrot.lane.b32.xlu1 %v14308_v1, %s12832_s29  ;;  %v8389_v60 = vsel %vm8123_vm4, %v8385_v58, %v8387_v57  ;;  %8925 = vmatprep.mubr.f32.mxu0 %v12810_v0 }
 0x28f   : > { %10616 = vrot.lane.b32.xlu0 %v14288_v20, %s12832_s29  ;;  %12320 = vmatprep.subr.msk.mxu1 %vm259_vm0, %v8389_v60 }
 0x290   : > { %v8849_v56 = vpop.permute.xlu1 %8848 }
 0x291   : > { %v8383_v42 = vpop.permute.xlu0 %8382 }
 0x292   : > { %v8388_v61 = vsel %vm8123_vm4, %v8383_v42, %v8385_v58  ;;  %10242 = vrot.lane.b32.xlu1 %v14331_v6, %s12831_s24  ;;  %v12370_v58 = vld [vmem:[%s14999_s1 + $0xa0] sm:$0xff] }
 0x293   : > { %10240 = vrot.lane.b32.xlu0 %v12962_v13, %s12831_s24  ;;  %12321 = vmatpush1.msk.msra.mxu1 %vm259_vm0, %v8388_v61  ;;  %v12201_v61 = vld [vmem:[%s15000_s2 + $0x14] ss:$8 sm:$0x3] }
 0x294   : > { %v8847_v43 = vpop.permute.xlu1 %8846  ;;  %12322 = vmatmul.mubr.msk.f32.vlgmr.msra.gmra.mrb[18].mxu1 %vm255_vm1, %v12319_v46  ;;  %v5784_v46 = vrot.slane %v12180_v16, %v13987_v17 }
 0x295   : > { %v8852_v62 = vsel %vm8587_vm5, %v8847_v43, %v8849_v56  ;;  %v8851_v63 = vpop.permute.xlu0 %8850  ;;  %8551 = vmatprep.mubr.f32.mxu1 %v12810_v0 }
 0x296   : > { %v8853_v45 = vsel %vm8587_vm5, %v8849_v56, %v8851_v63  ;;  %10704 = vrot.lane.b32.xlu1 %v12962_v13, %s12832_s29  ;;  %v5780_v56 = vrot.slane %v12180_v16, %v13985_v35 }
 0x297   : > { %10238 = vrot.lane.b32.xlu0 %v14348_v29, %s12831_s24  ;;  %12341 = vmatprep.subr.msk.mxu0 %vm259_vm0, %v8853_v45 }
 0x298   : > { %12342 = vmatpush1.msk.msra.mxu0 %vm259_vm0, %v8852_v62  ;;  %v8477_v9 = vpop.permute.xlu1 %8476 }
 0x299   : > { %v8475_v18 = vpop.permute.xlu0 %8474  ;;  %12343 = vmatmul.mubr.msk.f32.vlgmr.msra.gmra.mrb[18].mxu0 %vm255_vm1, %v12340_v3 }
 0x29a   : > { %v8479_v21 = vsel %vm8123_vm4, %v8475_v18, %v8477_v9  ;;  %10702 = vrot.lane.b32.xlu1 %v14348_v29, %s12832_s29  ;;  %9015 = vmatprep.mubr.f32.mxu0 %v12810_v0 }
 0x29b   : > { %10706 = vrot.lane.b32.xlu0 %v14331_v6, %s12832_s29  ;;  %12324 = vmatprep.subr.msk.mxu1 %vm259_vm0, %v8479_v21 }
 0x29c   : > { %v8939_v54 = vpop.permute.xlu1 %8938 }
 0x29d   : > { %v8473_v59 = vpop.permute.xlu0 %8472 }
 0x29e   : > { %v8478_v25 = vsel %vm8123_vm4, %v8473_v59, %v8475_v18  ;;  %10332 = vrot.lane.b32.xlu1 %v14367_v41, %s12831_s24  ;;  %v6244_v18 = vrot.slane %v12201_v61, %v13985_v35 }
 0x29f   : > { %10330 = vrot.lane.b32.xlu0 %v12974_v14, %s12831_s24  ;;  %12325 = vmatpush1.msk.msra.mxu1 %vm259_vm0, %v8478_v25 }
 0x2a0   : > { %12326 = vmatmul.mubr.msk.f32.vlgmr.msra.gmra.mrb[18].mxu1 %vm255_vm1, %v12323_v23  ;;  %v8937_v24 = vpop.permute.xlu1 %8936 }
 0x2a1   : > { %v8942_v26 = vsel %vm8587_vm5, %v8937_v24, %v8939_v54  ;;  %v8941_v27 = vpop.permute.xlu0 %8940  ;;  %9125 = vmatprep.mubr.f32.mxu1 %v12810_v0 }
 0x2a2   : > { %v8943_v28 = vsel %vm8587_vm5, %v8939_v54, %v8941_v27  ;;  %10794 = vrot.lane.b32.xlu1 %v12974_v14, %s12832_s29 }
 0x2a3   : > { %10328 = vrot.lane.b32.xlu0 %v14384_v49, %s12831_s24  ;;  %12345 = vmatprep.subr.msk.mxu0 %vm259_vm0, %v8943_v28  ;;  %s11941_s24 = sshll.u32 %s217_s7, 3 }
 0x2a4   : > { %12346 = vmatpush1.msk.msra.mxu0 %vm259_vm0, %v8942_v26  ;;  %v9050_v31 = vpop.permute.xlu1 %9049  ;;  %s219_s16 = scalar_lea.vmem %s15002_s4, %s11941_s24 }
 0x2a5   : > { %12347 = vmatmul.mubr.msk.f32.vlgmr.msra.gmra.mrb[18].mxu0 %vm255_vm1, %v12344_v15  ;;  %v9048_v33 = vpop.permute.xlu0 %9047 }
 0x2a6   : > { %v9053_v34 = vsel %vm9051_vm6, %v9048_v33, %v9050_v31  ;;  %10792 = vrot.lane.b32.xlu1 %v14384_v49, %s12832_s29  ;;  %9589 = vmatprep.mubr.f32.mxu0 %v12810_v0 }
 0x2a7   : > { %10796 = vrot.lane.b32.xlu0 %v14367_v41, %s12832_s29  ;;  %12351 = vmatprep.subr.msk.mxu1 %vm259_vm0, %v9053_v34  ;;  %s12834_s29 = smov 60  }
 0x2a8   : > { %v9512_v36 = vpop.permute.xlu1 %9511 }
 0x2a9   : > { %v9046_v37 = vpop.permute.xlu0 %9045 }
 0x2aa   : > { %v9052_v39 = vsel %vm9051_vm6, %v9046_v37, %v9048_v33  ;;  %10905 = vrot.lane.b32.xlu1 %v14207_v22, %s12833_s8 }
 0x2ab   : > { %10903 = vrot.lane.b32.xlu0 %v12923_v5, %s12833_s8  ;;  %12352 = vmatpush1.msk.msra.mxu1 %vm259_vm0, %v9052_v39  ;;  %v12361_v39 = vld [vmem:[%s14999_s1 + $0x2f0] sm:$0xff] }
 0x2ac   : > { %v9510_v44 = vpop.permute.xlu1 %9509  ;;  %12353 = vmatmul.mubr.msk.f32.vlgmr.msra.gmra.mrb[20].mxu1 %vm255_vm1, %v12350_v38 }
 0x2ad   : > { %v9516_v12 = vsel %vm9515_vm7, %v9510_v44, %v9512_v36  ;;  %v9514_v19 = vpop.permute.xlu0 %9513  ;;  %9211 = vmatprep.mubr.f32.mxu1 %v12810_v0 }
 0x2ae   : > { %v9517_v47 = vsel %vm9515_vm7, %v9512_v36, %v9514_v19  ;;  %11367 = vrot.lane.b32.xlu1 %v12923_v5, %s12834_s29 }
 0x2af   : > { %10901 = vrot.lane.b32.xlu0 %v14224_v11, %s12833_s8  ;;  %12372 = vmatprep.subr.msk.mxu0 %vm259_vm0, %v9517_v47  ;;  %v12382_v47 = vld [vmem:[%s14999_s1 + $0x2f8] sm:$0xff] }
 0x2b0   : > { %12373 = vmatpush1.msk.msra.mxu0 %vm259_vm0, %v9516_v12  ;;  %v9137_v50 = vpop.permute.xlu1 %9136 }
 0x2b1   : > { %v9135_v2 = vpop.permute.xlu0 %9134  ;;  %12374 = vmatmul.mubr.msk.f32.vlgmr.msra.gmra.mrb[20].mxu0 %vm255_vm1, %v12371_v48 }
 0x2b2   : > { %v9139_v7 = vsel %vm9051_vm6, %v9135_v2, %v9137_v50  ;;  %11365 = vrot.lane.b32.xlu1 %v14224_v11, %s12834_s29  ;;  %9675 = vmatprep.mubr.f32.mxu0 %v12810_v0 }
 0x2b3   : > { %11369 = vrot.lane.b32.xlu0 %v14207_v22, %s12834_s29  ;;  %12354 = vmatprep.subr.msk.mxu1 %vm259_vm0, %v9139_v7 }
 0x2b4   : > { %v9599_v5 = vpop.permute.xlu1 %9598 }
 0x2b5   : > { %v9133_v30 = vpop.permute.xlu0 %9132 }
 0x2b6   : > { %v9138_v52 = vsel %vm9051_vm6, %v9133_v30, %v9135_v2  ;;  %10992 = vrot.lane.b32.xlu1 %v14243_v32, %s12833_s8 }
 0x2b7   : > { %10990 = vrot.lane.b32.xlu0 %v12941_v8, %s12833_s8  ;;  %12355 = vmatpush1.msk.msra.mxu1 %vm259_vm0, %v9138_v52 }
 0x2b8   : > { %v9597_v11 = vpop.permute.xlu1 %9596  ;;  %12356 = vmatmul.mubr.msk.f32.vlgmr.msra.gmra.mrb[20].mxu1 %vm255_vm1, %v12349_v51 }
 0x2b9   : > { %v9602_v22 = vsel %vm9515_vm7, %v9597_v11, %v9599_v5  ;;  %v9601_v53 = vpop.permute.xlu0 %9600  ;;  %9299 = vmatprep.mubr.f32.mxu1 %v12810_v0  ;;  %v12386_v11 = vld [vmem:[%s14999_s1 + $0x3c0] sm:$0xff] }
 0x2ba   : > { %v9603_v57 = vsel %vm9515_vm7, %v9599_v5, %v9601_v53  ;;  %11454 = vrot.lane.b32.xlu1 %v12941_v8, %s12834_s29  ;;  %v12365_v5 = vld [vmem:[%s14999_s1 + $0x3b8] sm:$0xff] }
 0x2bb   : > { %10988 = vrot.lane.b32.xlu0 %v14263_v40, %s12833_s8  ;;  %12375 = vmatprep.subr.msk.mxu0 %vm259_vm0, %v9603_v57 }
 0x2bc   : > { %12376 = vmatpush1.msk.msra.mxu0 %vm259_vm0, %v9602_v22  ;;  %v9225_v60 = vpop.permute.xlu1 %9224 }
 0x2bd   : > { %v9223_v42 = vpop.permute.xlu0 %9222  ;;  %12377 = vmatmul.mubr.msk.f32.vlgmr.msra.gmra.mrb[20].mxu0 %vm255_vm1, %v12370_v58  ;;  %v12392_v58 = vld [vmem:[%s14999_s1 + $0x170] sm:$0xff] }
 0x2be   : > { %v9227_v8 = vsel %vm9051_vm6, %v9223_v42, %v9225_v60  ;;  %11452 = vrot.lane.b32.xlu1 %v14263_v40, %s12834_s29  ;;  %9763 = vmatprep.mubr.f32.mxu0 %v12810_v0  ;;  %v12357_v40 = vld [vmem:[%s14999_s1 + $0x228] sm:$0xff] }
 0x2bf   : > { %11456 = vrot.lane.b32.xlu0 %v14243_v32, %s12834_s29  ;;  %v5769_v43 = vpop.f32.mrb[12].mxu1  ;;  %12358 = vmatprep.subr.msk.mxu1 %vm259_vm0, %v9227_v8  ;;  %v6248_v32 = vrot.slane %v12201_v61, %v13987_v17 }
 0x2c0   : > { %v5787_v62 = vmul.f32 %v5780_v56, %v5769_v43  ;;  %v5771_v63 = vpop.f32.mrb[13].mxu1  ;;  %v9687_v45 = vpop.permute.xlu1 %9686 }
 0x2c1   : > { %v5788_v3 = vmul.f32 %v5784_v46, %v5771_v63  ;;  %v9221_v9 = vpop.permute.xlu0 %9220  ;;  %v12413_v46 = vld [vmem:[%s14999_s1 + $0x178] sm:$0xff] }
 0x2c2   : > { %v5789_v21 = vadd.f32 %v5787_v62, %v14488_v55  ;;  %v9226_v54 = vsel %vm9051_vm6, %v9221_v9, %v9223_v42  ;;  %11080 = vrot.lane.b32.xlu1 %v14288_v20, %s12833_s8 }
 0x2c3   : > { %v5790_v59 = vadd.f32 %v5788_v3, %v14493_v10  ;;  %11078 = vrot.lane.b32.xlu0 %v12917_v4, %s12833_s8  ;;  %12359 = vmatpush1.msk.msra.mxu1 %vm259_vm0, %v9226_v54  ;;  %v12378_v10 = vld [vmem:[%s14999_s1 + $0x230] sm:$0xff] }
 0x2c4   : > { %v6233_v23 = vpop.f32.mrb[12].mxu0  ;;  %v9685_v25 = vpop.permute.xlu1 %9684  ;;  %12360 = vmatmul.mubr.msk.f32.vlgmr.msra.gmra.mrb[20].mxu1 %vm255_vm1, %v12357_v40 }
 0x2c5   : > { %v6251_v24 = vmul.f32 %v6244_v18, %v6233_v23  ;;  %v9690_v55 = vsel %vm9515_vm7, %v9685_v25, %v9687_v45  ;;  %v6235_v26 = vpop.f32.mrb[13].mxu0  ;;  %v9689_v27 = vpop.permute.xlu0 %9688  ;;  %9389 = vmatprep.mubr.f32.mxu1 %v12810_v0 }
 0x2c6   : > { %v6252_v28 = vmul.f32 %v6248_v32, %v6235_v26  ;;  %v9691_v15 = vsel %vm9515_vm7, %v9687_v45, %v9689_v27  ;;  %11542 = vrot.lane.b32.xlu1 %v12917_v4, %s12834_s29  ;;  %v12391_v45 = vld [vmem:[%s14999_s1 + $0xa8] sm:$0xff]  ;;  %v12412_v32 = vld [vmem:[%s14999_s1 + $0xb0] sm:$0xff] }
 0x2c7   : > { %v14654_v31 = vadd.f32 %v6251_v24, %v5789_v21  ;;  %11076 = vrot.lane.b32.xlu0 %v14308_v1, %s12833_s8  ;;  %12379 = vmatprep.subr.msk.mxu0 %vm259_vm0, %v9691_v15  ;;  %v12222_v21 = vld [vmem:[%s15000_s2 + $0x15] ss:$8 sm:$0x3]  ;;  %v12243_v26 = vld [vmem:[%s15000_s2 + $0x16] ss:$8 sm:$0x3] }
 0x2c8   : > { %v14659_v33 = vadd.f32 %v6252_v28, %v5790_v59  ;;  %12380 = vmatpush1.msk.msra.mxu0 %vm259_vm0, %v9690_v55  ;;  %v9315_v34 = vpop.permute.xlu1 %9314  ;;  %v6708_v23 = vrot.slane %v12222_v21, %v13985_v35  ;;  %v6712_v24 = vrot.slane %v12222_v21, %v13987_v17  ;;  %v12434_v21 = vld [vmem:[%s14999_s1 + $0x180] sm:$0xff] }
 0x2c9   : > { %v9313_v36 = vpop.permute.xlu0 %9312  ;;  %12381 = vmatmul.mubr.msk.f32.vlgmr.msra.gmra.mrb[20].mxu0 %vm255_vm1, %v12378_v10 }
 0x2ca   : > { %v9317_v4 = vsel %vm9051_vm6, %v9313_v36, %v9315_v34  ;;  %11540 = vrot.lane.b32.xlu1 %v14308_v1, %s12834_s29  ;;  %9853 = vmatprep.mubr.f32.mxu0 %v12810_v0 }
 0x2cb   : > { %11544 = vrot.lane.b32.xlu0 %v14288_v20, %s12834_s29  ;;  %12362 = vmatprep.subr.msk.mxu1 %vm259_vm0, %v9317_v4  ;;  %v7172_v4 = vrot.slane %v12243_v26, %v13985_v35 }
 0x2cc   : > { %v9777_v37 = vpop.permute.xlu1 %9776 }
 0x2cd   : > { %v9311_v38 = vpop.permute.xlu0 %9310 }
 0x2ce   : > { %v9316_v44 = vsel %vm9051_vm6, %v9311_v38, %v9313_v36  ;;  %11170 = vrot.lane.b32.xlu1 %v14331_v6, %s12833_s8 }
 0x2cf   : > { %11168 = vrot.lane.b32.xlu0 %v12962_v13, %s12833_s8  ;;  %12363 = vmatpush1.msk.msra.mxu1 %vm259_vm0, %v9316_v44  ;;  %v7176_v44 = vrot.slane %v12243_v26, %v13987_v17 }
 0x2d0   : > { %v9775_v1 = vpop.permute.xlu1 %9774  ;;  %12364 = vmatmul.mubr.msk.f32.vlgmr.msra.gmra.mrb[20].mxu1 %vm255_vm1, %v12361_v39 }
 0x2d1   : > { %v9780_v20 = vsel %vm9515_vm7, %v9775_v1, %v9777_v37  ;;  %v9779_v12 = vpop.permute.xlu0 %9778  ;;  %9479 = vmatprep.mubr.f32.mxu1 %v12810_v0 }
 0x2d2   : > { %v9781_v19 = vsel %vm9515_vm7, %v9777_v37, %v9779_v12  ;;  %11632 = vrot.lane.b32.xlu1 %v12962_v13, %s12834_s29  ;;  %v12399_v37 = vld [vmem:[%s14999_s1 + $0x238] sm:$0xff] }
 0x2d3   : > { %11166 = vrot.lane.b32.xlu0 %v14348_v29, %s12833_s8  ;;  %12383 = vmatprep.subr.msk.mxu0 %vm259_vm0, %v9781_v19 }
 0x2d4   : > { %12384 = vmatpush1.msk.msra.mxu0 %vm259_vm0, %v9780_v20  ;;  %v9405_v48 = vpop.permute.xlu1 %9404 }
 0x2d5   : > { %v9403_v50 = vpop.permute.xlu0 %9402  ;;  %12385 = vmatmul.mubr.msk.f32.vlgmr.msra.gmra.mrb[20].mxu0 %vm255_vm1, %v12382_v47 }
 0x2d6   : > { %v9407_v2 = vsel %vm9051_vm6, %v9403_v50, %v9405_v48  ;;  %11630 = vrot.lane.b32.xlu1 %v14348_v29, %s12834_s29  ;;  %9943 = vmatprep.mubr.f32.mxu0 %v12810_v0 }
 0x2d7   : > { %11634 = vrot.lane.b32.xlu0 %v14331_v6, %s12834_s29  ;;  %12366 = vmatprep.subr.msk.mxu1 %vm259_vm0, %v9407_v2 }
 0x2d8   : > { %v9867_v13 = vpop.permute.xlu1 %9866 }
 0x2d9   : > { %v9401_v7 = vpop.permute.xlu0 %9400 }
 0x2da   : > { %v9406_v30 = vsel %vm9051_vm6, %v9401_v7, %v9403_v50  ;;  %11260 = vrot.lane.b32.xlu1 %v14367_v41, %s12833_s8 }
 0x2db   : > { %11258 = vrot.lane.b32.xlu0 %v12974_v14, %s12833_s8  ;;  %12367 = vmatpush1.msk.msra.mxu1 %vm259_vm0, %v9406_v30 }
 0x2dc   : > { %12368 = vmatmul.mubr.msk.f32.vlgmr.msra.gmra.mrb[20].mxu1 %vm255_vm1, %v12365_v5  ;;  %v9865_v6 = vpop.permute.xlu1 %9864 }
 0x2dd   : > { %v9870_v29 = vsel %vm9515_vm7, %v9865_v6, %v9867_v13  ;;  %v9869_v51 = vpop.permute.xlu0 %9868  ;;  %10053 = vmatprep.mubr.f32.mxu1 %v12810_v0 }
 0x2de   : > { %v9871_v52 = vsel %vm9515_vm7, %v9867_v13, %v9869_v51  ;;  %11722 = vrot.lane.b32.xlu1 %v12974_v14, %s12834_s29 }
 0x2df   : > { %11256 = vrot.lane.b32.xlu0 %v14384_v49, %s12833_s8  ;;  %12387 = vmatprep.subr.msk.mxu0 %vm259_vm0, %v9871_v52  ;;  %v12403_v52 = vld [vmem:[%s14999_s1 + $0x300] sm:$0xff] }
 0x2e0   : > { %12388 = vmatpush1.msk.msra.mxu0 %vm259_vm0, %v9870_v29  ;;  %v9978_v22 = vpop.permute.xlu1 %9977 }
 0x2e1   : > { %12389 = vmatmul.mubr.msk.f32.vlgmr.msra.gmra.mrb[20].mxu0 %vm255_vm1, %v12386_v11  ;;  %v9976_v53 = vpop.permute.xlu0 %9975 }
 0x2e2   : > { %v9981_v16 = vsel %vm9979_vm8, %v9976_v53, %v9978_v22  ;;  %11720 = vrot.lane.b32.xlu1 %v14384_v49, %s12834_s29  ;;  %10517 = vmatprep.mubr.f32.mxu0 %v12810_v0 }
 0x2e3   : > { %11724 = vrot.lane.b32.xlu0 %v14367_v41, %s12834_s29  ;;  %12393 = vmatprep.subr.msk.mxu1 %vm259_vm0, %v9981_v16 }
 0x2e4   : > { %v10440_v14 = vpop.permute.xlu1 %10439 }
 0x2e5   : > { %v9974_v57 = vpop.permute.xlu0 %9973 }
 0x2e6   : > { %v9980_v60 = vsel %vm9979_vm8, %v9974_v57, %v9976_v53  ;;  %v12424_v57 = vld [vmem:[%s14999_s1 + $0x308] sm:$0xff] }
 0x2e7   : > { %12394 = vmatpush1.msk.msra.mxu1 %vm259_vm0, %v9980_v60 }
 0x2e8   : > { %v10438_v56 = vpop.permute.xlu1 %10437  ;;  %12395 = vmatmul.mubr.msk.f32.vlgmr.msra.gmra.mrb[22].mxu1 %vm255_vm1, %v12392_v58 }
 0x2e9   : > { %v10444_v49 = vsel %vm10443_vm9, %v10438_v56, %v10440_v14  ;;  %v10442_v42 = vpop.permute.xlu0 %10441  ;;  %10139 = vmatprep.mubr.f32.mxu1 %v12810_v0 }
 0x2ea   : > { %v10445_v41 = vsel %vm10443_vm9, %v10440_v14, %v10442_v42 }
 0x2eb   : > { %12414 = vmatprep.subr.msk.mxu0 %vm259_vm0, %v10445_v41  ;;  %v12407_v41 = vld [vmem:[%s14999_s1 + $0x3c8] sm:$0xff] }
 0x2ec   : > { %12415 = vmatpush1.msk.msra.mxu0 %vm259_vm0, %v10444_v49  ;;  %v10065_v8 = vpop.permute.xlu1 %10064 }
 0x2ed   : > { %v10063_v61 = vpop.permute.xlu0 %10062  ;;  %12416 = vmatmul.mubr.msk.f32.vlgmr.msra.gmra.mrb[22].mxu0 %vm255_vm1, %v12413_v46 }
 0x2ee   : > { %v10067_v43 = vsel %vm9979_vm8, %v10063_v61, %v10065_v8  ;;  %10603 = vmatprep.mubr.f32.mxu0 %v12810_v0 }
 0x2ef   : > { %12396 = vmatprep.subr.msk.mxu1 %vm259_vm0, %v10067_v43 }
 0x2f0   : > { %v10527_v62 = vpop.permute.xlu1 %10526 }
 0x2f1   : > { %v10061_v63 = vpop.permute.xlu0 %10060 }
 0x2f2   : > { %v10066_v3 = vsel %vm9979_vm8, %v10061_v63, %v10063_v61  ;;  %v12428_v63 = vld [vmem:[%s14999_s1 + $0x3d0] sm:$0xff] }
 0x2f3   : > { %12397 = vmatpush1.msk.msra.mxu1 %vm259_vm0, %v10066_v3 }
 0x2f4   : > { %v10525_v9 = vpop.permute.xlu1 %10524  ;;  %12398 = vmatmul.mubr.msk.f32.vlgmr.msra.gmra.mrb[22].mxu1 %vm255_vm1, %v12391_v45 }
 0x2f5   : > { %v10530_v18 = vsel %vm10443_vm9, %v10525_v9, %v10527_v62  ;;  %v10529_v40 = vpop.permute.xlu0 %10528  ;;  %10227 = vmatprep.mubr.f32.mxu1 %v12810_v0 }
 0x2f6   : > { %v10531_v54 = vsel %vm10443_vm9, %v10527_v62, %v10529_v40 }
 0x2f7   : > { %12417 = vmatprep.subr.msk.mxu0 %vm259_vm0, %v10531_v54 }
 0x2f8   : > { %12418 = vmatpush1.msk.msra.mxu0 %vm259_vm0, %v10530_v18  ;;  %v10153_v59 = vpop.permute.xlu1 %10152 }
 0x2f9   : > { %v10151_v25 = vpop.permute.xlu0 %10150  ;;  %12419 = vmatmul.mubr.msk.f32.vlgmr.msra.gmra.mrb[22].mxu0 %vm255_vm1, %v12412_v32 }
 0x2fa   : > { %v10155_v55 = vsel %vm9979_vm8, %v10151_v25, %v10153_v59  ;;  %10691 = vmatprep.mubr.f32.mxu0 %v12810_v0 }
 0x2fb   : > { %v6697_v27 = vpop.f32.mrb[14].mxu1  ;;  %12400 = vmatprep.subr.msk.mxu1 %vm259_vm0, %v10155_v55 }
 0x2fc   : > { %v6715_v28 = vmul.f32 %v6708_v23, %v6697_v27  ;;  %v6699_v15 = vpop.f32.mrb[15].mxu1  ;;  %v10615_v10 = vpop.permute.xlu1 %10614 }
 0x2fd   : > { %v6716_v34 = vmul.f32 %v6712_v24, %v6699_v15  ;;  %v10149_v36 = vpop.permute.xlu0 %10148  ;;  %v12455_v24 = vld [vmem:[%s14999_s1 + $0x188] sm:$0xff] }
 0x2fe   : > { %v6717_v38 = vadd.f32 %v6715_v28, %v14654_v31  ;;  %v10154_v39 = vsel %vm9979_vm8, %v10149_v36, %v10151_v25 }
 0x2ff   : > { %v6718_v1 = vadd.f32 %v6716_v34, %v14659_v33  ;;  %12401 = vmatpush1.msk.msra.mxu1 %vm259_vm0, %v10154_v39  ;;  %v12420_v33 = vld [vmem:[%s14999_s1 + $0x240] sm:$0xff] }
 0x300   : > { %v7161_v20 = vpop.f32.mrb[14].mxu0  ;;  %v10613_v12 = vpop.permute.xlu1 %10612  ;;  %12402 = vmatmul.mubr.msk.f32.vlgmr.msra.gmra.mrb[22].mxu1 %vm255_vm1, %v12399_v37  ;;  %v11823_v37 = vld [vmem:[%s15001_s3] sm:$0xff] }
 0x301   : > { %v7179_v19 = vmul.f32 %v7172_v4, %v7161_v20  ;;  %v10618_v47 = vsel %vm10443_vm9, %v10613_v12, %v10615_v10  ;;  %v7163_v48 = vpop.f32.mrb[15].mxu0  ;;  %v10617_v50 = vpop.permute.xlu0 %10616  ;;  %10317 = vmatprep.mubr.f32.mxu1 %v12810_v0  ;;  %v12835_v4 = vmov 0   ;;  %v12454_v20 = vld [vmem:[%s14999_s1 + $0xc0] sm:$0xff] }
 0x302   : > { %v7180_v31 = vmul.f32 %v7176_v44, %v7163_v48  ;;  %v10619_v2 = vsel %vm10443_vm9, %v10615_v10, %v10617_v50  ;;  %v12433_v10 = vld [vmem:[%s14999_s1 + $0xb8] sm:$0xff]  ;;  %12744 = vset.pattern.permute.xlu0 %v12835_v4 }
 0x303   : > { %v14790_v13 = vadd.f32 %v7179_v19, %v6717_v38  ;;  %12421 = vmatprep.subr.msk.mxu0 %vm259_vm0, %v10619_v2  ;;  %v12264_v44 = vld [vmem:[%s15000_s2 + $0x17] ss:$8 sm:$0x3]  ;;  %11826 = vperm.xlu0 %12744, %v11823_v37   ;;  %v12327_v37 = vld [vmem:[%s15000_s2 + $0x22] ss:$8 sm:$0x3] }
 0x304   : > { %v14793_v7 = vadd.f32 %v7180_v31, %v6718_v1  ;;  %12422 = vmatpush1.msk.msra.mxu0 %vm259_vm0, %v10618_v47  ;;  %v10243_v5 = vpop.permute.xlu1 %10242  ;;  %v7636_v19 = vrot.slane %v12264_v44, %v13985_v35  ;;  %v7640_v48 = vrot.slane %v12264_v44, %v13987_v17  ;;  %v12285_v31 = vld [vmem:[%s15000_s2 + $0x20] ss:$8 sm:$0x3] }
 0x305   : > { %v10241_v30 = vpop.permute.xlu0 %10240  ;;  %12423 = vmatmul.mubr.msk.f32.vlgmr.msra.gmra.mrb[22].mxu0 %vm255_vm1, %v12420_v33 }
 0x306   : > { %v10245_v6 = vsel %vm9979_vm8, %v10241_v30, %v10243_v5  ;;  %10781 = vmatprep.mubr.f32.mxu0 %v12810_v0 }
 0x307   : > { %12404 = vmatprep.subr.msk.mxu1 %vm259_vm0, %v10245_v6 }
 0x308   : > { %v10705_v29 = vpop.permute.xlu1 %10704 }
 0x309   : > { %v10239_v51 = vpop.permute.xlu0 %10238 }
 0x30a   : > { %v10244_v11 = vsel %vm9979_vm8, %v10239_v51, %v10241_v30  ;;  %v8100_v51 = vrot.slane %v12285_v31, %v13985_v35 }
 0x30b   : > { %12405 = vmatpush1.msk.msra.mxu1 %vm259_vm0, %v10244_v11 }
 0x30c   : > { %v10703_v22 = vpop.permute.xlu1 %10702  ;;  %12406 = vmatmul.mubr.msk.f32.vlgmr.msra.gmra.mrb[22].mxu1 %vm255_vm1, %v12403_v52  ;;  %v12441_v52 = vld [vmem:[%s14999_s1 + $0x248] sm:$0xff] }
 0x30d   : > { %v10708_v53 = vsel %vm10443_vm9, %v10703_v22, %v10705_v29  ;;  %v10707_v16 = vpop.permute.xlu0 %10706  ;;  %10407 = vmatprep.mubr.f32.mxu1 %v12810_v0 }
 0x30e   : > { %v10709_v14 = vsel %vm10443_vm9, %v10705_v29, %v10707_v16 }
 0x30f   : > { %12425 = vmatprep.subr.msk.mxu0 %vm259_vm0, %v10709_v14 }
 0x310   : > { %12426 = vmatpush1.msk.msra.mxu0 %vm259_vm0, %v10708_v53  ;;  %v10333_v58 = vpop.permute.xlu1 %10332  ;;  %v8104_v53 = vrot.slane %v12285_v31, %v13987_v17 }
 0x311   : > { %v10331_v60 = vpop.permute.xlu0 %10330  ;;  %12427 = vmatmul.mubr.msk.f32.vlgmr.msra.gmra.mrb[22].mxu0 %vm255_vm1, %v12424_v57 }
 0x312   : > { %v10335_v56 = vsel %vm9979_vm8, %v10331_v60, %v10333_v58  ;;  %10871 = vmatprep.mubr.f32.mxu0 %v12810_v0 }
 0x313   : > { %12408 = vmatprep.subr.msk.mxu1 %vm259_vm0, %v10335_v56 }
 0x314   : > { %v10795_v49 = vpop.permute.xlu1 %10794 }
 0x315   : > { %v10329_v42 = vpop.permute.xlu0 %10328 }
 0x316   : > { %v10334_v46 = vsel %vm9979_vm8, %v10329_v42, %v10331_v60 }
 0x317   : > { %12409 = vmatpush1.msk.msra.mxu1 %vm259_vm0, %v10334_v46 }
 0x318   : > { %12410 = vmatmul.mubr.msk.f32.vlgmr.msra.gmra.mrb[22].mxu1 %vm255_vm1, %v12407_v41  ;;  %v10793_v8 = vpop.permute.xlu1 %10792 }
 0x319   : > { %v10798_v61 = vsel %vm10443_vm9, %v10793_v8, %v10795_v49  ;;  %v10797_v43 = vpop.permute.xlu0 %10796  ;;  %10981 = vmatprep.mubr.f32.mxu1 %v12810_v0 }
 0x31a   : > { %v10799_v62 = vsel %vm10443_vm9, %v10795_v49, %v10797_v43 }
 0x31b   : > { %12429 = vmatprep.subr.msk.mxu0 %vm259_vm0, %v10799_v62 }
 0x31c   : > { %12430 = vmatpush1.msk.msra.mxu0 %vm259_vm0, %v10798_v61  ;;  %v10906_v45 = vpop.permute.xlu1 %10905 }
 0x31d   : > { %12431 = vmatmul.mubr.msk.f32.vlgmr.msra.gmra.mrb[22].mxu0 %vm255_vm1, %v12428_v63  ;;  %v10904_v3 = vpop.permute.xlu0 %10903 }
 0x31e   : > { %v10909_v9 = vsel %vm10907_vm10, %v10904_v3, %v10906_v45  ;;  %11445 = vmatprep.mubr.f32.mxu0 %v12810_v0  ;;  %v12445_v45 = vld [vmem:[%s14999_s1 + $0x310] sm:$0xff] }
 0x31f   : > { %12435 = vmatprep.subr.msk.mxu1 %vm259_vm0, %v10909_v9 }
 0x320   : > { %v11368_v18 = vpop.permute.xlu1 %11367 }
 0x321   : > { %v10902_v40 = vpop.permute.xlu0 %10901 }
 0x322   : > { %v10908_v54 = vsel %vm10907_vm10, %v10902_v40, %v10904_v3 }
 0x323   : > { %12436 = vmatpush1.msk.msra.mxu1 %vm259_vm0, %v10908_v54  ;;  %v12466_v54 = vld [vmem:[%s14999_s1 + $0x318] sm:$0xff] }
 0x324   : > { %v11366_v32 = vpop.permute.xlu1 %11365  ;;  %12437 = vmatmul.mubr.msk.f32.vlgmr.msra.gmra.mrb[24].mxu1 %vm255_vm1, %v12434_v21 }
 0x325   : > { %v11372_v59 = vsel %vm11371_vm11, %v11366_v32, %v11368_v18  ;;  %v11370_v23 = vpop.permute.xlu0 %11369  ;;  %11067 = vmatprep.mubr.f32.mxu1 %v12810_v0 }
 0x326   : > { %v11373_v25 = vsel %vm11371_vm11, %v11368_v18, %v11370_v23 }
 0x327   : > { %12456 = vmatprep.subr.msk.mxu0 %vm259_vm0, %v11373_v25 }
 0x328   : > { %12457 = vmatpush1.msk.msra.mxu0 %vm259_vm0, %v11372_v59  ;;  %v10993_v55 = vpop.permute.xlu1 %10992 }
 0x329   : > { %v10991_v26 = vpop.permute.xlu0 %10990  ;;  %12458 = vmatmul.mubr.msk.f32.vlgmr.msra.gmra.mrb[24].mxu0 %vm255_vm1, %v12455_v24 }
 0x32a   : > { %v10995_v27 = vsel %vm10907_vm10, %v10991_v26, %v10993_v55  ;;  %11531 = vmatprep.mubr.f32.mxu0 %v12810_v0  ;;  %v12449_v55 = vld [vmem:[%s14999_s1 + $0x3d8] sm:$0xff] }
 0x32b   : > { %12438 = vmatprep.subr.msk.mxu1 %vm259_vm0, %v10995_v27 }
 0x32c   : > { %v11455_v28 = vpop.permute.xlu1 %11454 }
 0x32d   : > { %v10989_v15 = vpop.permute.xlu0 %10988 }
 0x32e   : > { %v10994_v34 = vsel %vm10907_vm10, %v10989_v15, %v10991_v26 }
 0x32f   : > { %12439 = vmatpush1.msk.msra.mxu1 %vm259_vm0, %v10994_v34  ;;  %v12306_v34 = vld [vmem:[%s15000_s2 + $0x21] ss:$8 sm:$0x3] }
 0x330   : > { %v11453_v36 = vpop.permute.xlu1 %11452  ;;  %12440 = vmatmul.mubr.msk.f32.vlgmr.msra.gmra.mrb[24].mxu1 %vm255_vm1, %v12433_v10  ;;  %v12470_v10 = vld [vmem:[%s14999_s1 + $0x3e0] sm:$0xff]  ;;  %v8568_v4 = vrot.slane %v12306_v34, %v13987_v17 }
 0x331   : > { %v11458_v38 = vsel %vm11371_vm11, %v11453_v36, %v11455_v28  ;;  %v11457_v39 = vpop.permute.xlu0 %11456  ;;  %11155 = vmatprep.mubr.f32.mxu1 %v12810_v0  ;;  %v8564_v36 = vrot.slane %v12306_v34, %v13985_v35 }
 0x332   : > { %v11459_v1 = vsel %vm11371_vm11, %v11455_v28, %v11457_v39 }
 0x333   : > { %12459 = vmatprep.subr.msk.mxu0 %vm259_vm0, %v11459_v1 }
 0x334   : > { %12460 = vmatpush1.msk.msra.mxu0 %vm259_vm0, %v11458_v38  ;;  %v11081_v12 = vpop.permute.xlu1 %11080 }
 0x335   : > { %v11079_v47 = vpop.permute.xlu0 %11078  ;;  %12461 = vmatmul.mubr.msk.f32.vlgmr.msra.gmra.mrb[24].mxu0 %vm255_vm1, %v12454_v20  ;;  %v9028_v20 = vrot.slane %v12327_v37, %v13985_v35 }
 0x336   : > { %v11083_v50 = vsel %vm10907_vm10, %v11079_v47, %v11081_v12  ;;  %11619 = vmatprep.mubr.f32.mxu0 %v12810_v0 }
 0x337   : > { %v7625_v2 = vpop.f32.mrb[16].mxu1  ;;  %12442 = vmatprep.subr.msk.mxu1 %vm259_vm0, %v11083_v50 }
 0x338   : > { %v7643_v33 = vmul.f32 %v7636_v19, %v7625_v2  ;;  %v7627_v5 = vpop.f32.mrb[17].mxu1  ;;  %v11543_v30 = vpop.permute.xlu1 %11542  ;;  %v9032_v19 = vrot.slane %v12327_v37, %v13987_v17 }
 0x339   : > { %v7644_v6 = vmul.f32 %v7640_v48, %v7627_v5  ;;  %v11077_v29 = vpop.permute.xlu0 %11076 }
 0x33a   : > { %v7645_v11 = vadd.f32 %v7643_v33, %v14790_v13  ;;  %v11082_v22 = vsel %vm10907_vm10, %v11077_v29, %v11079_v47 }
 0x33b   : > { %v7646_v16 = vadd.f32 %v7644_v6, %v14793_v7  ;;  %12443 = vmatpush1.msk.msra.mxu1 %vm259_vm0, %v11082_v22  ;;  %v12462_v7 = vld [vmem:[%s14999_s1 + $0x250] sm:$0xff] }
 0x33c   : > { %v8089_v14 = vpop.f32.mrb[16].mxu0  ;;  %v11541_v57 = vpop.permute.xlu1 %11540  ;;  %12444 = vmatmul.mubr.msk.f32.vlgmr.msra.gmra.mrb[24].mxu1 %vm255_vm1, %v12441_v52 }
 0x33d   : > { %v8107_v58 = vmul.f32 %v8100_v51, %v8089_v14  ;;  %v11546_v60 = vsel %vm11371_vm11, %v11541_v57, %v11543_v30  ;;  %v8091_v56 = vpop.f32.mrb[17].mxu0  ;;  %v11545_v49 = vpop.permute.xlu0 %11544  ;;  %11245 = vmatprep.mubr.f32.mxu1 %v12810_v0  ;;  %v12369_v51 = vld [vmem:[%s15000_s2 + $0x24] ss:$8 sm:$0x3] }
 0x33e   : > { %v8108_v13 = vmul.f32 %v8104_v53, %v8091_v56  ;;  %v11547_v42 = vsel %vm11371_vm11, %v11543_v30, %v11545_v49  ;;  %v12348_v30 = vld [vmem:[%s15000_s2 + $0x23] ss:$8 sm:$0x3]  ;;  %v9960_v57 = vrot.slane %v12369_v51, %v13987_v17 }
 0x33f   : > { %v8109_v41 = vadd.f32 %v8107_v58, %v7645_v11  ;;  %12463 = vmatprep.subr.msk.mxu0 %vm259_vm0, %v11547_v42  ;;  %v9492_v6 = vrot.slane %v12348_v30, %v13985_v35  ;;  %v9496_v29 = vrot.slane %v12348_v30, %v13987_v17 }
 0x340   : > { %v8110_v46 = vadd.f32 %v8108_v13, %v7646_v16  ;;  %12464 = vmatpush1.msk.msra.mxu0 %vm259_vm0, %v11546_v60  ;;  %v11171_v8 = vpop.permute.xlu1 %11170  ;;  %v9956_v16 = vrot.slane %v12369_v51, %v13985_v35 }
 0x341   : > { %v11169_v61 = vpop.permute.xlu0 %11168  ;;  %12465 = vmatmul.mubr.msk.f32.vlgmr.msra.gmra.mrb[24].mxu0 %vm255_vm1, %v12462_v7 }
 0x342   : > { %v11173_v43 = vsel %vm10907_vm10, %v11169_v61, %v11171_v8  ;;  %11709 = vmatprep.mubr.f32.mxu0 %v12810_v0 }
 0x343   : > { %12446 = vmatprep.subr.msk.mxu1 %vm259_vm0, %v11173_v43 }
 0x344   : > { %v11633_v62 = vpop.permute.xlu1 %11632 }
 0x345   : > { %v11167_v63 = vpop.permute.xlu0 %11166 }
 0x346   : > { %v11172_v3 = vsel %vm10907_vm10, %v11167_v63, %v11169_v61  ;;  %v12411_v61 = vld [vmem:[%s15000_s2 + $0x26] ss:$8 sm:$0x3] }
 0x347   : > { %12447 = vmatpush1.msk.msra.mxu1 %vm259_vm0, %v11172_v3  ;;  %v10884_v3 = vrot.slane %v12411_v61, %v13985_v35 }
 0x348   : > { %v11631_v9 = vpop.permute.xlu1 %11630  ;;  %12448 = vmatmul.mubr.msk.f32.vlgmr.msra.gmra.mrb[24].mxu1 %vm255_vm1, %v12445_v45 }
 0x349   : > { %v11636_v18 = vsel %vm11371_vm11, %v11631_v9, %v11633_v62  ;;  %v11635_v40 = vpop.permute.xlu0 %11634  ;;  %11335 = vmatprep.mubr.f32.mxu1 %v12810_v0 }
 0x34a   : > { %v11637_v21 = vsel %vm11371_vm11, %v11633_v62, %v11635_v40 }
 0x34b   : > { %12467 = vmatprep.subr.msk.mxu0 %vm259_vm0, %v11637_v21 }
 0x34c   : > { %12468 = vmatpush1.msk.msra.mxu0 %vm259_vm0, %v11636_v18  ;;  %v11261_v32 = vpop.permute.xlu1 %11260  ;;  %v10888_v18 = vrot.slane %v12411_v61, %v13987_v17 }
 0x34d   : > { %v11259_v59 = vpop.permute.xlu0 %11258  ;;  %12469 = vmatmul.mubr.msk.f32.vlgmr.msra.gmra.mrb[24].mxu0 %vm255_vm1, %v12466_v54 }
 0x34e   : > { %v11263_v23 = vsel %vm10907_vm10, %v11259_v59, %v11261_v32  ;;  %11799 = vmatprep.mubr.f32.mxu0 %v12810_v0 }
 0x34f   : > { %12450 = vmatprep.subr.msk.mxu1 %vm259_vm0, %v11263_v23 }
 0x350   : > { %v11723_v25 = vpop.permute.xlu1 %11722 }
 0x351   : > { %v11257_v24 = vpop.permute.xlu0 %11256 }
 0x352   : > { %v11262_v26 = vsel %vm10907_vm10, %v11257_v24, %v11259_v59  ;;  %v12432_v24 = vld [vmem:[%s15000_s2 + $0x27] ss:$8 sm:$0x3] }
 0x353   : > { %12451 = vmatpush1.msk.msra.mxu1 %vm259_vm0, %v11262_v26  ;;  %v11352_v26 = vrot.slane %v12432_v24, %v13987_v17 }
 0x354   : > { %12452 = vmatmul.mubr.msk.f32.vlgmr.msra.gmra.mrb[24].mxu1 %vm255_vm1, %v12449_v55  ;;  %v11721_v27 = vpop.permute.xlu1 %11720  ;;  %v11348_v55 = vrot.slane %v12432_v24, %v13985_v35 }
 0x355   : > { %v11726_v28 = vsel %vm11371_vm11, %v11721_v27, %v11723_v25  ;;  %v11725_v15 = vpop.permute.xlu0 %11724  ;;  %v12453_v27 = vld [vmem:[%s15000_s2 + $0x30] ss:$8 sm:$0x3] }
 0x356   : > { %v11727_v0 = vsel %vm11371_vm11, %v11723_v25, %v11725_v15  ;;  %v11812_v34 = vrot.slane %v12453_v27, %v13985_v35 }
 0x357   : > { %12471 = vmatprep.subr.msk.mxu0 %vm259_vm0, %v11727_v0 }
 0x358   : > { %12472 = vmatpush1.msk.msra.mxu0 %vm259_vm0, %v11726_v28 }
 0x359   : > { %12473 = vmatmul.mubr.msk.f32.vlgmr.msra.gmra.mrb[24].mxu0 %vm255_vm1, %v12470_v10 }
 0x373   : > { %v8553_v38 = vpop.f32.mrb[18].mxu1 }
 0x374   : > { %v8571_v39 = vmul.f32 %v8564_v36, %v8553_v38  ;;  %v8555_v44 = vpop.f32.mrb[19].mxu1 }
 0x375   : > { %v8572_v1 = vmul.f32 %v8568_v4, %v8555_v44  ;;  %v11816_v4 = vrot.slane %v12453_v27, %v13987_v17 }
 0x376   : > { %v8573_v12 = vadd.f32 %v8571_v39, %v8109_v41  ;;  %v12390_v41 = vld [vmem:[%s15000_s2 + $0x25] ss:$8 sm:$0x3] }
 0x377   : > { %v8574_v47 = vadd.f32 %v8572_v1, %v8110_v46  ;;  %v10420_v46 = vrot.slane %v12390_v41, %v13985_v35  ;;  %v10424_v8 = vrot.slane %v12390_v41, %v13987_v17 }
 0x378   : > { %v9017_v48 = vpop.f32.mrb[18].mxu0 }
 0x379   : > { %v9035_v50 = vmul.f32 %v9028_v20, %v9017_v48  ;;  %v9019_v31 = vpop.f32.mrb[19].mxu0 }
 0x37a   : > { %v9036_v2 = vmul.f32 %v9032_v19, %v9019_v31 }
 0x37b   : > { %v9037_v33 = vadd.f32 %v9035_v50, %v8573_v12 }
 0x37c   : > { %v9038_v5 = vadd.f32 %v9036_v2, %v8574_v47 }
 0x382   : > { %v11827_v20 = vpop.permute.xlu0 %11826 }
 0x3af   : > { %v9481_v52 = vpop.f32.mrb[20].mxu1 }
 0x3b0   : > { %v9499_v11 = vmul.f32 %v9492_v6, %v9481_v52  ;;  %v9483_v22 = vpop.f32.mrb[21].mxu1 }
 0x3b1   : > { %v9500_v53 = vmul.f32 %v9496_v29, %v9483_v22 }
 0x3b2   : > { %v9501_v14 = vadd.f32 %v9499_v11, %v9037_v33 }
 0x3b3   : > { %v9502_v58 = vadd.f32 %v9500_v53, %v9038_v5 }
 0x3b4   : > { %v9945_v60 = vpop.f32.mrb[20].mxu0 }
 0x3b5   : > { %v9963_v56 = vmul.f32 %v9956_v16, %v9945_v60  ;;  %v9947_v49 = vpop.f32.mrb[21].mxu0 }
 0x3b6   : > { %v9964_v13 = vmul.f32 %v9960_v57, %v9947_v49 }
 0x3b7   : > { %v9965_v42 = vadd.f32 %v9963_v56, %v9501_v14 }
 0x3b8   : > { %v9966_v7 = vadd.f32 %v9964_v13, %v9502_v58 }
 0x3eb   : > { %v10409_v43 = vpop.f32.mrb[22].mxu1 }
 0x3ec   : > { %v10427_v62 = vmul.f32 %v10420_v46, %v10409_v43  ;;  %v10411_v63 = vpop.f32.mrb[23].mxu1 }
 0x3ed   : > { %v10428_v45 = vmul.f32 %v10424_v8, %v10411_v63 }
 0x3ee   : > { %v10429_v9 = vadd.f32 %v10427_v62, %v9965_v42 }
 0x3ef   : > { %v10430_v40 = vadd.f32 %v10428_v45, %v9966_v7 }
 0x3f0   : > { %v10873_v21 = vpop.f32.mrb[22].mxu0 }
 0x3f1   : > { %v10891_v54 = vmul.f32 %v10884_v3, %v10873_v21  ;;  %v10875_v32 = vpop.f32.mrb[23].mxu0 }
 0x3f2   : > { %v10892_v59 = vmul.f32 %v10888_v18, %v10875_v32 }
 0x3f3   : > { %v10893_v23 = vadd.f32 %v10891_v54, %v10429_v9 }
 0x3f4   : > { %v10894_v25 = vadd.f32 %v10892_v59, %v10430_v40 }
 0x427   : > { %v11337_v28 = vpop.f32.mrb[24].mxu1 }
 0x428   : > { %v11355_v15 = vmul.f32 %v11348_v55, %v11337_v28  ;;  %v11339_v0 = vpop.f32.mrb[25].mxu1 }
 0x429   : > { %v11356_v10 = vmul.f32 %v11352_v26, %v11339_v0 }
 0x42a   : > { %v11357_v36 = vadd.f32 %v11355_v15, %v10893_v23 }
 0x42b   : > { %v11358_v37 = vadd.f32 %v11356_v10, %v10894_v25 }
 0x42c   : > { %v11801_v38 = vpop.f32.mrb[24].mxu0 }
 0x42d   : > { %v11819_v39 = vmul.f32 %v11812_v34, %v11801_v38  ;;  %v11803_v44 = vpop.f32.mrb[25].mxu0 }
 0x42e   : > { %v11820_v1 = vmul.f32 %v11816_v4, %v11803_v44 }
 0x42f   : > { %v11821_v12 = vadd.f32 %v11819_v39, %v11357_v36 }
 0x430   : > { %v11822_v19 = vadd.f32 %v11820_v1, %v11358_v37 }
 0x431   : > { %v11829_v47 = vadd.f32 %v11827_v20, %v11821_v12 }
 0x432   : > { %v11830_v48 = vadd.f32 %v11827_v20, %v11822_v19 }
 0x433   : > { %11831 = vst [vmem:[%s219_s16] sm:$0xff] %v11829_v47 }
 0x434   : > { %11832 = vst [vmem:[%s219_s16 + $0x8] sm:$0xff] %v11830_v48 }
 0x435 PF: > { %s14_s19 = sadd.s32 1, %s12808_s19   ;;  %s15003_s15 = smov %s12800_s17 }
 0x436   : > { %p11_p7 = scmp.ge.s32.totalorder %s14_s19, 34   ;;  %s15004_s16 = smov %s12804_s18 }
 0x437   : > { %s15005_s17 = smov %s15008_s20  ;;  %s15006_s18 = smov %s15012_s21 }
 0x438   :  { %13 = sbr.rel (!%p11_p7) target bundleno = 3 (0x3), region = 219 }

</bundles_post_ra>
